<compile_context>
chip_gen: v7x
topology: tpu7x:2x2x1
jax: 0.10.0
libtpu: 0.0.40
codegen_flags: <defaults>
</compile_context>

<pallas_src>
import functools

import jax
import jax.numpy as jnp
from jax.experimental import pallas as pl
from jax.experimental.pallas import tpu as pltpu


def attention_kernel(
    x_ref,      # (1, N, C)     f32  VMEM   full token block (k/v once + q-tile slice)
    wq_ref,     # (C, C)        bf16 VMEM   wq.T * scale
    wkv_ref,    # (C, 2C)       bf16 VMEM   [wk.T | wv.T]
    wp_ref,     # (C, C)        bf16 VMEM   wp.T
    bp_ref,     # (1, C)        f32  VMEM
    wl_ref,     # (H, H)        f32  SMEM   pre-softmax head mix,  wl[g, h]
    bl_ref,     # (H,)          f32  SMEM
    ww_ref,     # (H, H)        f32  SMEM   post-softmax head mix, ww[g, h]
    bw_ref,     # (H,)          f32  SMEM
    xcls_ref,   # (1, tq, C)    out
    attn_ref,   # (1, H, tq, N) out
    k3_scr,     # (H, N, D)     bf16 scratch (persists across q-tiles of a batch)
    v3_scr,     # (H, N, D)     bf16 scratch
    *, H, D, N, C, tq,
):
    qi = pl.program_id(1)

    # ---- once per batch element: fused k/v projection + head-major repack -----
    @pl.when(qi == 0)
    def _():
        xb = x_ref[0].astype(jnp.bfloat16)                                  # (N, C)
        kv = jnp.dot(xb, wkv_ref[...],
                     preferred_element_type=jnp.float32)                    # (N, 2C)
        kv = kv.astype(jnp.bfloat16)                                        # one bulk cast
        k3_scr[...] = jnp.stack([kv[:, h * D:(h + 1) * D] for h in range(H)], 0)
        v3_scr[...] = jnp.stack([kv[:, C + h * D:C + (h + 1) * D] for h in range(H)], 0)

    # ---- q projection for this query tile (scale pre-folded into wq_ref) ------
    row0 = pl.multiple_of(qi * tq, tq)
    xq = x_ref[0, pl.ds(row0, tq), :].astype(jnp.bfloat16)                  # (tq, C)
    q = jnp.dot(xq, wq_ref[...], preferred_element_type=jnp.float32)        # (tq, C)
    qb = q.astype(jnp.bfloat16)
    q3 = jnp.stack([qb[:, h * D:(h + 1) * D] for h in range(H)], 0)         # (H, tq, D)

    # ---- attention logits, batched over heads on the MXU ----------------------
    s = jnp.einsum('hqd,hkd->hqk', q3, k3_scr[...],
                   preferred_element_type=jnp.float32)                      # (H, tq, N)

    # ---- talking-heads mixes: per-output-head accumulation, SMEM scalar weights
    # TODO(synk): at production shapes express this as an MXU contraction over h.
    def mix_heads(w_ref, b_ref, t):
        rows = []
        for g in range(H):
            acc = t[0] * w_ref[g, 0]
            for h in range(1, H):
                acc = acc + t[h] * w_ref[g, h]
            rows.append(acc + b_ref[g])
        return jnp.stack(rows, 0)                                           # (H, tq, N)

    logits = mix_heads(wl_ref, bl_ref, s)                                   # proj_l

    # ---- softmax over keys (f32, EUP reciprocal) -------------------------------
    m = jnp.max(logits, axis=-1, keepdims=True)
    e = jnp.exp(logits - m)
    p = e * pl.reciprocal(jnp.sum(e, axis=-1, keepdims=True), approx=True)  # (H, tq, N)

    attn = mix_heads(ww_ref, bw_ref, p)                                     # proj_w
    attn_ref[0] = attn.astype(attn_ref.dtype)

    # ---- attention output (batched over heads) + ONE big-K output projection --
    oh = jnp.einsum('hqk,hkd->hqd', attn.astype(jnp.bfloat16), v3_scr[...],
                    preferred_element_type=jnp.float32)                     # (H, tq, D)
    oh = oh.astype(jnp.bfloat16)
    o_cat = jnp.concatenate([oh[h] for h in range(H)], axis=-1)             # (tq, C)
    out = jnp.dot(o_cat, wp_ref[...], preferred_element_type=jnp.float32)
    out = out + bp_ref[...]                                                 # (tq, C)
    xcls_ref[0] = out.astype(xcls_ref.dtype)


def cait_attention(x, params, num_heads, *, q_tile=None, attn_dtype=None):
    B, N, C = x.shape
    H = num_heads
    D = C // H
    scale = D ** -0.5
    tq = q_tile or min(N, 128)
    assert N % tq == 0, "TODO(synk): pad/BoundedSlice for ragged N (e.g. CaiT N=577)"
    attn_dtype = attn_dtype or x.dtype

    wq, wk, wv = params["wq"], params["wk"], params["wv"]
    wp, bp = params["wp"], params["bp"]
    wl, bl = params["wl"], params["bl"]
    ww, bw = params["ww"], params["bw"]

    # Host-side weight prep (once per call): q scale folded into the f32 weight
    # before the bf16 cast; k/v weights fused; talking-heads weights stay f32.
    wqT = (wq.T * scale).astype(jnp.bfloat16)                       # (C, C)
    wkvT = jnp.concatenate([wk.T, wv.T], axis=1).astype(jnp.bfloat16)  # (C, 2C)
    wpT = wp.T.astype(jnp.bfloat16)                                 # (C, C)
    bp2 = bp.reshape(1, C).astype(jnp.float32)
    wl_s = wl.astype(jnp.float32)                                   # (H, H)  wl[g, h]
    bl_s = bl.astype(jnp.float32)                                   # (H,)
    ww_s = ww.astype(jnp.float32)
    bw_s = bw.astype(jnp.float32)

    kernel = functools.partial(attention_kernel, H=H, D=D, N=N, C=C, tq=tq)

    # --- VMEM budget from actual footprint (double-buffered blocks + scratch +
    # live intermediates), with 1.5x headroom, clamped to [32 MiB, 100 MiB].
    itemsize_x = jnp.dtype(x.dtype).itemsize
    itemsize_attn = jnp.dtype(attn_dtype).itemsize
    blocks = (2 * N * C * 4
              + 2 * (C * C * 2 + C * 2 * C * 2 + C * C * 2 + C * 4)
              + 2 * tq * C * itemsize_x
              + 2 * H * tq * N * itemsize_attn)
    scratch = 2 * H * N * D * 2
    live = N * 2 * C * 4 + 6 * H * tq * N * 4 + 4 * tq * C * 4
    vmem_limit = int(max(32 << 20, min(100 << 20, 1.5 * (blocks + scratch + live))))

    smem = pltpu.MemorySpace.SMEM
    grid_spec = pltpu.PrefetchScalarGridSpec(
        num_scalar_prefetch=0,
        grid=(B, N // tq),
        in_specs=[
            pl.BlockSpec((1, N, C), lambda b, qi: (b, 0, 0)),
            pl.BlockSpec((C, C), lambda b, qi: (0, 0)),
            pl.BlockSpec((C, 2 * C), lambda b, qi: (0, 0)),
            pl.BlockSpec((C, C), lambda b, qi: (0, 0)),
            pl.BlockSpec((1, C), lambda b, qi: (0, 0)),
            pl.BlockSpec((H, H), lambda b, qi: (0, 0), memory_space=smem),
            pl.BlockSpec((H,), lambda b, qi: (0,), memory_space=smem),
            pl.BlockSpec((H, H), lambda b, qi: (0, 0), memory_space=smem),
            pl.BlockSpec((H,), lambda b, qi: (0,), memory_space=smem),
        ],
        out_specs=[
            pl.BlockSpec((1, tq, C), lambda b, qi: (b, qi, 0)),
            pl.BlockSpec((1, H, tq, N), lambda b, qi: (b, 0, qi, 0)),
        ],
        scratch_shapes=[
            pltpu.VMEM((H, N, D), jnp.bfloat16),
            pltpu.VMEM((H, N, D), jnp.bfloat16),
        ],
    )

    x_cls, attn = pl.pallas_call(
        kernel,
        out_shape=(
            jax.ShapeDtypeStruct((B, N, C), x.dtype),
            jax.ShapeDtypeStruct((B, H, N, N), attn_dtype),
        ),
        grid_spec=grid_spec,
        compiler_params=pltpu.CompilerParams(
            dimension_semantics=("parallel", "arbitrary"),
            vmem_limit_bytes=vmem_limit,
        ),
    )(x, wqT, wkvT, wpT, bp2, wl_s, bl_s, ww_s, bw_s)
    return x_cls, attn


def reference_attention(x, params, num_heads):
    """Pure-JAX reference matching the PyTorch forward exactly."""
    B, N, C = x.shape
    H = num_heads
    D = C // H
    scale = D ** -0.5
    wq, wk, wv, wp, bp, wl, bl, ww, bw = (
        params["wq"], params["wk"], params["wv"], params["wp"], params["bp"],
        params["wl"], params["bl"], params["ww"], params["bw"])
    with jax.default_matmul_precision("highest"):
        q = (x @ wq.T).reshape(B, N, H, D).transpose(0, 2, 1, 3) * scale
        k = (x @ wk.T).reshape(B, N, H, D).transpose(0, 2, 1, 3)
        v = (x @ wv.T).reshape(B, N, H, D).transpose(0, 2, 1, 3)
        attn = jnp.einsum("bhnd,bhmd->bhnm", q, k)
        attn = jnp.einsum("bhnm,gh->bgnm", attn, wl) + bl[None, :, None, None]
        attn = jax.nn.softmax(attn, axis=-1)
        attn = jnp.einsum("bhnm,gh->bgnm", attn, ww) + bw[None, :, None, None]
        xo = jnp.einsum("bhnm,bhmd->bhnd", attn, v)
        xo = xo.transpose(0, 2, 1, 3).reshape(B, N, C)
        xo = xo @ wp.T + bp
    return xo, attn


if __name__ == "__main__":
    B, N, C = 2, 8, 64
    num_heads = 8  # module default

    key = jax.random.PRNGKey(0)
    keys = jax.random.split(key, 10)
    params = {
        "wq": 0.1 * jax.random.normal(keys[0], (C, C), jnp.float32),
        "wk": 0.1 * jax.random.normal(keys[1], (C, C), jnp.float32),
        "wv": 0.1 * jax.random.normal(keys[2], (C, C), jnp.float32),
        "wp": 0.1 * jax.random.normal(keys[3], (C, C), jnp.float32),
        "bp": 0.1 * jax.random.normal(keys[4], (C,), jnp.float32),
        "wl": 0.1 * jax.random.normal(keys[5], (num_heads, num_heads), jnp.float32),
        "bl": 0.1 * jax.random.normal(keys[6], (num_heads,), jnp.float32),
        "ww": 0.1 * jax.random.normal(keys[7], (num_heads, num_heads), jnp.float32),
        "bw": 0.1 * jax.random.normal(keys[8], (num_heads,), jnp.float32),
    }
    x = jax.random.normal(keys[9], (B, N, C), jnp.float32)

    x_cls, attn = cait_attention(x, params, num_heads)
    jax.block_until_ready((x_cls, attn))

    x_cls_ref, attn_ref = reference_attention(x, params, num_heads)
    assert x_cls.shape == (B, N, C) and attn.shape == (B, num_heads, N, N)
    assert jnp.allclose(x_cls, x_cls_ref, atol=5e-2, rtol=5e-2)
    assert jnp.allclose(attn, attn_ref, atol=5e-2, rtol=5e-2)

    print("KERNEL_OK")
</pallas_src>

<mosaic_0001>
module attributes {stable_mosaic.version = 11 : i64} {
  func.func @attention_kernel(%arg0: i32, %arg1: i32, %arg2: memref<1x8x64xf32, #tpu.memory_space<vmem>>, %arg3: memref<64x64xbf16, #tpu.memory_space<vmem>>, %arg4: memref<64x128xbf16, #tpu.memory_space<vmem>>, %arg5: memref<64x64xbf16, #tpu.memory_space<vmem>>, %arg6: memref<1x64xf32, #tpu.memory_space<vmem>>, %arg7: memref<8x8xf32, #tpu.memory_space<smem>>, %arg8: memref<8xf32, #tpu.memory_space<smem>>, %arg9: memref<8x8xf32, #tpu.memory_space<smem>>, %arg10: memref<8xf32, #tpu.memory_space<smem>>, %arg11: memref<1x8x64xf32, #tpu.memory_space<vmem>>, %arg12: memref<1x8x8x8xf32, #tpu.memory_space<vmem>>, %arg13: memref<8x8x8xbf16, #tpu.memory_space<vmem>>, %arg14: memref<8x8x8xbf16, #tpu.memory_space<vmem>>) attributes {dimension_semantics = [#tpu.dimension_semantics<parallel>, #tpu.dimension_semantics<arbitrary>], iteration_bounds = array<i64: 2, 1>, scalar_prefetch = 0 : i64, scratch_operands = 2 : i64, tpu.core_type = #tpu.core_type<tc>, window_params = [{transform_indices = @transform_0, window_bounds = array<i64: 1, 8, 64>}, {pipeline_mode = #tpu.pipeline_mode<synchronous>, transform_indices = @transform_1, window_bounds = array<i64: 64, 64>}, {pipeline_mode = #tpu.pipeline_mode<synchronous>, transform_indices = @transform_2, window_bounds = array<i64: 64, 128>}, {pipeline_mode = #tpu.pipeline_mode<synchronous>, transform_indices = @transform_3, window_bounds = array<i64: 64, 64>}, {pipeline_mode = #tpu.pipeline_mode<synchronous>, transform_indices = @transform_4, window_bounds = array<i64: 1, 64>}, {transform_indices = @transform_5, window_bounds = array<i64: 8, 8>}, {transform_indices = @transform_6, window_bounds = array<i64: 8>}, {transform_indices = @transform_7, window_bounds = array<i64: 8, 8>}, {transform_indices = @transform_8, window_bounds = array<i64: 8>}, {transform_indices = @transform_9, window_bounds = array<i64: 1, 8, 64>}, {transform_indices = @transform_10, window_bounds = array<i64: 1, 8, 8, 8>}]} {
    %c0_i32 = arith.constant 0 : i32
    %0 = arith.cmpi eq, %arg1, %c0_i32 : i32
    %1 = arith.extui %0 : i1 to i32
    %c0_i32_0 = arith.constant 0 : i32
    %2 = arith.cmpi ne, %1, %c0_i32_0 : i32
    scf.if %2 {
      %c0_291 = arith.constant 0 : index
      %c0_292 = arith.constant 0 : index
      %c0_293 = arith.constant 0 : index
      %891 = vector.load %arg2[%c0_291, %c0_292, %c0_293] : memref<1x8x64xf32, #tpu.memory_space<vmem>>, vector<1x8x64xf32>
      %892 = vector.shape_cast %891 : vector<1x8x64xf32> to vector<8x64xf32>
      %893 = arith.truncf %892 : vector<8x64xf32> to vector<8x64xbf16>
      %c0_294 = arith.constant 0 : index
      %c0_295 = arith.constant 0 : index
      %894 = vector.load %arg4[%c0_294, %c0_295] : memref<64x128xbf16, #tpu.memory_space<vmem>>, vector<64x128xbf16>
      %cst_296 = arith.constant dense<0.000000e+00> : vector<8x128xf32>
      %895 = tpu.matmul %893, %894, %cst_296 {dimension_numbers = #tpu.dot_dimension_numbers<[1], [0], [0], [1], [0, 0, 1, 1], [], []>} : vector<8x64xbf16>, vector<64x128xbf16>, vector<8x128xf32> -> vector<8x128xf32>
      %896 = arith.truncf %895 : vector<8x128xf32> to vector<8x128xbf16>
      %897 = vector.extract_strided_slice %896 {offsets = [0, 0], sizes = [8, 8], strides = [1, 1]} : vector<8x128xbf16> to vector<8x8xbf16>
      %898 = vector.extract_strided_slice %896 {offsets = [0, 8], sizes = [8, 8], strides = [1, 1]} : vector<8x128xbf16> to vector<8x8xbf16>
      %899 = vector.extract_strided_slice %896 {offsets = [0, 16], sizes = [8, 8], strides = [1, 1]} : vector<8x128xbf16> to vector<8x8xbf16>
      %900 = vector.extract_strided_slice %896 {offsets = [0, 24], sizes = [8, 8], strides = [1, 1]} : vector<8x128xbf16> to vector<8x8xbf16>
      %901 = vector.extract_strided_slice %896 {offsets = [0, 32], sizes = [8, 8], strides = [1, 1]} : vector<8x128xbf16> to vector<8x8xbf16>
      %902 = vector.extract_strided_slice %896 {offsets = [0, 40], sizes = [8, 8], strides = [1, 1]} : vector<8x128xbf16> to vector<8x8xbf16>
      %903 = vector.extract_strided_slice %896 {offsets = [0, 48], sizes = [8, 8], strides = [1, 1]} : vector<8x128xbf16> to vector<8x8xbf16>
      %904 = vector.extract_strided_slice %896 {offsets = [0, 56], sizes = [8, 8], strides = [1, 1]} : vector<8x128xbf16> to vector<8x8xbf16>
      %905 = vector.shape_cast %897 : vector<8x8xbf16> to vector<1x8x8xbf16>
      %906 = vector.shape_cast %898 : vector<8x8xbf16> to vector<1x8x8xbf16>
      %907 = vector.shape_cast %899 : vector<8x8xbf16> to vector<1x8x8xbf16>
      %908 = vector.shape_cast %900 : vector<8x8xbf16> to vector<1x8x8xbf16>
      %909 = vector.shape_cast %901 : vector<8x8xbf16> to vector<1x8x8xbf16>
      %910 = vector.shape_cast %902 : vector<8x8xbf16> to vector<1x8x8xbf16>
      %911 = vector.shape_cast %903 : vector<8x8xbf16> to vector<1x8x8xbf16>
      %912 = vector.shape_cast %904 : vector<8x8xbf16> to vector<1x8x8xbf16>
      %913 = tpu.concatenate %905, %906, %907, %908, %909, %910, %911, %912 in 0 : vector<1x8x8xbf16>, vector<1x8x8xbf16>, vector<1x8x8xbf16>, vector<1x8x8xbf16>, vector<1x8x8xbf16>, vector<1x8x8xbf16>, vector<1x8x8xbf16>, vector<1x8x8xbf16> -> vector<8x8x8xbf16>
      %c0_297 = arith.constant 0 : index
      %c0_298 = arith.constant 0 : index
      %c0_299 = arith.constant 0 : index
      %914 = vector.load %arg13[%c0_297, %c0_298, %c0_299] : memref<8x8x8xbf16, #tpu.memory_space<vmem>>, vector<8x8x8xbf16>
      tpu.vector_store %arg13[%c0_297, %c0_298, %c0_299], %913 {strides = array<i32>} : memref<8x8x8xbf16, #tpu.memory_space<vmem>>, vector<8x8x8xbf16>,
      %915 = vector.extract_strided_slice %896 {offsets = [0, 64], sizes = [8, 8], strides = [1, 1]} : vector<8x128xbf16> to vector<8x8xbf16>
      %916 = vector.extract_strided_slice %896 {offsets = [0, 72], sizes = [8, 8], strides = [1, 1]} : vector<8x128xbf16> to vector<8x8xbf16>
      %917 = vector.extract_strided_slice %896 {offsets = [0, 80], sizes = [8, 8], strides = [1, 1]} : vector<8x128xbf16> to vector<8x8xbf16>
      %918 = vector.extract_strided_slice %896 {offsets = [0, 88], sizes = [8, 8], strides = [1, 1]} : vector<8x128xbf16> to vector<8x8xbf16>
      %919 = vector.extract_strided_slice %896 {offsets = [0, 96], sizes = [8, 8], strides = [1, 1]} : vector<8x128xbf16> to vector<8x8xbf16>
      %920 = vector.extract_strided_slice %896 {offsets = [0, 104], sizes = [8, 8], strides = [1, 1]} : vector<8x128xbf16> to vector<8x8xbf16>
      %921 = vector.extract_strided_slice %896 {offsets = [0, 112], sizes = [8, 8], strides = [1, 1]} : vector<8x128xbf16> to vector<8x8xbf16>
      %922 = vector.extract_strided_slice %896 {offsets = [0, 120], sizes = [8, 8], strides = [1, 1]} : vector<8x128xbf16> to vector<8x8xbf16>
      %923 = vector.shape_cast %915 : vector<8x8xbf16> to vector<1x8x8xbf16>
      %924 = vector.shape_cast %916 : vector<8x8xbf16> to vector<1x8x8xbf16>
      %925 = vector.shape_cast %917 : vector<8x8xbf16> to vector<1x8x8xbf16>
      %926 = vector.shape_cast %918 : vector<8x8xbf16> to vector<1x8x8xbf16>
      %927 = vector.shape_cast %919 : vector<8x8xbf16> to vector<1x8x8xbf16>
      %928 = vector.shape_cast %920 : vector<8x8xbf16> to vector<1x8x8xbf16>
      %929 = vector.shape_cast %921 : vector<8x8xbf16> to vector<1x8x8xbf16>
      %930 = vector.shape_cast %922 : vector<8x8xbf16> to vector<1x8x8xbf16>
      %931 = tpu.concatenate %923, %924, %925, %926, %927, %928, %929, %930 in 0 : vector<1x8x8xbf16>, vector<1x8x8xbf16>, vector<1x8x8xbf16>, vector<1x8x8xbf16>, vector<1x8x8xbf16>, vector<1x8x8xbf16>, vector<1x8x8xbf16>, vector<1x8x8xbf16> -> vector<8x8x8xbf16>
      %c0_300 = arith.constant 0 : index
      %c0_301 = arith.constant 0 : index
      %c0_302 = arith.constant 0 : index
      %932 = vector.load %arg14[%c0_300, %c0_301, %c0_302] : memref<8x8x8xbf16, #tpu.memory_space<vmem>>, vector<8x8x8xbf16>
      tpu.vector_store %arg14[%c0_300, %c0_301, %c0_302], %931 {strides = array<i32>} : memref<8x8x8xbf16, #tpu.memory_space<vmem>>, vector<8x8x8xbf16>,
    } else {
    }
    %c8_i32 = arith.constant 8 : i32
    %3 = arith.muli %arg1, %c8_i32 : i32
    %4 = tpu.assume_multiple %3, 8 : i32
    %c0 = arith.constant 0 : index
    %5 = arith.index_cast %4 : i32 to index
    %c0_1 = arith.constant 0 : index
    %6 = vector.load %arg2[%c0, %5, %c0_1] : memref<1x8x64xf32, #tpu.memory_space<vmem>>, vector<1x8x64xf32>
    %7 = vector.shape_cast %6 : vector<1x8x64xf32> to vector<8x64xf32>
    %8 = arith.truncf %7 : vector<8x64xf32> to vector<8x64xbf16>
    %c0_2 = arith.constant 0 : index
    %c0_3 = arith.constant 0 : index
    %9 = vector.load %arg3[%c0_2, %c0_3] : memref<64x64xbf16, #tpu.memory_space<vmem>>, vector<64x64xbf16>
    %cst = arith.constant dense<0.000000e+00> : vector<8x64xf32>
    %10 = tpu.matmul %8, %9, %cst {dimension_numbers = #tpu.dot_dimension_numbers<[1], [0], [0], [1], [0, 0, 1, 1], [], []>} : vector<8x64xbf16>, vector<64x64xbf16>, vector<8x64xf32> -> vector<8x64xf32>
    %11 = arith.truncf %10 : vector<8x64xf32> to vector<8x64xbf16>
    %12 = vector.extract_strided_slice %11 {offsets = [0, 0], sizes = [8, 8], strides = [1, 1]} : vector<8x64xbf16> to vector<8x8xbf16>
    %13 = vector.extract_strided_slice %11 {offsets = [0, 8], sizes = [8, 8], strides = [1, 1]} : vector<8x64xbf16> to vector<8x8xbf16>
    %14 = vector.extract_strided_slice %11 {offsets = [0, 16], sizes = [8, 8], strides = [1, 1]} : vector<8x64xbf16> to vector<8x8xbf16>
    %15 = vector.extract_strided_slice %11 {offsets = [0, 24], sizes = [8, 8], strides = [1, 1]} : vector<8x64xbf16> to vector<8x8xbf16>
    %16 = vector.extract_strided_slice %11 {offsets = [0, 32], sizes = [8, 8], strides = [1, 1]} : vector<8x64xbf16> to vector<8x8xbf16>
    %17 = vector.extract_strided_slice %11 {offsets = [0, 40], sizes = [8, 8], strides = [1, 1]} : vector<8x64xbf16> to vector<8x8xbf16>
    %18 = vector.extract_strided_slice %11 {offsets = [0, 48], sizes = [8, 8], strides = [1, 1]} : vector<8x64xbf16> to vector<8x8xbf16>
    %19 = vector.extract_strided_slice %11 {offsets = [0, 56], sizes = [8, 8], strides = [1, 1]} : vector<8x64xbf16> to vector<8x8xbf16>
    %20 = vector.shape_cast %12 : vector<8x8xbf16> to vector<1x8x8xbf16>
    %21 = vector.shape_cast %13 : vector<8x8xbf16> to vector<1x8x8xbf16>
    %22 = vector.shape_cast %14 : vector<8x8xbf16> to vector<1x8x8xbf16>
    %23 = vector.shape_cast %15 : vector<8x8xbf16> to vector<1x8x8xbf16>
    %24 = vector.shape_cast %16 : vector<8x8xbf16> to vector<1x8x8xbf16>
    %25 = vector.shape_cast %17 : vector<8x8xbf16> to vector<1x8x8xbf16>
    %26 = vector.shape_cast %18 : vector<8x8xbf16> to vector<1x8x8xbf16>
    %27 = vector.shape_cast %19 : vector<8x8xbf16> to vector<1x8x8xbf16>
    %28 = tpu.concatenate %20, %21, %22, %23, %24, %25, %26, %27 in 0 : vector<1x8x8xbf16>, vector<1x8x8xbf16>, vector<1x8x8xbf16>, vector<1x8x8xbf16>, vector<1x8x8xbf16>, vector<1x8x8xbf16>, vector<1x8x8xbf16>, vector<1x8x8xbf16> -> vector<8x8x8xbf16>
    %c0_4 = arith.constant 0 : index
    %c0_5 = arith.constant 0 : index
    %c0_6 = arith.constant 0 : index
    %29 = vector.load %arg13[%c0_4, %c0_5, %c0_6] : memref<8x8x8xbf16, #tpu.memory_space<vmem>>, vector<8x8x8xbf16>
    "tpu.trace_start"() <{level = 10 : i32, message = "hqd,hkd->hqk"}> : () -> ()
    %cst_7 = arith.constant dense<0.000000e+00> : vector<8x8x8xf32>
    %30 = tpu.matmul %28, %29, %cst_7 {dimension_numbers = #tpu.dot_dimension_numbers<[2], [2], [1], [1], [0, 0, 0, 1, 1, 1], [0], [0]>} : vector<8x8x8xbf16>, vector<8x8x8xbf16>, vector<8x8x8xf32> -> vector<8x8x8xf32>
    "tpu.trace_stop"() : () -> ()
    %31 = vector.extract_strided_slice %30 {offsets = [0, 0, 0], sizes = [1, 8, 8], strides = [1, 1, 1]} : vector<8x8x8xf32> to vector<1x8x8xf32>
    %32 = vector.shape_cast %31 : vector<1x8x8xf32> to vector<8x8xf32>
    %c0_8 = arith.constant 0 : index
    %c0_9 = arith.constant 0 : index
    %33 = memref.load %arg7[%c0_8, %c0_9] : memref<8x8xf32, #tpu.memory_space<smem>>
    %34 = vector.broadcast %33 : f32 to vector<8x8xf32>
    %35 = arith.mulf %32, %34 : vector<8x8xf32>
    %36 = vector.extract_strided_slice %30 {offsets = [1, 0, 0], sizes = [1, 8, 8], strides = [1, 1, 1]} : vector<8x8x8xf32> to vector<1x8x8xf32>
    %37 = vector.shape_cast %36 : vector<1x8x8xf32> to vector<8x8xf32>
    %c0_10 = arith.constant 0 : index
    %c1 = arith.constant 1 : index
    %38 = memref.load %arg7[%c0_10, %c1] : memref<8x8xf32, #tpu.memory_space<smem>>
    %39 = vector.broadcast %38 : f32 to vector<8x8xf32>
    %40 = arith.mulf %37, %39 : vector<8x8xf32>
    %41 = arith.addf %35, %40 : vector<8x8xf32>
    %42 = vector.extract_strided_slice %30 {offsets = [2, 0, 0], sizes = [1, 8, 8], strides = [1, 1, 1]} : vector<8x8x8xf32> to vector<1x8x8xf32>
    %43 = vector.shape_cast %42 : vector<1x8x8xf32> to vector<8x8xf32>
    %c0_11 = arith.constant 0 : index
    %c2 = arith.constant 2 : index
    %44 = memref.load %arg7[%c0_11, %c2] : memref<8x8xf32, #tpu.memory_space<smem>>
    %45 = vector.broadcast %44 : f32 to vector<8x8xf32>
    %46 = arith.mulf %43, %45 : vector<8x8xf32>
    %47 = arith.addf %41, %46 : vector<8x8xf32>
    %48 = vector.extract_strided_slice %30 {offsets = [3, 0, 0], sizes = [1, 8, 8], strides = [1, 1, 1]} : vector<8x8x8xf32> to vector<1x8x8xf32>
    %49 = vector.shape_cast %48 : vector<1x8x8xf32> to vector<8x8xf32>
    %c0_12 = arith.constant 0 : index
    %c3 = arith.constant 3 : index
    %50 = memref.load %arg7[%c0_12, %c3] : memref<8x8xf32, #tpu.memory_space<smem>>
    %51 = vector.broadcast %50 : f32 to vector<8x8xf32>
    %52 = arith.mulf %49, %51 : vector<8x8xf32>
    %53 = arith.addf %47, %52 : vector<8x8xf32>
    %54 = vector.extract_strided_slice %30 {offsets = [4, 0, 0], sizes = [1, 8, 8], strides = [1, 1, 1]} : vector<8x8x8xf32> to vector<1x8x8xf32>
    %55 = vector.shape_cast %54 : vector<1x8x8xf32> to vector<8x8xf32>
    %c0_13 = arith.constant 0 : index
    %c4 = arith.constant 4 : index
    %56 = memref.load %arg7[%c0_13, %c4] : memref<8x8xf32, #tpu.memory_space<smem>>
    %57 = vector.broadcast %56 : f32 to vector<8x8xf32>
    %58 = arith.mulf %55, %57 : vector<8x8xf32>
    %59 = arith.addf %53, %58 : vector<8x8xf32>
    %60 = vector.extract_strided_slice %30 {offsets = [5, 0, 0], sizes = [1, 8, 8], strides = [1, 1, 1]} : vector<8x8x8xf32> to vector<1x8x8xf32>
    %61 = vector.shape_cast %60 : vector<1x8x8xf32> to vector<8x8xf32>
    %c0_14 = arith.constant 0 : index
    %c5 = arith.constant 5 : index
    %62 = memref.load %arg7[%c0_14, %c5] : memref<8x8xf32, #tpu.memory_space<smem>>
    %63 = vector.broadcast %62 : f32 to vector<8x8xf32>
    %64 = arith.mulf %61, %63 : vector<8x8xf32>
    %65 = arith.addf %59, %64 : vector<8x8xf32>
    %66 = vector.extract_strided_slice %30 {offsets = [6, 0, 0], sizes = [1, 8, 8], strides = [1, 1, 1]} : vector<8x8x8xf32> to vector<1x8x8xf32>
    %67 = vector.shape_cast %66 : vector<1x8x8xf32> to vector<8x8xf32>
    %c0_15 = arith.constant 0 : index
    %c6 = arith.constant 6 : index
    %68 = memref.load %arg7[%c0_15, %c6] : memref<8x8xf32, #tpu.memory_space<smem>>
    %69 = vector.broadcast %68 : f32 to vector<8x8xf32>
    %70 = arith.mulf %67, %69 : vector<8x8xf32>
    %71 = arith.addf %65, %70 : vector<8x8xf32>
    %72 = vector.extract_strided_slice %30 {offsets = [7, 0, 0], sizes = [1, 8, 8], strides = [1, 1, 1]} : vector<8x8x8xf32> to vector<1x8x8xf32>
    %73 = vector.shape_cast %72 : vector<1x8x8xf32> to vector<8x8xf32>
    %c0_16 = arith.constant 0 : index
    %c7 = arith.constant 7 : index
    %74 = memref.load %arg7[%c0_16, %c7] : memref<8x8xf32, #tpu.memory_space<smem>>
    %75 = vector.broadcast %74 : f32 to vector<8x8xf32>
    %76 = arith.mulf %73, %75 : vector<8x8xf32>
    %77 = arith.addf %71, %76 : vector<8x8xf32>
    %c0_17 = arith.constant 0 : index
    %78 = memref.load %arg8[%c0_17] : memref<8xf32, #tpu.memory_space<smem>>
    %79 = vector.broadcast %78 : f32 to vector<8x8xf32>
    %80 = arith.addf %77, %79 : vector<8x8xf32>
    %81 = vector.extract_strided_slice %30 {offsets = [0, 0, 0], sizes = [1, 8, 8], strides = [1, 1, 1]} : vector<8x8x8xf32> to vector<1x8x8xf32>
    %82 = vector.shape_cast %81 : vector<1x8x8xf32> to vector<8x8xf32>
    %c1_18 = arith.constant 1 : index
    %c0_19 = arith.constant 0 : index
    %83 = memref.load %arg7[%c1_18, %c0_19] : memref<8x8xf32, #tpu.memory_space<smem>>
    %84 = vector.broadcast %83 : f32 to vector<8x8xf32>
    %85 = arith.mulf %82, %84 : vector<8x8xf32>
    %86 = vector.extract_strided_slice %30 {offsets = [1, 0, 0], sizes = [1, 8, 8], strides = [1, 1, 1]} : vector<8x8x8xf32> to vector<1x8x8xf32>
    %87 = vector.shape_cast %86 : vector<1x8x8xf32> to vector<8x8xf32>
    %c1_20 = arith.constant 1 : index
    %c1_21 = arith.constant 1 : index
    %88 = memref.load %arg7[%c1_20, %c1_21] : memref<8x8xf32, #tpu.memory_space<smem>>
    %89 = vector.broadcast %88 : f32 to vector<8x8xf32>
    %90 = arith.mulf %87, %89 : vector<8x8xf32>
    %91 = arith.addf %85, %90 : vector<8x8xf32>
    %92 = vector.extract_strided_slice %30 {offsets = [2, 0, 0], sizes = [1, 8, 8], strides = [1, 1, 1]} : vector<8x8x8xf32> to vector<1x8x8xf32>
    %93 = vector.shape_cast %92 : vector<1x8x8xf32> to vector<8x8xf32>
    %c1_22 = arith.constant 1 : index
    %c2_23 = arith.constant 2 : index
    %94 = memref.load %arg7[%c1_22, %c2_23] : memref<8x8xf32, #tpu.memory_space<smem>>
    %95 = vector.broadcast %94 : f32 to vector<8x8xf32>
    %96 = arith.mulf %93, %95 : vector<8x8xf32>
    %97 = arith.addf %91, %96 : vector<8x8xf32>
    %98 = vector.extract_strided_slice %30 {offsets = [3, 0, 0], sizes = [1, 8, 8], strides = [1, 1, 1]} : vector<8x8x8xf32> to vector<1x8x8xf32>
    %99 = vector.shape_cast %98 : vector<1x8x8xf32> to vector<8x8xf32>
    %c1_24 = arith.constant 1 : index
    %c3_25 = arith.constant 3 : index
    %100 = memref.load %arg7[%c1_24, %c3_25] : memref<8x8xf32, #tpu.memory_space<smem>>
    %101 = vector.broadcast %100 : f32 to vector<8x8xf32>
    %102 = arith.mulf %99, %101 : vector<8x8xf32>
    %103 = arith.addf %97, %102 : vector<8x8xf32>
    %104 = vector.extract_strided_slice %30 {offsets = [4, 0, 0], sizes = [1, 8, 8], strides = [1, 1, 1]} : vector<8x8x8xf32> to vector<1x8x8xf32>
    %105 = vector.shape_cast %104 : vector<1x8x8xf32> to vector<8x8xf32>
    %c1_26 = arith.constant 1 : index
    %c4_27 = arith.constant 4 : index
    %106 = memref.load %arg7[%c1_26, %c4_27] : memref<8x8xf32, #tpu.memory_space<smem>>
    %107 = vector.broadcast %106 : f32 to vector<8x8xf32>
    %108 = arith.mulf %105, %107 : vector<8x8xf32>
    %109 = arith.addf %103, %108 : vector<8x8xf32>
    %110 = vector.extract_strided_slice %30 {offsets = [5, 0, 0], sizes = [1, 8, 8], strides = [1, 1, 1]} : vector<8x8x8xf32> to vector<1x8x8xf32>
    %111 = vector.shape_cast %110 : vector<1x8x8xf32> to vector<8x8xf32>
    %c1_28 = arith.constant 1 : index
    %c5_29 = arith.constant 5 : index
    %112 = memref.load %arg7[%c1_28, %c5_29] : memref<8x8xf32, #tpu.memory_space<smem>>
    %113 = vector.broadcast %112 : f32 to vector<8x8xf32>
    %114 = arith.mulf %111, %113 : vector<8x8xf32>
    %115 = arith.addf %109, %114 : vector<8x8xf32>
    %116 = vector.extract_strided_slice %30 {offsets = [6, 0, 0], sizes = [1, 8, 8], strides = [1, 1, 1]} : vector<8x8x8xf32> to vector<1x8x8xf32>
    %117 = vector.shape_cast %116 : vector<1x8x8xf32> to vector<8x8xf32>
    %c1_30 = arith.constant 1 : index
    %c6_31 = arith.constant 6 : index
    %118 = memref.load %arg7[%c1_30, %c6_31] : memref<8x8xf32, #tpu.memory_space<smem>>
    %119 = vector.broadcast %118 : f32 to vector<8x8xf32>
    %120 = arith.mulf %117, %119 : vector<8x8xf32>
    %121 = arith.addf %115, %120 : vector<8x8xf32>
    %122 = vector.extract_strided_slice %30 {offsets = [7, 0, 0], sizes = [1, 8, 8], strides = [1, 1, 1]} : vector<8x8x8xf32> to vector<1x8x8xf32>
    %123 = vector.shape_cast %122 : vector<1x8x8xf32> to vector<8x8xf32>
    %c1_32 = arith.constant 1 : index
    %c7_33 = arith.constant 7 : index
    %124 = memref.load %arg7[%c1_32, %c7_33] : memref<8x8xf32, #tpu.memory_space<smem>>
    %125 = vector.broadcast %124 : f32 to vector<8x8xf32>
    %126 = arith.mulf %123, %125 : vector<8x8xf32>
    %127 = arith.addf %121, %126 : vector<8x8xf32>
    %c1_34 = arith.constant 1 : index
    %128 = memref.load %arg8[%c1_34] : memref<8xf32, #tpu.memory_space<smem>>
    %129 = vector.broadcast %128 : f32 to vector<8x8xf32>
    %130 = arith.addf %127, %129 : vector<8x8xf32>
    %131 = vector.extract_strided_slice %30 {offsets = [0, 0, 0], sizes = [1, 8, 8], strides = [1, 1, 1]} : vector<8x8x8xf32> to vector<1x8x8xf32>
    %132 = vector.shape_cast %131 : vector<1x8x8xf32> to vector<8x8xf32>
    %c2_35 = arith.constant 2 : index
    %c0_36 = arith.constant 0 : index
    %133 = memref.load %arg7[%c2_35, %c0_36] : memref<8x8xf32, #tpu.memory_space<smem>>
    %134 = vector.broadcast %133 : f32 to vector<8x8xf32>
    %135 = arith.mulf %132, %134 : vector<8x8xf32>
    %136 = vector.extract_strided_slice %30 {offsets = [1, 0, 0], sizes = [1, 8, 8], strides = [1, 1, 1]} : vector<8x8x8xf32> to vector<1x8x8xf32>
    %137 = vector.shape_cast %136 : vector<1x8x8xf32> to vector<8x8xf32>
    %c2_37 = arith.constant 2 : index
    %c1_38 = arith.constant 1 : index
    %138 = memref.load %arg7[%c2_37, %c1_38] : memref<8x8xf32, #tpu.memory_space<smem>>
    %139 = vector.broadcast %138 : f32 to vector<8x8xf32>
    %140 = arith.mulf %137, %139 : vector<8x8xf32>
    %141 = arith.addf %135, %140 : vector<8x8xf32>
    %142 = vector.extract_strided_slice %30 {offsets = [2, 0, 0], sizes = [1, 8, 8], strides = [1, 1, 1]} : vector<8x8x8xf32> to vector<1x8x8xf32>
    %143 = vector.shape_cast %142 : vector<1x8x8xf32> to vector<8x8xf32>
    %c2_39 = arith.constant 2 : index
    %c2_40 = arith.constant 2 : index
    %144 = memref.load %arg7[%c2_39, %c2_40] : memref<8x8xf32, #tpu.memory_space<smem>>
    %145 = vector.broadcast %144 : f32 to vector<8x8xf32>
    %146 = arith.mulf %143, %145 : vector<8x8xf32>
    %147 = arith.addf %141, %146 : vector<8x8xf32>
    %148 = vector.extract_strided_slice %30 {offsets = [3, 0, 0], sizes = [1, 8, 8], strides = [1, 1, 1]} : vector<8x8x8xf32> to vector<1x8x8xf32>
    %149 = vector.shape_cast %148 : vector<1x8x8xf32> to vector<8x8xf32>
    %c2_41 = arith.constant 2 : index
    %c3_42 = arith.constant 3 : index
    %150 = memref.load %arg7[%c2_41, %c3_42] : memref<8x8xf32, #tpu.memory_space<smem>>
    %151 = vector.broadcast %150 : f32 to vector<8x8xf32>
    %152 = arith.mulf %149, %151 : vector<8x8xf32>
    %153 = arith.addf %147, %152 : vector<8x8xf32>
    %154 = vector.extract_strided_slice %30 {offsets = [4, 0, 0], sizes = [1, 8, 8], strides = [1, 1, 1]} : vector<8x8x8xf32> to vector<1x8x8xf32>
    %155 = vector.shape_cast %154 : vector<1x8x8xf32> to vector<8x8xf32>
    %c2_43 = arith.constant 2 : index
    %c4_44 = arith.constant 4 : index
    %156 = memref.load %arg7[%c2_43, %c4_44] : memref<8x8xf32, #tpu.memory_space<smem>>
    %157 = vector.broadcast %156 : f32 to vector<8x8xf32>
    %158 = arith.mulf %155, %157 : vector<8x8xf32>
    %159 = arith.addf %153, %158 : vector<8x8xf32>
    %160 = vector.extract_strided_slice %30 {offsets = [5, 0, 0], sizes = [1, 8, 8], strides = [1, 1, 1]} : vector<8x8x8xf32> to vector<1x8x8xf32>
    %161 = vector.shape_cast %160 : vector<1x8x8xf32> to vector<8x8xf32>
    %c2_45 = arith.constant 2 : index
    %c5_46 = arith.constant 5 : index
    %162 = memref.load %arg7[%c2_45, %c5_46] : memref<8x8xf32, #tpu.memory_space<smem>>
    %163 = vector.broadcast %162 : f32 to vector<8x8xf32>
    %164 = arith.mulf %161, %163 : vector<8x8xf32>
    %165 = arith.addf %159, %164 : vector<8x8xf32>
    %166 = vector.extract_strided_slice %30 {offsets = [6, 0, 0], sizes = [1, 8, 8], strides = [1, 1, 1]} : vector<8x8x8xf32> to vector<1x8x8xf32>
    %167 = vector.shape_cast %166 : vector<1x8x8xf32> to vector<8x8xf32>
    %c2_47 = arith.constant 2 : index
    %c6_48 = arith.constant 6 : index
    %168 = memref.load %arg7[%c2_47, %c6_48] : memref<8x8xf32, #tpu.memory_space<smem>>
    %169 = vector.broadcast %168 : f32 to vector<8x8xf32>
    %170 = arith.mulf %167, %169 : vector<8x8xf32>
    %171 = arith.addf %165, %170 : vector<8x8xf32>
    %172 = vector.extract_strided_slice %30 {offsets = [7, 0, 0], sizes = [1, 8, 8], strides = [1, 1, 1]} : vector<8x8x8xf32> to vector<1x8x8xf32>
    %173 = vector.shape_cast %172 : vector<1x8x8xf32> to vector<8x8xf32>
    %c2_49 = arith.constant 2 : index
    %c7_50 = arith.constant 7 : index
    %174 = memref.load %arg7[%c2_49, %c7_50] : memref<8x8xf32, #tpu.memory_space<smem>>
    %175 = vector.broadcast %174 : f32 to vector<8x8xf32>
    %176 = arith.mulf %173, %175 : vector<8x8xf32>
    %177 = arith.addf %171, %176 : vector<8x8xf32>
    %c2_51 = arith.constant 2 : index
    %178 = memref.load %arg8[%c2_51] : memref<8xf32, #tpu.memory_space<smem>>
    %179 = vector.broadcast %178 : f32 to vector<8x8xf32>
    %180 = arith.addf %177, %179 : vector<8x8xf32>
    %181 = vector.extract_strided_slice %30 {offsets = [0, 0, 0], sizes = [1, 8, 8], strides = [1, 1, 1]} : vector<8x8x8xf32> to vector<1x8x8xf32>
    %182 = vector.shape_cast %181 : vector<1x8x8xf32> to vector<8x8xf32>
    %c3_52 = arith.constant 3 : index
    %c0_53 = arith.constant 0 : index
    %183 = memref.load %arg7[%c3_52, %c0_53] : memref<8x8xf32, #tpu.memory_space<smem>>
    %184 = vector.broadcast %183 : f32 to vector<8x8xf32>
    %185 = arith.mulf %182, %184 : vector<8x8xf32>
    %186 = vector.extract_strided_slice %30 {offsets = [1, 0, 0], sizes = [1, 8, 8], strides = [1, 1, 1]} : vector<8x8x8xf32> to vector<1x8x8xf32>
    %187 = vector.shape_cast %186 : vector<1x8x8xf32> to vector<8x8xf32>
    %c3_54 = arith.constant 3 : index
    %c1_55 = arith.constant 1 : index
    %188 = memref.load %arg7[%c3_54, %c1_55] : memref<8x8xf32, #tpu.memory_space<smem>>
    %189 = vector.broadcast %188 : f32 to vector<8x8xf32>
    %190 = arith.mulf %187, %189 : vector<8x8xf32>
    %191 = arith.addf %185, %190 : vector<8x8xf32>
    %192 = vector.extract_strided_slice %30 {offsets = [2, 0, 0], sizes = [1, 8, 8], strides = [1, 1, 1]} : vector<8x8x8xf32> to vector<1x8x8xf32>
    %193 = vector.shape_cast %192 : vector<1x8x8xf32> to vector<8x8xf32>
    %c3_56 = arith.constant 3 : index
    %c2_57 = arith.constant 2 : index
    %194 = memref.load %arg7[%c3_56, %c2_57] : memref<8x8xf32, #tpu.memory_space<smem>>
    %195 = vector.broadcast %194 : f32 to vector<8x8xf32>
    %196 = arith.mulf %193, %195 : vector<8x8xf32>
    %197 = arith.addf %191, %196 : vector<8x8xf32>
    %198 = vector.extract_strided_slice %30 {offsets = [3, 0, 0], sizes = [1, 8, 8], strides = [1, 1, 1]} : vector<8x8x8xf32> to vector<1x8x8xf32>
    %199 = vector.shape_cast %198 : vector<1x8x8xf32> to vector<8x8xf32>
    %c3_58 = arith.constant 3 : index
    %c3_59 = arith.constant 3 : index
    %200 = memref.load %arg7[%c3_58, %c3_59] : memref<8x8xf32, #tpu.memory_space<smem>>
    %201 = vector.broadcast %200 : f32 to vector<8x8xf32>
    %202 = arith.mulf %199, %201 : vector<8x8xf32>
    %203 = arith.addf %197, %202 : vector<8x8xf32>
    %204 = vector.extract_strided_slice %30 {offsets = [4, 0, 0], sizes = [1, 8, 8], strides = [1, 1, 1]} : vector<8x8x8xf32> to vector<1x8x8xf32>
    %205 = vector.shape_cast %204 : vector<1x8x8xf32> to vector<8x8xf32>
    %c3_60 = arith.constant 3 : index
    %c4_61 = arith.constant 4 : index
    %206 = memref.load %arg7[%c3_60, %c4_61] : memref<8x8xf32, #tpu.memory_space<smem>>
    %207 = vector.broadcast %206 : f32 to vector<8x8xf32>
    %208 = arith.mulf %205, %207 : vector<8x8xf32>
    %209 = arith.addf %203, %208 : vector<8x8xf32>
    %210 = vector.extract_strided_slice %30 {offsets = [5, 0, 0], sizes = [1, 8, 8], strides = [1, 1, 1]} : vector<8x8x8xf32> to vector<1x8x8xf32>
    %211 = vector.shape_cast %210 : vector<1x8x8xf32> to vector<8x8xf32>
    %c3_62 = arith.constant 3 : index
    %c5_63 = arith.constant 5 : index
    %212 = memref.load %arg7[%c3_62, %c5_63] : memref<8x8xf32, #tpu.memory_space<smem>>
    %213 = vector.broadcast %212 : f32 to vector<8x8xf32>
    %214 = arith.mulf %211, %213 : vector<8x8xf32>
    %215 = arith.addf %209, %214 : vector<8x8xf32>
    %216 = vector.extract_strided_slice %30 {offsets = [6, 0, 0], sizes = [1, 8, 8], strides = [1, 1, 1]} : vector<8x8x8xf32> to vector<1x8x8xf32>
    %217 = vector.shape_cast %216 : vector<1x8x8xf32> to vector<8x8xf32>
    %c3_64 = arith.constant 3 : index
    %c6_65 = arith.constant 6 : index
    %218 = memref.load %arg7[%c3_64, %c6_65] : memref<8x8xf32, #tpu.memory_space<smem>>
    %219 = vector.broadcast %218 : f32 to vector<8x8xf32>
    %220 = arith.mulf %217, %219 : vector<8x8xf32>
    %221 = arith.addf %215, %220 : vector<8x8xf32>
    %222 = vector.extract_strided_slice %30 {offsets = [7, 0, 0], sizes = [1, 8, 8], strides = [1, 1, 1]} : vector<8x8x8xf32> to vector<1x8x8xf32>
    %223 = vector.shape_cast %222 : vector<1x8x8xf32> to vector<8x8xf32>
    %c3_66 = arith.constant 3 : index
    %c7_67 = arith.constant 7 : index
    %224 = memref.load %arg7[%c3_66, %c7_67] : memref<8x8xf32, #tpu.memory_space<smem>>
    %225 = vector.broadcast %224 : f32 to vector<8x8xf32>
    %226 = arith.mulf %223, %225 : vector<8x8xf32>
    %227 = arith.addf %221, %226 : vector<8x8xf32>
    %c3_68 = arith.constant 3 : index
    %228 = memref.load %arg8[%c3_68] : memref<8xf32, #tpu.memory_space<smem>>
    %229 = vector.broadcast %228 : f32 to vector<8x8xf32>
    %230 = arith.addf %227, %229 : vector<8x8xf32>
    %231 = vector.extract_strided_slice %30 {offsets = [0, 0, 0], sizes = [1, 8, 8], strides = [1, 1, 1]} : vector<8x8x8xf32> to vector<1x8x8xf32>
    %232 = vector.shape_cast %231 : vector<1x8x8xf32> to vector<8x8xf32>
    %c4_69 = arith.constant 4 : index
    %c0_70 = arith.constant 0 : index
    %233 = memref.load %arg7[%c4_69, %c0_70] : memref<8x8xf32, #tpu.memory_space<smem>>
    %234 = vector.broadcast %233 : f32 to vector<8x8xf32>
    %235 = arith.mulf %232, %234 : vector<8x8xf32>
    %236 = vector.extract_strided_slice %30 {offsets = [1, 0, 0], sizes = [1, 8, 8], strides = [1, 1, 1]} : vector<8x8x8xf32> to vector<1x8x8xf32>
    %237 = vector.shape_cast %236 : vector<1x8x8xf32> to vector<8x8xf32>
    %c4_71 = arith.constant 4 : index
    %c1_72 = arith.constant 1 : index
    %238 = memref.load %arg7[%c4_71, %c1_72] : memref<8x8xf32, #tpu.memory_space<smem>>
    %239 = vector.broadcast %238 : f32 to vector<8x8xf32>
    %240 = arith.mulf %237, %239 : vector<8x8xf32>
    %241 = arith.addf %235, %240 : vector<8x8xf32>
    %242 = vector.extract_strided_slice %30 {offsets = [2, 0, 0], sizes = [1, 8, 8], strides = [1, 1, 1]} : vector<8x8x8xf32> to vector<1x8x8xf32>
    %243 = vector.shape_cast %242 : vector<1x8x8xf32> to vector<8x8xf32>
    %c4_73 = arith.constant 4 : index
    %c2_74 = arith.constant 2 : index
    %244 = memref.load %arg7[%c4_73, %c2_74] : memref<8x8xf32, #tpu.memory_space<smem>>
    %245 = vector.broadcast %244 : f32 to vector<8x8xf32>
    %246 = arith.mulf %243, %245 : vector<8x8xf32>
    %247 = arith.addf %241, %246 : vector<8x8xf32>
    %248 = vector.extract_strided_slice %30 {offsets = [3, 0, 0], sizes = [1, 8, 8], strides = [1, 1, 1]} : vector<8x8x8xf32> to vector<1x8x8xf32>
    %249 = vector.shape_cast %248 : vector<1x8x8xf32> to vector<8x8xf32>
    %c4_75 = arith.constant 4 : index
    %c3_76 = arith.constant 3 : index
    %250 = memref.load %arg7[%c4_75, %c3_76] : memref<8x8xf32, #tpu.memory_space<smem>>
    %251 = vector.broadcast %250 : f32 to vector<8x8xf32>
    %252 = arith.mulf %249, %251 : vector<8x8xf32>
    %253 = arith.addf %247, %252 : vector<8x8xf32>
    %254 = vector.extract_strided_slice %30 {offsets = [4, 0, 0], sizes = [1, 8, 8], strides = [1, 1, 1]} : vector<8x8x8xf32> to vector<1x8x8xf32>
    %255 = vector.shape_cast %254 : vector<1x8x8xf32> to vector<8x8xf32>
    %c4_77 = arith.constant 4 : index
    %c4_78 = arith.constant 4 : index
    %256 = memref.load %arg7[%c4_77, %c4_78] : memref<8x8xf32, #tpu.memory_space<smem>>
    %257 = vector.broadcast %256 : f32 to vector<8x8xf32>
    %258 = arith.mulf %255, %257 : vector<8x8xf32>
    %259 = arith.addf %253, %258 : vector<8x8xf32>
    %260 = vector.extract_strided_slice %30 {offsets = [5, 0, 0], sizes = [1, 8, 8], strides = [1, 1, 1]} : vector<8x8x8xf32> to vector<1x8x8xf32>
    %261 = vector.shape_cast %260 : vector<1x8x8xf32> to vector<8x8xf32>
    %c4_79 = arith.constant 4 : index
    %c5_80 = arith.constant 5 : index
    %262 = memref.load %arg7[%c4_79, %c5_80] : memref<8x8xf32, #tpu.memory_space<smem>>
    %263 = vector.broadcast %262 : f32 to vector<8x8xf32>
    %264 = arith.mulf %261, %263 : vector<8x8xf32>
    %265 = arith.addf %259, %264 : vector<8x8xf32>
    %266 = vector.extract_strided_slice %30 {offsets = [6, 0, 0], sizes = [1, 8, 8], strides = [1, 1, 1]} : vector<8x8x8xf32> to vector<1x8x8xf32>
    %267 = vector.shape_cast %266 : vector<1x8x8xf32> to vector<8x8xf32>
    %c4_81 = arith.constant 4 : index
    %c6_82 = arith.constant 6 : index
    %268 = memref.load %arg7[%c4_81, %c6_82] : memref<8x8xf32, #tpu.memory_space<smem>>
    %269 = vector.broadcast %268 : f32 to vector<8x8xf32>
    %270 = arith.mulf %267, %269 : vector<8x8xf32>
    %271 = arith.addf %265, %270 : vector<8x8xf32>
    %272 = vector.extract_strided_slice %30 {offsets = [7, 0, 0], sizes = [1, 8, 8], strides = [1, 1, 1]} : vector<8x8x8xf32> to vector<1x8x8xf32>
    %273 = vector.shape_cast %272 : vector<1x8x8xf32> to vector<8x8xf32>
    %c4_83 = arith.constant 4 : index
    %c7_84 = arith.constant 7 : index
    %274 = memref.load %arg7[%c4_83, %c7_84] : memref<8x8xf32, #tpu.memory_space<smem>>
    %275 = vector.broadcast %274 : f32 to vector<8x8xf32>
    %276 = arith.mulf %273, %275 : vector<8x8xf32>
    %277 = arith.addf %271, %276 : vector<8x8xf32>
    %c4_85 = arith.constant 4 : index
    %278 = memref.load %arg8[%c4_85] : memref<8xf32, #tpu.memory_space<smem>>
    %279 = vector.broadcast %278 : f32 to vector<8x8xf32>
    %280 = arith.addf %277, %279 : vector<8x8xf32>
    %281 = vector.extract_strided_slice %30 {offsets = [0, 0, 0], sizes = [1, 8, 8], strides = [1, 1, 1]} : vector<8x8x8xf32> to vector<1x8x8xf32>
    %282 = vector.shape_cast %281 : vector<1x8x8xf32> to vector<8x8xf32>
    %c5_86 = arith.constant 5 : index
    %c0_87 = arith.constant 0 : index
    %283 = memref.load %arg7[%c5_86, %c0_87] : memref<8x8xf32, #tpu.memory_space<smem>>
    %284 = vector.broadcast %283 : f32 to vector<8x8xf32>
    %285 = arith.mulf %282, %284 : vector<8x8xf32>
    %286 = vector.extract_strided_slice %30 {offsets = [1, 0, 0], sizes = [1, 8, 8], strides = [1, 1, 1]} : vector<8x8x8xf32> to vector<1x8x8xf32>
    %287 = vector.shape_cast %286 : vector<1x8x8xf32> to vector<8x8xf32>
    %c5_88 = arith.constant 5 : index
    %c1_89 = arith.constant 1 : index
    %288 = memref.load %arg7[%c5_88, %c1_89] : memref<8x8xf32, #tpu.memory_space<smem>>
    %289 = vector.broadcast %288 : f32 to vector<8x8xf32>
    %290 = arith.mulf %287, %289 : vector<8x8xf32>
    %291 = arith.addf %285, %290 : vector<8x8xf32>
    %292 = vector.extract_strided_slice %30 {offsets = [2, 0, 0], sizes = [1, 8, 8], strides = [1, 1, 1]} : vector<8x8x8xf32> to vector<1x8x8xf32>
    %293 = vector.shape_cast %292 : vector<1x8x8xf32> to vector<8x8xf32>
    %c5_90 = arith.constant 5 : index
    %c2_91 = arith.constant 2 : index
    %294 = memref.load %arg7[%c5_90, %c2_91] : memref<8x8xf32, #tpu.memory_space<smem>>
    %295 = vector.broadcast %294 : f32 to vector<8x8xf32>
    %296 = arith.mulf %293, %295 : vector<8x8xf32>
    %297 = arith.addf %291, %296 : vector<8x8xf32>
    %298 = vector.extract_strided_slice %30 {offsets = [3, 0, 0], sizes = [1, 8, 8], strides = [1, 1, 1]} : vector<8x8x8xf32> to vector<1x8x8xf32>
    %299 = vector.shape_cast %298 : vector<1x8x8xf32> to vector<8x8xf32>
    %c5_92 = arith.constant 5 : index
    %c3_93 = arith.constant 3 : index
    %300 = memref.load %arg7[%c5_92, %c3_93] : memref<8x8xf32, #tpu.memory_space<smem>>
    %301 = vector.broadcast %300 : f32 to vector<8x8xf32>
    %302 = arith.mulf %299, %301 : vector<8x8xf32>
    %303 = arith.addf %297, %302 : vector<8x8xf32>
    %304 = vector.extract_strided_slice %30 {offsets = [4, 0, 0], sizes = [1, 8, 8], strides = [1, 1, 1]} : vector<8x8x8xf32> to vector<1x8x8xf32>
    %305 = vector.shape_cast %304 : vector<1x8x8xf32> to vector<8x8xf32>
    %c5_94 = arith.constant 5 : index
    %c4_95 = arith.constant 4 : index
    %306 = memref.load %arg7[%c5_94, %c4_95] : memref<8x8xf32, #tpu.memory_space<smem>>
    %307 = vector.broadcast %306 : f32 to vector<8x8xf32>
    %308 = arith.mulf %305, %307 : vector<8x8xf32>
    %309 = arith.addf %303, %308 : vector<8x8xf32>
    %310 = vector.extract_strided_slice %30 {offsets = [5, 0, 0], sizes = [1, 8, 8], strides = [1, 1, 1]} : vector<8x8x8xf32> to vector<1x8x8xf32>
    %311 = vector.shape_cast %310 : vector<1x8x8xf32> to vector<8x8xf32>
    %c5_96 = arith.constant 5 : index
    %c5_97 = arith.constant 5 : index
    %312 = memref.load %arg7[%c5_96, %c5_97] : memref<8x8xf32, #tpu.memory_space<smem>>
    %313 = vector.broadcast %312 : f32 to vector<8x8xf32>
    %314 = arith.mulf %311, %313 : vector<8x8xf32>
    %315 = arith.addf %309, %314 : vector<8x8xf32>
    %316 = vector.extract_strided_slice %30 {offsets = [6, 0, 0], sizes = [1, 8, 8], strides = [1, 1, 1]} : vector<8x8x8xf32> to vector<1x8x8xf32>
    %317 = vector.shape_cast %316 : vector<1x8x8xf32> to vector<8x8xf32>
    %c5_98 = arith.constant 5 : index
    %c6_99 = arith.constant 6 : index
    %318 = memref.load %arg7[%c5_98, %c6_99] : memref<8x8xf32, #tpu.memory_space<smem>>
    %319 = vector.broadcast %318 : f32 to vector<8x8xf32>
    %320 = arith.mulf %317, %319 : vector<8x8xf32>
    %321 = arith.addf %315, %320 : vector<8x8xf32>
    %322 = vector.extract_strided_slice %30 {offsets = [7, 0, 0], sizes = [1, 8, 8], strides = [1, 1, 1]} : vector<8x8x8xf32> to vector<1x8x8xf32>
    %323 = vector.shape_cast %322 : vector<1x8x8xf32> to vector<8x8xf32>
    %c5_100 = arith.constant 5 : index
    %c7_101 = arith.constant 7 : index
    %324 = memref.load %arg7[%c5_100, %c7_101] : memref<8x8xf32, #tpu.memory_space<smem>>
    %325 = vector.broadcast %324 : f32 to vector<8x8xf32>
    %326 = arith.mulf %323, %325 : vector<8x8xf32>
    %327 = arith.addf %321, %326 : vector<8x8xf32>
    %c5_102 = arith.constant 5 : index
    %328 = memref.load %arg8[%c5_102] : memref<8xf32, #tpu.memory_space<smem>>
    %329 = vector.broadcast %328 : f32 to vector<8x8xf32>
    %330 = arith.addf %327, %329 : vector<8x8xf32>
    %331 = vector.extract_strided_slice %30 {offsets = [0, 0, 0], sizes = [1, 8, 8], strides = [1, 1, 1]} : vector<8x8x8xf32> to vector<1x8x8xf32>
    %332 = vector.shape_cast %331 : vector<1x8x8xf32> to vector<8x8xf32>
    %c6_103 = arith.constant 6 : index
    %c0_104 = arith.constant 0 : index
    %333 = memref.load %arg7[%c6_103, %c0_104] : memref<8x8xf32, #tpu.memory_space<smem>>
    %334 = vector.broadcast %333 : f32 to vector<8x8xf32>
    %335 = arith.mulf %332, %334 : vector<8x8xf32>
    %336 = vector.extract_strided_slice %30 {offsets = [1, 0, 0], sizes = [1, 8, 8], strides = [1, 1, 1]} : vector<8x8x8xf32> to vector<1x8x8xf32>
    %337 = vector.shape_cast %336 : vector<1x8x8xf32> to vector<8x8xf32>
    %c6_105 = arith.constant 6 : index
    %c1_106 = arith.constant 1 : index
    %338 = memref.load %arg7[%c6_105, %c1_106] : memref<8x8xf32, #tpu.memory_space<smem>>
    %339 = vector.broadcast %338 : f32 to vector<8x8xf32>
    %340 = arith.mulf %337, %339 : vector<8x8xf32>
    %341 = arith.addf %335, %340 : vector<8x8xf32>
    %342 = vector.extract_strided_slice %30 {offsets = [2, 0, 0], sizes = [1, 8, 8], strides = [1, 1, 1]} : vector<8x8x8xf32> to vector<1x8x8xf32>
    %343 = vector.shape_cast %342 : vector<1x8x8xf32> to vector<8x8xf32>
    %c6_107 = arith.constant 6 : index
    %c2_108 = arith.constant 2 : index
    %344 = memref.load %arg7[%c6_107, %c2_108] : memref<8x8xf32, #tpu.memory_space<smem>>
    %345 = vector.broadcast %344 : f32 to vector<8x8xf32>
    %346 = arith.mulf %343, %345 : vector<8x8xf32>
    %347 = arith.addf %341, %346 : vector<8x8xf32>
    %348 = vector.extract_strided_slice %30 {offsets = [3, 0, 0], sizes = [1, 8, 8], strides = [1, 1, 1]} : vector<8x8x8xf32> to vector<1x8x8xf32>
    %349 = vector.shape_cast %348 : vector<1x8x8xf32> to vector<8x8xf32>
    %c6_109 = arith.constant 6 : index
    %c3_110 = arith.constant 3 : index
    %350 = memref.load %arg7[%c6_109, %c3_110] : memref<8x8xf32, #tpu.memory_space<smem>>
    %351 = vector.broadcast %350 : f32 to vector<8x8xf32>
    %352 = arith.mulf %349, %351 : vector<8x8xf32>
    %353 = arith.addf %347, %352 : vector<8x8xf32>
    %354 = vector.extract_strided_slice %30 {offsets = [4, 0, 0], sizes = [1, 8, 8], strides = [1, 1, 1]} : vector<8x8x8xf32> to vector<1x8x8xf32>
    %355 = vector.shape_cast %354 : vector<1x8x8xf32> to vector<8x8xf32>
    %c6_111 = arith.constant 6 : index
    %c4_112 = arith.constant 4 : index
    %356 = memref.load %arg7[%c6_111, %c4_112] : memref<8x8xf32, #tpu.memory_space<smem>>
    %357 = vector.broadcast %356 : f32 to vector<8x8xf32>
    %358 = arith.mulf %355, %357 : vector<8x8xf32>
    %359 = arith.addf %353, %358 : vector<8x8xf32>
    %360 = vector.extract_strided_slice %30 {offsets = [5, 0, 0], sizes = [1, 8, 8], strides = [1, 1, 1]} : vector<8x8x8xf32> to vector<1x8x8xf32>
    %361 = vector.shape_cast %360 : vector<1x8x8xf32> to vector<8x8xf32>
    %c6_113 = arith.constant 6 : index
    %c5_114 = arith.constant 5 : index
    %362 = memref.load %arg7[%c6_113, %c5_114] : memref<8x8xf32, #tpu.memory_space<smem>>
    %363 = vector.broadcast %362 : f32 to vector<8x8xf32>
    %364 = arith.mulf %361, %363 : vector<8x8xf32>
    %365 = arith.addf %359, %364 : vector<8x8xf32>
    %366 = vector.extract_strided_slice %30 {offsets = [6, 0, 0], sizes = [1, 8, 8], strides = [1, 1, 1]} : vector<8x8x8xf32> to vector<1x8x8xf32>
    %367 = vector.shape_cast %366 : vector<1x8x8xf32> to vector<8x8xf32>
    %c6_115 = arith.constant 6 : index
    %c6_116 = arith.constant 6 : index
    %368 = memref.load %arg7[%c6_115, %c6_116] : memref<8x8xf32, #tpu.memory_space<smem>>
    %369 = vector.broadcast %368 : f32 to vector<8x8xf32>
    %370 = arith.mulf %367, %369 : vector<8x8xf32>
    %371 = arith.addf %365, %370 : vector<8x8xf32>
    %372 = vector.extract_strided_slice %30 {offsets = [7, 0, 0], sizes = [1, 8, 8], strides = [1, 1, 1]} : vector<8x8x8xf32> to vector<1x8x8xf32>
    %373 = vector.shape_cast %372 : vector<1x8x8xf32> to vector<8x8xf32>
    %c6_117 = arith.constant 6 : index
    %c7_118 = arith.constant 7 : index
    %374 = memref.load %arg7[%c6_117, %c7_118] : memref<8x8xf32, #tpu.memory_space<smem>>
    %375 = vector.broadcast %374 : f32 to vector<8x8xf32>
    %376 = arith.mulf %373, %375 : vector<8x8xf32>
    %377 = arith.addf %371, %376 : vector<8x8xf32>
    %c6_119 = arith.constant 6 : index
    %378 = memref.load %arg8[%c6_119] : memref<8xf32, #tpu.memory_space<smem>>
    %379 = vector.broadcast %378 : f32 to vector<8x8xf32>
    %380 = arith.addf %377, %379 : vector<8x8xf32>
    %381 = vector.extract_strided_slice %30 {offsets = [0, 0, 0], sizes = [1, 8, 8], strides = [1, 1, 1]} : vector<8x8x8xf32> to vector<1x8x8xf32>
    %382 = vector.shape_cast %381 : vector<1x8x8xf32> to vector<8x8xf32>
    %c7_120 = arith.constant 7 : index
    %c0_121 = arith.constant 0 : index
    %383 = memref.load %arg7[%c7_120, %c0_121] : memref<8x8xf32, #tpu.memory_space<smem>>
    %384 = vector.broadcast %383 : f32 to vector<8x8xf32>
    %385 = arith.mulf %382, %384 : vector<8x8xf32>
    %386 = vector.extract_strided_slice %30 {offsets = [1, 0, 0], sizes = [1, 8, 8], strides = [1, 1, 1]} : vector<8x8x8xf32> to vector<1x8x8xf32>
    %387 = vector.shape_cast %386 : vector<1x8x8xf32> to vector<8x8xf32>
    %c7_122 = arith.constant 7 : index
    %c1_123 = arith.constant 1 : index
    %388 = memref.load %arg7[%c7_122, %c1_123] : memref<8x8xf32, #tpu.memory_space<smem>>
    %389 = vector.broadcast %388 : f32 to vector<8x8xf32>
    %390 = arith.mulf %387, %389 : vector<8x8xf32>
    %391 = arith.addf %385, %390 : vector<8x8xf32>
    %392 = vector.extract_strided_slice %30 {offsets = [2, 0, 0], sizes = [1, 8, 8], strides = [1, 1, 1]} : vector<8x8x8xf32> to vector<1x8x8xf32>
    %393 = vector.shape_cast %392 : vector<1x8x8xf32> to vector<8x8xf32>
    %c7_124 = arith.constant 7 : index
    %c2_125 = arith.constant 2 : index
    %394 = memref.load %arg7[%c7_124, %c2_125] : memref<8x8xf32, #tpu.memory_space<smem>>
    %395 = vector.broadcast %394 : f32 to vector<8x8xf32>
    %396 = arith.mulf %393, %395 : vector<8x8xf32>
    %397 = arith.addf %391, %396 : vector<8x8xf32>
    %398 = vector.extract_strided_slice %30 {offsets = [3, 0, 0], sizes = [1, 8, 8], strides = [1, 1, 1]} : vector<8x8x8xf32> to vector<1x8x8xf32>
    %399 = vector.shape_cast %398 : vector<1x8x8xf32> to vector<8x8xf32>
    %c7_126 = arith.constant 7 : index
    %c3_127 = arith.constant 3 : index
    %400 = memref.load %arg7[%c7_126, %c3_127] : memref<8x8xf32, #tpu.memory_space<smem>>
    %401 = vector.broadcast %400 : f32 to vector<8x8xf32>
    %402 = arith.mulf %399, %401 : vector<8x8xf32>
    %403 = arith.addf %397, %402 : vector<8x8xf32>
    %404 = vector.extract_strided_slice %30 {offsets = [4, 0, 0], sizes = [1, 8, 8], strides = [1, 1, 1]} : vector<8x8x8xf32> to vector<1x8x8xf32>
    %405 = vector.shape_cast %404 : vector<1x8x8xf32> to vector<8x8xf32>
    %c7_128 = arith.constant 7 : index
    %c4_129 = arith.constant 4 : index
    %406 = memref.load %arg7[%c7_128, %c4_129] : memref<8x8xf32, #tpu.memory_space<smem>>
    %407 = vector.broadcast %406 : f32 to vector<8x8xf32>
    %408 = arith.mulf %405, %407 : vector<8x8xf32>
    %409 = arith.addf %403, %408 : vector<8x8xf32>
    %410 = vector.extract_strided_slice %30 {offsets = [5, 0, 0], sizes = [1, 8, 8], strides = [1, 1, 1]} : vector<8x8x8xf32> to vector<1x8x8xf32>
    %411 = vector.shape_cast %410 : vector<1x8x8xf32> to vector<8x8xf32>
    %c7_130 = arith.constant 7 : index
    %c5_131 = arith.constant 5 : index
    %412 = memref.load %arg7[%c7_130, %c5_131] : memref<8x8xf32, #tpu.memory_space<smem>>
    %413 = vector.broadcast %412 : f32 to vector<8x8xf32>
    %414 = arith.mulf %411, %413 : vector<8x8xf32>
    %415 = arith.addf %409, %414 : vector<8x8xf32>
    %416 = vector.extract_strided_slice %30 {offsets = [6, 0, 0], sizes = [1, 8, 8], strides = [1, 1, 1]} : vector<8x8x8xf32> to vector<1x8x8xf32>
    %417 = vector.shape_cast %416 : vector<1x8x8xf32> to vector<8x8xf32>
    %c7_132 = arith.constant 7 : index
    %c6_133 = arith.constant 6 : index
    %418 = memref.load %arg7[%c7_132, %c6_133] : memref<8x8xf32, #tpu.memory_space<smem>>
    %419 = vector.broadcast %418 : f32 to vector<8x8xf32>
    %420 = arith.mulf %417, %419 : vector<8x8xf32>
    %421 = arith.addf %415, %420 : vector<8x8xf32>
    %422 = vector.extract_strided_slice %30 {offsets = [7, 0, 0], sizes = [1, 8, 8], strides = [1, 1, 1]} : vector<8x8x8xf32> to vector<1x8x8xf32>
    %423 = vector.shape_cast %422 : vector<1x8x8xf32> to vector<8x8xf32>
    %c7_134 = arith.constant 7 : index
    %c7_135 = arith.constant 7 : index
    %424 = memref.load %arg7[%c7_134, %c7_135] : memref<8x8xf32, #tpu.memory_space<smem>>
    %425 = vector.broadcast %424 : f32 to vector<8x8xf32>
    %426 = arith.mulf %423, %425 : vector<8x8xf32>
    %427 = arith.addf %421, %426 : vector<8x8xf32>
    %c7_136 = arith.constant 7 : index
    %428 = memref.load %arg8[%c7_136] : memref<8xf32, #tpu.memory_space<smem>>
    %429 = vector.broadcast %428 : f32 to vector<8x8xf32>
    %430 = arith.addf %427, %429 : vector<8x8xf32>
    %431 = vector.shape_cast %80 : vector<8x8xf32> to vector<1x8x8xf32>
    %432 = vector.shape_cast %130 : vector<8x8xf32> to vector<1x8x8xf32>
    %433 = vector.shape_cast %180 : vector<8x8xf32> to vector<1x8x8xf32>
    %434 = vector.shape_cast %230 : vector<8x8xf32> to vector<1x8x8xf32>
    %435 = vector.shape_cast %280 : vector<8x8xf32> to vector<1x8x8xf32>
    %436 = vector.shape_cast %330 : vector<8x8xf32> to vector<1x8x8xf32>
    %437 = vector.shape_cast %380 : vector<8x8xf32> to vector<1x8x8xf32>
    %438 = vector.shape_cast %430 : vector<8x8xf32> to vector<1x8x8xf32>
    %439 = tpu.concatenate %431, %432, %433, %434, %435, %436, %437, %438 in 0 : vector<1x8x8xf32>, vector<1x8x8xf32>, vector<1x8x8xf32>, vector<1x8x8xf32>, vector<1x8x8xf32>, vector<1x8x8xf32>, vector<1x8x8xf32>, vector<1x8x8xf32> -> vector<8x8x8xf32>
    %cst_137 = arith.constant dense<0xFF800000> : vector<8x8xf32>
    %440 = vector.multi_reduction <maximumf>, %439, %cst_137 [2] : vector<8x8x8xf32> to vector<8x8xf32>
    %441 = vector.shape_cast %440 : vector<8x8xf32> to vector<8x8x1xf32>
    %442 = vector.broadcast %441 : vector<8x8x1xf32> to vector<8x8x8xf32>
    %443 = arith.subf %439, %442 : vector<8x8x8xf32>
    %444 = math.exp %443 : vector<8x8x8xf32>
    %cst_138 = arith.constant dense<0.000000e+00> : vector<8x8xf32>
    %445 = vector.multi_reduction <add>, %444, %cst_138 [2] : vector<8x8x8xf32> to vector<8x8xf32>
    %446 = vector.shape_cast %445 : vector<8x8xf32> to vector<8x8x1xf32>
    %447 = tpu.reciprocal %446 {approx = true} : vector<8x8x1xf32> -> vector<8x8x1xf32>
    %448 = vector.broadcast %447 : vector<8x8x1xf32> to vector<8x8x8xf32>
    %449 = arith.mulf %444, %448 : vector<8x8x8xf32>
    %450 = vector.extract_strided_slice %449 {offsets = [0, 0, 0], sizes = [1, 8, 8], strides = [1, 1, 1]} : vector<8x8x8xf32> to vector<1x8x8xf32>
    %451 = vector.shape_cast %450 : vector<1x8x8xf32> to vector<8x8xf32>
    %c0_139 = arith.constant 0 : index
    %c0_140 = arith.constant 0 : index
    %452 = memref.load %arg9[%c0_139, %c0_140] : memref<8x8xf32, #tpu.memory_space<smem>>
    %453 = vector.broadcast %452 : f32 to vector<8x8xf32>
    %454 = arith.mulf %451, %453 : vector<8x8xf32>
    %455 = vector.extract_strided_slice %449 {offsets = [1, 0, 0], sizes = [1, 8, 8], strides = [1, 1, 1]} : vector<8x8x8xf32> to vector<1x8x8xf32>
    %456 = vector.shape_cast %455 : vector<1x8x8xf32> to vector<8x8xf32>
    %c0_141 = arith.constant 0 : index
    %c1_142 = arith.constant 1 : index
    %457 = memref.load %arg9[%c0_141, %c1_142] : memref<8x8xf32, #tpu.memory_space<smem>>
    %458 = vector.broadcast %457 : f32 to vector<8x8xf32>
    %459 = arith.mulf %456, %458 : vector<8x8xf32>
    %460 = arith.addf %454, %459 : vector<8x8xf32>
    %461 = vector.extract_strided_slice %449 {offsets = [2, 0, 0], sizes = [1, 8, 8], strides = [1, 1, 1]} : vector<8x8x8xf32> to vector<1x8x8xf32>
    %462 = vector.shape_cast %461 : vector<1x8x8xf32> to vector<8x8xf32>
    %c0_143 = arith.constant 0 : index
    %c2_144 = arith.constant 2 : index
    %463 = memref.load %arg9[%c0_143, %c2_144] : memref<8x8xf32, #tpu.memory_space<smem>>
    %464 = vector.broadcast %463 : f32 to vector<8x8xf32>
    %465 = arith.mulf %462, %464 : vector<8x8xf32>
    %466 = arith.addf %460, %465 : vector<8x8xf32>
    %467 = vector.extract_strided_slice %449 {offsets = [3, 0, 0], sizes = [1, 8, 8], strides = [1, 1, 1]} : vector<8x8x8xf32> to vector<1x8x8xf32>
    %468 = vector.shape_cast %467 : vector<1x8x8xf32> to vector<8x8xf32>
    %c0_145 = arith.constant 0 : index
    %c3_146 = arith.constant 3 : index
    %469 = memref.load %arg9[%c0_145, %c3_146] : memref<8x8xf32, #tpu.memory_space<smem>>
    %470 = vector.broadcast %469 : f32 to vector<8x8xf32>
    %471 = arith.mulf %468, %470 : vector<8x8xf32>
    %472 = arith.addf %466, %471 : vector<8x8xf32>
    %473 = vector.extract_strided_slice %449 {offsets = [4, 0, 0], sizes = [1, 8, 8], strides = [1, 1, 1]} : vector<8x8x8xf32> to vector<1x8x8xf32>
    %474 = vector.shape_cast %473 : vector<1x8x8xf32> to vector<8x8xf32>
    %c0_147 = arith.constant 0 : index
    %c4_148 = arith.constant 4 : index
    %475 = memref.load %arg9[%c0_147, %c4_148] : memref<8x8xf32, #tpu.memory_space<smem>>
    %476 = vector.broadcast %475 : f32 to vector<8x8xf32>
    %477 = arith.mulf %474, %476 : vector<8x8xf32>
    %478 = arith.addf %472, %477 : vector<8x8xf32>
    %479 = vector.extract_strided_slice %449 {offsets = [5, 0, 0], sizes = [1, 8, 8], strides = [1, 1, 1]} : vector<8x8x8xf32> to vector<1x8x8xf32>
    %480 = vector.shape_cast %479 : vector<1x8x8xf32> to vector<8x8xf32>
    %c0_149 = arith.constant 0 : index
    %c5_150 = arith.constant 5 : index
    %481 = memref.load %arg9[%c0_149, %c5_150] : memref<8x8xf32, #tpu.memory_space<smem>>
    %482 = vector.broadcast %481 : f32 to vector<8x8xf32>
    %483 = arith.mulf %480, %482 : vector<8x8xf32>
    %484 = arith.addf %478, %483 : vector<8x8xf32>
    %485 = vector.extract_strided_slice %449 {offsets = [6, 0, 0], sizes = [1, 8, 8], strides = [1, 1, 1]} : vector<8x8x8xf32> to vector<1x8x8xf32>
    %486 = vector.shape_cast %485 : vector<1x8x8xf32> to vector<8x8xf32>
    %c0_151 = arith.constant 0 : index
    %c6_152 = arith.constant 6 : index
    %487 = memref.load %arg9[%c0_151, %c6_152] : memref<8x8xf32, #tpu.memory_space<smem>>
    %488 = vector.broadcast %487 : f32 to vector<8x8xf32>
    %489 = arith.mulf %486, %488 : vector<8x8xf32>
    %490 = arith.addf %484, %489 : vector<8x8xf32>
    %491 = vector.extract_strided_slice %449 {offsets = [7, 0, 0], sizes = [1, 8, 8], strides = [1, 1, 1]} : vector<8x8x8xf32> to vector<1x8x8xf32>
    %492 = vector.shape_cast %491 : vector<1x8x8xf32> to vector<8x8xf32>
    %c0_153 = arith.constant 0 : index
    %c7_154 = arith.constant 7 : index
    %493 = memref.load %arg9[%c0_153, %c7_154] : memref<8x8xf32, #tpu.memory_space<smem>>
    %494 = vector.broadcast %493 : f32 to vector<8x8xf32>
    %495 = arith.mulf %492, %494 : vector<8x8xf32>
    %496 = arith.addf %490, %495 : vector<8x8xf32>
    %c0_155 = arith.constant 0 : index
    %497 = memref.load %arg10[%c0_155] : memref<8xf32, #tpu.memory_space<smem>>
    %498 = vector.broadcast %497 : f32 to vector<8x8xf32>
    %499 = arith.addf %496, %498 : vector<8x8xf32>
    %500 = vector.extract_strided_slice %449 {offsets = [0, 0, 0], sizes = [1, 8, 8], strides = [1, 1, 1]} : vector<8x8x8xf32> to vector<1x8x8xf32>
    %501 = vector.shape_cast %500 : vector<1x8x8xf32> to vector<8x8xf32>
    %c1_156 = arith.constant 1 : index
    %c0_157 = arith.constant 0 : index
    %502 = memref.load %arg9[%c1_156, %c0_157] : memref<8x8xf32, #tpu.memory_space<smem>>
    %503 = vector.broadcast %502 : f32 to vector<8x8xf32>
    %504 = arith.mulf %501, %503 : vector<8x8xf32>
    %505 = vector.extract_strided_slice %449 {offsets = [1, 0, 0], sizes = [1, 8, 8], strides = [1, 1, 1]} : vector<8x8x8xf32> to vector<1x8x8xf32>
    %506 = vector.shape_cast %505 : vector<1x8x8xf32> to vector<8x8xf32>
    %c1_158 = arith.constant 1 : index
    %c1_159 = arith.constant 1 : index
    %507 = memref.load %arg9[%c1_158, %c1_159] : memref<8x8xf32, #tpu.memory_space<smem>>
    %508 = vector.broadcast %507 : f32 to vector<8x8xf32>
    %509 = arith.mulf %506, %508 : vector<8x8xf32>
    %510 = arith.addf %504, %509 : vector<8x8xf32>
    %511 = vector.extract_strided_slice %449 {offsets = [2, 0, 0], sizes = [1, 8, 8], strides = [1, 1, 1]} : vector<8x8x8xf32> to vector<1x8x8xf32>
    %512 = vector.shape_cast %511 : vector<1x8x8xf32> to vector<8x8xf32>
    %c1_160 = arith.constant 1 : index
    %c2_161 = arith.constant 2 : index
    %513 = memref.load %arg9[%c1_160, %c2_161] : memref<8x8xf32, #tpu.memory_space<smem>>
    %514 = vector.broadcast %513 : f32 to vector<8x8xf32>
    %515 = arith.mulf %512, %514 : vector<8x8xf32>
    %516 = arith.addf %510, %515 : vector<8x8xf32>
    %517 = vector.extract_strided_slice %449 {offsets = [3, 0, 0], sizes = [1, 8, 8], strides = [1, 1, 1]} : vector<8x8x8xf32> to vector<1x8x8xf32>
    %518 = vector.shape_cast %517 : vector<1x8x8xf32> to vector<8x8xf32>
    %c1_162 = arith.constant 1 : index
    %c3_163 = arith.constant 3 : index
    %519 = memref.load %arg9[%c1_162, %c3_163] : memref<8x8xf32, #tpu.memory_space<smem>>
    %520 = vector.broadcast %519 : f32 to vector<8x8xf32>
    %521 = arith.mulf %518, %520 : vector<8x8xf32>
    %522 = arith.addf %516, %521 : vector<8x8xf32>
    %523 = vector.extract_strided_slice %449 {offsets = [4, 0, 0], sizes = [1, 8, 8], strides = [1, 1, 1]} : vector<8x8x8xf32> to vector<1x8x8xf32>
    %524 = vector.shape_cast %523 : vector<1x8x8xf32> to vector<8x8xf32>
    %c1_164 = arith.constant 1 : index
    %c4_165 = arith.constant 4 : index
    %525 = memref.load %arg9[%c1_164, %c4_165] : memref<8x8xf32, #tpu.memory_space<smem>>
    %526 = vector.broadcast %525 : f32 to vector<8x8xf32>
    %527 = arith.mulf %524, %526 : vector<8x8xf32>
    %528 = arith.addf %522, %527 : vector<8x8xf32>
    %529 = vector.extract_strided_slice %449 {offsets = [5, 0, 0], sizes = [1, 8, 8], strides = [1, 1, 1]} : vector<8x8x8xf32> to vector<1x8x8xf32>
    %530 = vector.shape_cast %529 : vector<1x8x8xf32> to vector<8x8xf32>
    %c1_166 = arith.constant 1 : index
    %c5_167 = arith.constant 5 : index
    %531 = memref.load %arg9[%c1_166, %c5_167] : memref<8x8xf32, #tpu.memory_space<smem>>
    %532 = vector.broadcast %531 : f32 to vector<8x8xf32>
    %533 = arith.mulf %530, %532 : vector<8x8xf32>
    %534 = arith.addf %528, %533 : vector<8x8xf32>
    %535 = vector.extract_strided_slice %449 {offsets = [6, 0, 0], sizes = [1, 8, 8], strides = [1, 1, 1]} : vector<8x8x8xf32> to vector<1x8x8xf32>
    %536 = vector.shape_cast %535 : vector<1x8x8xf32> to vector<8x8xf32>
    %c1_168 = arith.constant 1 : index
    %c6_169 = arith.constant 6 : index
    %537 = memref.load %arg9[%c1_168, %c6_169] : memref<8x8xf32, #tpu.memory_space<smem>>
    %538 = vector.broadcast %537 : f32 to vector<8x8xf32>
    %539 = arith.mulf %536, %538 : vector<8x8xf32>
    %540 = arith.addf %534, %539 : vector<8x8xf32>
    %541 = vector.extract_strided_slice %449 {offsets = [7, 0, 0], sizes = [1, 8, 8], strides = [1, 1, 1]} : vector<8x8x8xf32> to vector<1x8x8xf32>
    %542 = vector.shape_cast %541 : vector<1x8x8xf32> to vector<8x8xf32>
    %c1_170 = arith.constant 1 : index
    %c7_171 = arith.constant 7 : index
    %543 = memref.load %arg9[%c1_170, %c7_171] : memref<8x8xf32, #tpu.memory_space<smem>>
    %544 = vector.broadcast %543 : f32 to vector<8x8xf32>
    %545 = arith.mulf %542, %544 : vector<8x8xf32>
    %546 = arith.addf %540, %545 : vector<8x8xf32>
    %c1_172 = arith.constant 1 : index
    %547 = memref.load %arg10[%c1_172] : memref<8xf32, #tpu.memory_space<smem>>
    %548 = vector.broadcast %547 : f32 to vector<8x8xf32>
    %549 = arith.addf %546, %548 : vector<8x8xf32>
    %550 = vector.extract_strided_slice %449 {offsets = [0, 0, 0], sizes = [1, 8, 8], strides = [1, 1, 1]} : vector<8x8x8xf32> to vector<1x8x8xf32>
    %551 = vector.shape_cast %550 : vector<1x8x8xf32> to vector<8x8xf32>
    %c2_173 = arith.constant 2 : index
    %c0_174 = arith.constant 0 : index
    %552 = memref.load %arg9[%c2_173, %c0_174] : memref<8x8xf32, #tpu.memory_space<smem>>
    %553 = vector.broadcast %552 : f32 to vector<8x8xf32>
    %554 = arith.mulf %551, %553 : vector<8x8xf32>
    %555 = vector.extract_strided_slice %449 {offsets = [1, 0, 0], sizes = [1, 8, 8], strides = [1, 1, 1]} : vector<8x8x8xf32> to vector<1x8x8xf32>
    %556 = vector.shape_cast %555 : vector<1x8x8xf32> to vector<8x8xf32>
    %c2_175 = arith.constant 2 : index
    %c1_176 = arith.constant 1 : index
    %557 = memref.load %arg9[%c2_175, %c1_176] : memref<8x8xf32, #tpu.memory_space<smem>>
    %558 = vector.broadcast %557 : f32 to vector<8x8xf32>
    %559 = arith.mulf %556, %558 : vector<8x8xf32>
    %560 = arith.addf %554, %559 : vector<8x8xf32>
    %561 = vector.extract_strided_slice %449 {offsets = [2, 0, 0], sizes = [1, 8, 8], strides = [1, 1, 1]} : vector<8x8x8xf32> to vector<1x8x8xf32>
    %562 = vector.shape_cast %561 : vector<1x8x8xf32> to vector<8x8xf32>
    %c2_177 = arith.constant 2 : index
    %c2_178 = arith.constant 2 : index
    %563 = memref.load %arg9[%c2_177, %c2_178] : memref<8x8xf32, #tpu.memory_space<smem>>
    %564 = vector.broadcast %563 : f32 to vector<8x8xf32>
    %565 = arith.mulf %562, %564 : vector<8x8xf32>
    %566 = arith.addf %560, %565 : vector<8x8xf32>
    %567 = vector.extract_strided_slice %449 {offsets = [3, 0, 0], sizes = [1, 8, 8], strides = [1, 1, 1]} : vector<8x8x8xf32> to vector<1x8x8xf32>
    %568 = vector.shape_cast %567 : vector<1x8x8xf32> to vector<8x8xf32>
    %c2_179 = arith.constant 2 : index
    %c3_180 = arith.constant 3 : index
    %569 = memref.load %arg9[%c2_179, %c3_180] : memref<8x8xf32, #tpu.memory_space<smem>>
    %570 = vector.broadcast %569 : f32 to vector<8x8xf32>
    %571 = arith.mulf %568, %570 : vector<8x8xf32>
    %572 = arith.addf %566, %571 : vector<8x8xf32>
    %573 = vector.extract_strided_slice %449 {offsets = [4, 0, 0], sizes = [1, 8, 8], strides = [1, 1, 1]} : vector<8x8x8xf32> to vector<1x8x8xf32>
    %574 = vector.shape_cast %573 : vector<1x8x8xf32> to vector<8x8xf32>
    %c2_181 = arith.constant 2 : index
    %c4_182 = arith.constant 4 : index
    %575 = memref.load %arg9[%c2_181, %c4_182] : memref<8x8xf32, #tpu.memory_space<smem>>
    %576 = vector.broadcast %575 : f32 to vector<8x8xf32>
    %577 = arith.mulf %574, %576 : vector<8x8xf32>
    %578 = arith.addf %572, %577 : vector<8x8xf32>
    %579 = vector.extract_strided_slice %449 {offsets = [5, 0, 0], sizes = [1, 8, 8], strides = [1, 1, 1]} : vector<8x8x8xf32> to vector<1x8x8xf32>
    %580 = vector.shape_cast %579 : vector<1x8x8xf32> to vector<8x8xf32>
    %c2_183 = arith.constant 2 : index
    %c5_184 = arith.constant 5 : index
    %581 = memref.load %arg9[%c2_183, %c5_184] : memref<8x8xf32, #tpu.memory_space<smem>>
    %582 = vector.broadcast %581 : f32 to vector<8x8xf32>
    %583 = arith.mulf %580, %582 : vector<8x8xf32>
    %584 = arith.addf %578, %583 : vector<8x8xf32>
    %585 = vector.extract_strided_slice %449 {offsets = [6, 0, 0], sizes = [1, 8, 8], strides = [1, 1, 1]} : vector<8x8x8xf32> to vector<1x8x8xf32>
    %586 = vector.shape_cast %585 : vector<1x8x8xf32> to vector<8x8xf32>
    %c2_185 = arith.constant 2 : index
    %c6_186 = arith.constant 6 : index
    %587 = memref.load %arg9[%c2_185, %c6_186] : memref<8x8xf32, #tpu.memory_space<smem>>
    %588 = vector.broadcast %587 : f32 to vector<8x8xf32>
    %589 = arith.mulf %586, %588 : vector<8x8xf32>
    %590 = arith.addf %584, %589 : vector<8x8xf32>
    %591 = vector.extract_strided_slice %449 {offsets = [7, 0, 0], sizes = [1, 8, 8], strides = [1, 1, 1]} : vector<8x8x8xf32> to vector<1x8x8xf32>
    %592 = vector.shape_cast %591 : vector<1x8x8xf32> to vector<8x8xf32>
    %c2_187 = arith.constant 2 : index
    %c7_188 = arith.constant 7 : index
    %593 = memref.load %arg9[%c2_187, %c7_188] : memref<8x8xf32, #tpu.memory_space<smem>>
    %594 = vector.broadcast %593 : f32 to vector<8x8xf32>
    %595 = arith.mulf %592, %594 : vector<8x8xf32>
    %596 = arith.addf %590, %595 : vector<8x8xf32>
    %c2_189 = arith.constant 2 : index
    %597 = memref.load %arg10[%c2_189] : memref<8xf32, #tpu.memory_space<smem>>
    %598 = vector.broadcast %597 : f32 to vector<8x8xf32>
    %599 = arith.addf %596, %598 : vector<8x8xf32>
    %600 = vector.extract_strided_slice %449 {offsets = [0, 0, 0], sizes = [1, 8, 8], strides = [1, 1, 1]} : vector<8x8x8xf32> to vector<1x8x8xf32>
    %601 = vector.shape_cast %600 : vector<1x8x8xf32> to vector<8x8xf32>
    %c3_190 = arith.constant 3 : index
    %c0_191 = arith.constant 0 : index
    %602 = memref.load %arg9[%c3_190, %c0_191] : memref<8x8xf32, #tpu.memory_space<smem>>
    %603 = vector.broadcast %602 : f32 to vector<8x8xf32>
    %604 = arith.mulf %601, %603 : vector<8x8xf32>
    %605 = vector.extract_strided_slice %449 {offsets = [1, 0, 0], sizes = [1, 8, 8], strides = [1, 1, 1]} : vector<8x8x8xf32> to vector<1x8x8xf32>
    %606 = vector.shape_cast %605 : vector<1x8x8xf32> to vector<8x8xf32>
    %c3_192 = arith.constant 3 : index
    %c1_193 = arith.constant 1 : index
    %607 = memref.load %arg9[%c3_192, %c1_193] : memref<8x8xf32, #tpu.memory_space<smem>>
    %608 = vector.broadcast %607 : f32 to vector<8x8xf32>
    %609 = arith.mulf %606, %608 : vector<8x8xf32>
    %610 = arith.addf %604, %609 : vector<8x8xf32>
    %611 = vector.extract_strided_slice %449 {offsets = [2, 0, 0], sizes = [1, 8, 8], strides = [1, 1, 1]} : vector<8x8x8xf32> to vector<1x8x8xf32>
    %612 = vector.shape_cast %611 : vector<1x8x8xf32> to vector<8x8xf32>
    %c3_194 = arith.constant 3 : index
    %c2_195 = arith.constant 2 : index
    %613 = memref.load %arg9[%c3_194, %c2_195] : memref<8x8xf32, #tpu.memory_space<smem>>
    %614 = vector.broadcast %613 : f32 to vector<8x8xf32>
    %615 = arith.mulf %612, %614 : vector<8x8xf32>
    %616 = arith.addf %610, %615 : vector<8x8xf32>
    %617 = vector.extract_strided_slice %449 {offsets = [3, 0, 0], sizes = [1, 8, 8], strides = [1, 1, 1]} : vector<8x8x8xf32> to vector<1x8x8xf32>
    %618 = vector.shape_cast %617 : vector<1x8x8xf32> to vector<8x8xf32>
    %c3_196 = arith.constant 3 : index
    %c3_197 = arith.constant 3 : index
    %619 = memref.load %arg9[%c3_196, %c3_197] : memref<8x8xf32, #tpu.memory_space<smem>>
    %620 = vector.broadcast %619 : f32 to vector<8x8xf32>
    %621 = arith.mulf %618, %620 : vector<8x8xf32>
    %622 = arith.addf %616, %621 : vector<8x8xf32>
    %623 = vector.extract_strided_slice %449 {offsets = [4, 0, 0], sizes = [1, 8, 8], strides = [1, 1, 1]} : vector<8x8x8xf32> to vector<1x8x8xf32>
    %624 = vector.shape_cast %623 : vector<1x8x8xf32> to vector<8x8xf32>
    %c3_198 = arith.constant 3 : index
    %c4_199 = arith.constant 4 : index
    %625 = memref.load %arg9[%c3_198, %c4_199] : memref<8x8xf32, #tpu.memory_space<smem>>
    %626 = vector.broadcast %625 : f32 to vector<8x8xf32>
    %627 = arith.mulf %624, %626 : vector<8x8xf32>
    %628 = arith.addf %622, %627 : vector<8x8xf32>
    %629 = vector.extract_strided_slice %449 {offsets = [5, 0, 0], sizes = [1, 8, 8], strides = [1, 1, 1]} : vector<8x8x8xf32> to vector<1x8x8xf32>
    %630 = vector.shape_cast %629 : vector<1x8x8xf32> to vector<8x8xf32>
    %c3_200 = arith.constant 3 : index
    %c5_201 = arith.constant 5 : index
    %631 = memref.load %arg9[%c3_200, %c5_201] : memref<8x8xf32, #tpu.memory_space<smem>>
    %632 = vector.broadcast %631 : f32 to vector<8x8xf32>
    %633 = arith.mulf %630, %632 : vector<8x8xf32>
    %634 = arith.addf %628, %633 : vector<8x8xf32>
    %635 = vector.extract_strided_slice %449 {offsets = [6, 0, 0], sizes = [1, 8, 8], strides = [1, 1, 1]} : vector<8x8x8xf32> to vector<1x8x8xf32>
    %636 = vector.shape_cast %635 : vector<1x8x8xf32> to vector<8x8xf32>
    %c3_202 = arith.constant 3 : index
    %c6_203 = arith.constant 6 : index
    %637 = memref.load %arg9[%c3_202, %c6_203] : memref<8x8xf32, #tpu.memory_space<smem>>
    %638 = vector.broadcast %637 : f32 to vector<8x8xf32>
    %639 = arith.mulf %636, %638 : vector<8x8xf32>
    %640 = arith.addf %634, %639 : vector<8x8xf32>
    %641 = vector.extract_strided_slice %449 {offsets = [7, 0, 0], sizes = [1, 8, 8], strides = [1, 1, 1]} : vector<8x8x8xf32> to vector<1x8x8xf32>
    %642 = vector.shape_cast %641 : vector<1x8x8xf32> to vector<8x8xf32>
    %c3_204 = arith.constant 3 : index
    %c7_205 = arith.constant 7 : index
    %643 = memref.load %arg9[%c3_204, %c7_205] : memref<8x8xf32, #tpu.memory_space<smem>>
    %644 = vector.broadcast %643 : f32 to vector<8x8xf32>
    %645 = arith.mulf %642, %644 : vector<8x8xf32>
    %646 = arith.addf %640, %645 : vector<8x8xf32>
    %c3_206 = arith.constant 3 : index
    %647 = memref.load %arg10[%c3_206] : memref<8xf32, #tpu.memory_space<smem>>
    %648 = vector.broadcast %647 : f32 to vector<8x8xf32>
    %649 = arith.addf %646, %648 : vector<8x8xf32>
    %650 = vector.extract_strided_slice %449 {offsets = [0, 0, 0], sizes = [1, 8, 8], strides = [1, 1, 1]} : vector<8x8x8xf32> to vector<1x8x8xf32>
    %651 = vector.shape_cast %650 : vector<1x8x8xf32> to vector<8x8xf32>
    %c4_207 = arith.constant 4 : index
    %c0_208 = arith.constant 0 : index
    %652 = memref.load %arg9[%c4_207, %c0_208] : memref<8x8xf32, #tpu.memory_space<smem>>
    %653 = vector.broadcast %652 : f32 to vector<8x8xf32>
    %654 = arith.mulf %651, %653 : vector<8x8xf32>
    %655 = vector.extract_strided_slice %449 {offsets = [1, 0, 0], sizes = [1, 8, 8], strides = [1, 1, 1]} : vector<8x8x8xf32> to vector<1x8x8xf32>
    %656 = vector.shape_cast %655 : vector<1x8x8xf32> to vector<8x8xf32>
    %c4_209 = arith.constant 4 : index
    %c1_210 = arith.constant 1 : index
    %657 = memref.load %arg9[%c4_209, %c1_210] : memref<8x8xf32, #tpu.memory_space<smem>>
    %658 = vector.broadcast %657 : f32 to vector<8x8xf32>
    %659 = arith.mulf %656, %658 : vector<8x8xf32>
    %660 = arith.addf %654, %659 : vector<8x8xf32>
    %661 = vector.extract_strided_slice %449 {offsets = [2, 0, 0], sizes = [1, 8, 8], strides = [1, 1, 1]} : vector<8x8x8xf32> to vector<1x8x8xf32>
    %662 = vector.shape_cast %661 : vector<1x8x8xf32> to vector<8x8xf32>
    %c4_211 = arith.constant 4 : index
    %c2_212 = arith.constant 2 : index
    %663 = memref.load %arg9[%c4_211, %c2_212] : memref<8x8xf32, #tpu.memory_space<smem>>
    %664 = vector.broadcast %663 : f32 to vector<8x8xf32>
    %665 = arith.mulf %662, %664 : vector<8x8xf32>
    %666 = arith.addf %660, %665 : vector<8x8xf32>
    %667 = vector.extract_strided_slice %449 {offsets = [3, 0, 0], sizes = [1, 8, 8], strides = [1, 1, 1]} : vector<8x8x8xf32> to vector<1x8x8xf32>
    %668 = vector.shape_cast %667 : vector<1x8x8xf32> to vector<8x8xf32>
    %c4_213 = arith.constant 4 : index
    %c3_214 = arith.constant 3 : index
    %669 = memref.load %arg9[%c4_213, %c3_214] : memref<8x8xf32, #tpu.memory_space<smem>>
    %670 = vector.broadcast %669 : f32 to vector<8x8xf32>
    %671 = arith.mulf %668, %670 : vector<8x8xf32>
    %672 = arith.addf %666, %671 : vector<8x8xf32>
    %673 = vector.extract_strided_slice %449 {offsets = [4, 0, 0], sizes = [1, 8, 8], strides = [1, 1, 1]} : vector<8x8x8xf32> to vector<1x8x8xf32>
    %674 = vector.shape_cast %673 : vector<1x8x8xf32> to vector<8x8xf32>
    %c4_215 = arith.constant 4 : index
    %c4_216 = arith.constant 4 : index
    %675 = memref.load %arg9[%c4_215, %c4_216] : memref<8x8xf32, #tpu.memory_space<smem>>
    %676 = vector.broadcast %675 : f32 to vector<8x8xf32>
    %677 = arith.mulf %674, %676 : vector<8x8xf32>
    %678 = arith.addf %672, %677 : vector<8x8xf32>
    %679 = vector.extract_strided_slice %449 {offsets = [5, 0, 0], sizes = [1, 8, 8], strides = [1, 1, 1]} : vector<8x8x8xf32> to vector<1x8x8xf32>
    %680 = vector.shape_cast %679 : vector<1x8x8xf32> to vector<8x8xf32>
    %c4_217 = arith.constant 4 : index
    %c5_218 = arith.constant 5 : index
    %681 = memref.load %arg9[%c4_217, %c5_218] : memref<8x8xf32, #tpu.memory_space<smem>>
    %682 = vector.broadcast %681 : f32 to vector<8x8xf32>
    %683 = arith.mulf %680, %682 : vector<8x8xf32>
    %684 = arith.addf %678, %683 : vector<8x8xf32>
    %685 = vector.extract_strided_slice %449 {offsets = [6, 0, 0], sizes = [1, 8, 8], strides = [1, 1, 1]} : vector<8x8x8xf32> to vector<1x8x8xf32>
    %686 = vector.shape_cast %685 : vector<1x8x8xf32> to vector<8x8xf32>
    %c4_219 = arith.constant 4 : index
    %c6_220 = arith.constant 6 : index
    %687 = memref.load %arg9[%c4_219, %c6_220] : memref<8x8xf32, #tpu.memory_space<smem>>
    %688 = vector.broadcast %687 : f32 to vector<8x8xf32>
    %689 = arith.mulf %686, %688 : vector<8x8xf32>
    %690 = arith.addf %684, %689 : vector<8x8xf32>
    %691 = vector.extract_strided_slice %449 {offsets = [7, 0, 0], sizes = [1, 8, 8], strides = [1, 1, 1]} : vector<8x8x8xf32> to vector<1x8x8xf32>
    %692 = vector.shape_cast %691 : vector<1x8x8xf32> to vector<8x8xf32>
    %c4_221 = arith.constant 4 : index
    %c7_222 = arith.constant 7 : index
    %693 = memref.load %arg9[%c4_221, %c7_222] : memref<8x8xf32, #tpu.memory_space<smem>>
    %694 = vector.broadcast %693 : f32 to vector<8x8xf32>
    %695 = arith.mulf %692, %694 : vector<8x8xf32>
    %696 = arith.addf %690, %695 : vector<8x8xf32>
    %c4_223 = arith.constant 4 : index
    %697 = memref.load %arg10[%c4_223] : memref<8xf32, #tpu.memory_space<smem>>
    %698 = vector.broadcast %697 : f32 to vector<8x8xf32>
    %699 = arith.addf %696, %698 : vector<8x8xf32>
    %700 = vector.extract_strided_slice %449 {offsets = [0, 0, 0], sizes = [1, 8, 8], strides = [1, 1, 1]} : vector<8x8x8xf32> to vector<1x8x8xf32>
    %701 = vector.shape_cast %700 : vector<1x8x8xf32> to vector<8x8xf32>
    %c5_224 = arith.constant 5 : index
    %c0_225 = arith.constant 0 : index
    %702 = memref.load %arg9[%c5_224, %c0_225] : memref<8x8xf32, #tpu.memory_space<smem>>
    %703 = vector.broadcast %702 : f32 to vector<8x8xf32>
    %704 = arith.mulf %701, %703 : vector<8x8xf32>
    %705 = vector.extract_strided_slice %449 {offsets = [1, 0, 0], sizes = [1, 8, 8], strides = [1, 1, 1]} : vector<8x8x8xf32> to vector<1x8x8xf32>
    %706 = vector.shape_cast %705 : vector<1x8x8xf32> to vector<8x8xf32>
    %c5_226 = arith.constant 5 : index
    %c1_227 = arith.constant 1 : index
    %707 = memref.load %arg9[%c5_226, %c1_227] : memref<8x8xf32, #tpu.memory_space<smem>>
    %708 = vector.broadcast %707 : f32 to vector<8x8xf32>
    %709 = arith.mulf %706, %708 : vector<8x8xf32>
    %710 = arith.addf %704, %709 : vector<8x8xf32>
    %711 = vector.extract_strided_slice %449 {offsets = [2, 0, 0], sizes = [1, 8, 8], strides = [1, 1, 1]} : vector<8x8x8xf32> to vector<1x8x8xf32>
    %712 = vector.shape_cast %711 : vector<1x8x8xf32> to vector<8x8xf32>
    %c5_228 = arith.constant 5 : index
    %c2_229 = arith.constant 2 : index
    %713 = memref.load %arg9[%c5_228, %c2_229] : memref<8x8xf32, #tpu.memory_space<smem>>
    %714 = vector.broadcast %713 : f32 to vector<8x8xf32>
    %715 = arith.mulf %712, %714 : vector<8x8xf32>
    %716 = arith.addf %710, %715 : vector<8x8xf32>
    %717 = vector.extract_strided_slice %449 {offsets = [3, 0, 0], sizes = [1, 8, 8], strides = [1, 1, 1]} : vector<8x8x8xf32> to vector<1x8x8xf32>
    %718 = vector.shape_cast %717 : vector<1x8x8xf32> to vector<8x8xf32>
    %c5_230 = arith.constant 5 : index
    %c3_231 = arith.constant 3 : index
    %719 = memref.load %arg9[%c5_230, %c3_231] : memref<8x8xf32, #tpu.memory_space<smem>>
    %720 = vector.broadcast %719 : f32 to vector<8x8xf32>
    %721 = arith.mulf %718, %720 : vector<8x8xf32>
    %722 = arith.addf %716, %721 : vector<8x8xf32>
    %723 = vector.extract_strided_slice %449 {offsets = [4, 0, 0], sizes = [1, 8, 8], strides = [1, 1, 1]} : vector<8x8x8xf32> to vector<1x8x8xf32>
    %724 = vector.shape_cast %723 : vector<1x8x8xf32> to vector<8x8xf32>
    %c5_232 = arith.constant 5 : index
    %c4_233 = arith.constant 4 : index
    %725 = memref.load %arg9[%c5_232, %c4_233] : memref<8x8xf32, #tpu.memory_space<smem>>
    %726 = vector.broadcast %725 : f32 to vector<8x8xf32>
    %727 = arith.mulf %724, %726 : vector<8x8xf32>
    %728 = arith.addf %722, %727 : vector<8x8xf32>
    %729 = vector.extract_strided_slice %449 {offsets = [5, 0, 0], sizes = [1, 8, 8], strides = [1, 1, 1]} : vector<8x8x8xf32> to vector<1x8x8xf32>
    %730 = vector.shape_cast %729 : vector<1x8x8xf32> to vector<8x8xf32>
    %c5_234 = arith.constant 5 : index
    %c5_235 = arith.constant 5 : index
    %731 = memref.load %arg9[%c5_234, %c5_235] : memref<8x8xf32, #tpu.memory_space<smem>>
    %732 = vector.broadcast %731 : f32 to vector<8x8xf32>
    %733 = arith.mulf %730, %732 : vector<8x8xf32>
    %734 = arith.addf %728, %733 : vector<8x8xf32>
    %735 = vector.extract_strided_slice %449 {offsets = [6, 0, 0], sizes = [1, 8, 8], strides = [1, 1, 1]} : vector<8x8x8xf32> to vector<1x8x8xf32>
    %736 = vector.shape_cast %735 : vector<1x8x8xf32> to vector<8x8xf32>
    %c5_236 = arith.constant 5 : index
    %c6_237 = arith.constant 6 : index
    %737 = memref.load %arg9[%c5_236, %c6_237] : memref<8x8xf32, #tpu.memory_space<smem>>
    %738 = vector.broadcast %737 : f32 to vector<8x8xf32>
    %739 = arith.mulf %736, %738 : vector<8x8xf32>
    %740 = arith.addf %734, %739 : vector<8x8xf32>
    %741 = vector.extract_strided_slice %449 {offsets = [7, 0, 0], sizes = [1, 8, 8], strides = [1, 1, 1]} : vector<8x8x8xf32> to vector<1x8x8xf32>
    %742 = vector.shape_cast %741 : vector<1x8x8xf32> to vector<8x8xf32>
    %c5_238 = arith.constant 5 : index
    %c7_239 = arith.constant 7 : index
    %743 = memref.load %arg9[%c5_238, %c7_239] : memref<8x8xf32, #tpu.memory_space<smem>>
    %744 = vector.broadcast %743 : f32 to vector<8x8xf32>
    %745 = arith.mulf %742, %744 : vector<8x8xf32>
    %746 = arith.addf %740, %745 : vector<8x8xf32>
    %c5_240 = arith.constant 5 : index
    %747 = memref.load %arg10[%c5_240] : memref<8xf32, #tpu.memory_space<smem>>
    %748 = vector.broadcast %747 : f32 to vector<8x8xf32>
    %749 = arith.addf %746, %748 : vector<8x8xf32>
    %750 = vector.extract_strided_slice %449 {offsets = [0, 0, 0], sizes = [1, 8, 8], strides = [1, 1, 1]} : vector<8x8x8xf32> to vector<1x8x8xf32>
    %751 = vector.shape_cast %750 : vector<1x8x8xf32> to vector<8x8xf32>
    %c6_241 = arith.constant 6 : index
    %c0_242 = arith.constant 0 : index
    %752 = memref.load %arg9[%c6_241, %c0_242] : memref<8x8xf32, #tpu.memory_space<smem>>
    %753 = vector.broadcast %752 : f32 to vector<8x8xf32>
    %754 = arith.mulf %751, %753 : vector<8x8xf32>
    %755 = vector.extract_strided_slice %449 {offsets = [1, 0, 0], sizes = [1, 8, 8], strides = [1, 1, 1]} : vector<8x8x8xf32> to vector<1x8x8xf32>
    %756 = vector.shape_cast %755 : vector<1x8x8xf32> to vector<8x8xf32>
    %c6_243 = arith.constant 6 : index
    %c1_244 = arith.constant 1 : index
    %757 = memref.load %arg9[%c6_243, %c1_244] : memref<8x8xf32, #tpu.memory_space<smem>>
    %758 = vector.broadcast %757 : f32 to vector<8x8xf32>
    %759 = arith.mulf %756, %758 : vector<8x8xf32>
    %760 = arith.addf %754, %759 : vector<8x8xf32>
    %761 = vector.extract_strided_slice %449 {offsets = [2, 0, 0], sizes = [1, 8, 8], strides = [1, 1, 1]} : vector<8x8x8xf32> to vector<1x8x8xf32>
    %762 = vector.shape_cast %761 : vector<1x8x8xf32> to vector<8x8xf32>
    %c6_245 = arith.constant 6 : index
    %c2_246 = arith.constant 2 : index
    %763 = memref.load %arg9[%c6_245, %c2_246] : memref<8x8xf32, #tpu.memory_space<smem>>
    %764 = vector.broadcast %763 : f32 to vector<8x8xf32>
    %765 = arith.mulf %762, %764 : vector<8x8xf32>
    %766 = arith.addf %760, %765 : vector<8x8xf32>
    %767 = vector.extract_strided_slice %449 {offsets = [3, 0, 0], sizes = [1, 8, 8], strides = [1, 1, 1]} : vector<8x8x8xf32> to vector<1x8x8xf32>
    %768 = vector.shape_cast %767 : vector<1x8x8xf32> to vector<8x8xf32>
    %c6_247 = arith.constant 6 : index
    %c3_248 = arith.constant 3 : index
    %769 = memref.load %arg9[%c6_247, %c3_248] : memref<8x8xf32, #tpu.memory_space<smem>>
    %770 = vector.broadcast %769 : f32 to vector<8x8xf32>
    %771 = arith.mulf %768, %770 : vector<8x8xf32>
    %772 = arith.addf %766, %771 : vector<8x8xf32>
    %773 = vector.extract_strided_slice %449 {offsets = [4, 0, 0], sizes = [1, 8, 8], strides = [1, 1, 1]} : vector<8x8x8xf32> to vector<1x8x8xf32>
    %774 = vector.shape_cast %773 : vector<1x8x8xf32> to vector<8x8xf32>
    %c6_249 = arith.constant 6 : index
    %c4_250 = arith.constant 4 : index
    %775 = memref.load %arg9[%c6_249, %c4_250] : memref<8x8xf32, #tpu.memory_space<smem>>
    %776 = vector.broadcast %775 : f32 to vector<8x8xf32>
    %777 = arith.mulf %774, %776 : vector<8x8xf32>
    %778 = arith.addf %772, %777 : vector<8x8xf32>
    %779 = vector.extract_strided_slice %449 {offsets = [5, 0, 0], sizes = [1, 8, 8], strides = [1, 1, 1]} : vector<8x8x8xf32> to vector<1x8x8xf32>
    %780 = vector.shape_cast %779 : vector<1x8x8xf32> to vector<8x8xf32>
    %c6_251 = arith.constant 6 : index
    %c5_252 = arith.constant 5 : index
    %781 = memref.load %arg9[%c6_251, %c5_252] : memref<8x8xf32, #tpu.memory_space<smem>>
    %782 = vector.broadcast %781 : f32 to vector<8x8xf32>
    %783 = arith.mulf %780, %782 : vector<8x8xf32>
    %784 = arith.addf %778, %783 : vector<8x8xf32>
    %785 = vector.extract_strided_slice %449 {offsets = [6, 0, 0], sizes = [1, 8, 8], strides = [1, 1, 1]} : vector<8x8x8xf32> to vector<1x8x8xf32>
    %786 = vector.shape_cast %785 : vector<1x8x8xf32> to vector<8x8xf32>
    %c6_253 = arith.constant 6 : index
    %c6_254 = arith.constant 6 : index
    %787 = memref.load %arg9[%c6_253, %c6_254] : memref<8x8xf32, #tpu.memory_space<smem>>
    %788 = vector.broadcast %787 : f32 to vector<8x8xf32>
    %789 = arith.mulf %786, %788 : vector<8x8xf32>
    %790 = arith.addf %784, %789 : vector<8x8xf32>
    %791 = vector.extract_strided_slice %449 {offsets = [7, 0, 0], sizes = [1, 8, 8], strides = [1, 1, 1]} : vector<8x8x8xf32> to vector<1x8x8xf32>
    %792 = vector.shape_cast %791 : vector<1x8x8xf32> to vector<8x8xf32>
    %c6_255 = arith.constant 6 : index
    %c7_256 = arith.constant 7 : index
    %793 = memref.load %arg9[%c6_255, %c7_256] : memref<8x8xf32, #tpu.memory_space<smem>>
    %794 = vector.broadcast %793 : f32 to vector<8x8xf32>
    %795 = arith.mulf %792, %794 : vector<8x8xf32>
    %796 = arith.addf %790, %795 : vector<8x8xf32>
    %c6_257 = arith.constant 6 : index
    %797 = memref.load %arg10[%c6_257] : memref<8xf32, #tpu.memory_space<smem>>
    %798 = vector.broadcast %797 : f32 to vector<8x8xf32>
    %799 = arith.addf %796, %798 : vector<8x8xf32>
    %800 = vector.extract_strided_slice %449 {offsets = [0, 0, 0], sizes = [1, 8, 8], strides = [1, 1, 1]} : vector<8x8x8xf32> to vector<1x8x8xf32>
    %801 = vector.shape_cast %800 : vector<1x8x8xf32> to vector<8x8xf32>
    %c7_258 = arith.constant 7 : index
    %c0_259 = arith.constant 0 : index
    %802 = memref.load %arg9[%c7_258, %c0_259] : memref<8x8xf32, #tpu.memory_space<smem>>
    %803 = vector.broadcast %802 : f32 to vector<8x8xf32>
    %804 = arith.mulf %801, %803 : vector<8x8xf32>
    %805 = vector.extract_strided_slice %449 {offsets = [1, 0, 0], sizes = [1, 8, 8], strides = [1, 1, 1]} : vector<8x8x8xf32> to vector<1x8x8xf32>
    %806 = vector.shape_cast %805 : vector<1x8x8xf32> to vector<8x8xf32>
    %c7_260 = arith.constant 7 : index
    %c1_261 = arith.constant 1 : index
    %807 = memref.load %arg9[%c7_260, %c1_261] : memref<8x8xf32, #tpu.memory_space<smem>>
    %808 = vector.broadcast %807 : f32 to vector<8x8xf32>
    %809 = arith.mulf %806, %808 : vector<8x8xf32>
    %810 = arith.addf %804, %809 : vector<8x8xf32>
    %811 = vector.extract_strided_slice %449 {offsets = [2, 0, 0], sizes = [1, 8, 8], strides = [1, 1, 1]} : vector<8x8x8xf32> to vector<1x8x8xf32>
    %812 = vector.shape_cast %811 : vector<1x8x8xf32> to vector<8x8xf32>
    %c7_262 = arith.constant 7 : index
    %c2_263 = arith.constant 2 : index
    %813 = memref.load %arg9[%c7_262, %c2_263] : memref<8x8xf32, #tpu.memory_space<smem>>
    %814 = vector.broadcast %813 : f32 to vector<8x8xf32>
    %815 = arith.mulf %812, %814 : vector<8x8xf32>
    %816 = arith.addf %810, %815 : vector<8x8xf32>
    %817 = vector.extract_strided_slice %449 {offsets = [3, 0, 0], sizes = [1, 8, 8], strides = [1, 1, 1]} : vector<8x8x8xf32> to vector<1x8x8xf32>
    %818 = vector.shape_cast %817 : vector<1x8x8xf32> to vector<8x8xf32>
    %c7_264 = arith.constant 7 : index
    %c3_265 = arith.constant 3 : index
    %819 = memref.load %arg9[%c7_264, %c3_265] : memref<8x8xf32, #tpu.memory_space<smem>>
    %820 = vector.broadcast %819 : f32 to vector<8x8xf32>
    %821 = arith.mulf %818, %820 : vector<8x8xf32>
    %822 = arith.addf %816, %821 : vector<8x8xf32>
    %823 = vector.extract_strided_slice %449 {offsets = [4, 0, 0], sizes = [1, 8, 8], strides = [1, 1, 1]} : vector<8x8x8xf32> to vector<1x8x8xf32>
    %824 = vector.shape_cast %823 : vector<1x8x8xf32> to vector<8x8xf32>
    %c7_266 = arith.constant 7 : index
    %c4_267 = arith.constant 4 : index
    %825 = memref.load %arg9[%c7_266, %c4_267] : memref<8x8xf32, #tpu.memory_space<smem>>
    %826 = vector.broadcast %825 : f32 to vector<8x8xf32>
    %827 = arith.mulf %824, %826 : vector<8x8xf32>
    %828 = arith.addf %822, %827 : vector<8x8xf32>
    %829 = vector.extract_strided_slice %449 {offsets = [5, 0, 0], sizes = [1, 8, 8], strides = [1, 1, 1]} : vector<8x8x8xf32> to vector<1x8x8xf32>
    %830 = vector.shape_cast %829 : vector<1x8x8xf32> to vector<8x8xf32>
    %c7_268 = arith.constant 7 : index
    %c5_269 = arith.constant 5 : index
    %831 = memref.load %arg9[%c7_268, %c5_269] : memref<8x8xf32, #tpu.memory_space<smem>>
    %832 = vector.broadcast %831 : f32 to vector<8x8xf32>
    %833 = arith.mulf %830, %832 : vector<8x8xf32>
    %834 = arith.addf %828, %833 : vector<8x8xf32>
    %835 = vector.extract_strided_slice %449 {offsets = [6, 0, 0], sizes = [1, 8, 8], strides = [1, 1, 1]} : vector<8x8x8xf32> to vector<1x8x8xf32>
    %836 = vector.shape_cast %835 : vector<1x8x8xf32> to vector<8x8xf32>
    %c7_270 = arith.constant 7 : index
    %c6_271 = arith.constant 6 : index
    %837 = memref.load %arg9[%c7_270, %c6_271] : memref<8x8xf32, #tpu.memory_space<smem>>
    %838 = vector.broadcast %837 : f32 to vector<8x8xf32>
    %839 = arith.mulf %836, %838 : vector<8x8xf32>
    %840 = arith.addf %834, %839 : vector<8x8xf32>
    %841 = vector.extract_strided_slice %449 {offsets = [7, 0, 0], sizes = [1, 8, 8], strides = [1, 1, 1]} : vector<8x8x8xf32> to vector<1x8x8xf32>
    %842 = vector.shape_cast %841 : vector<1x8x8xf32> to vector<8x8xf32>
    %c7_272 = arith.constant 7 : index
    %c7_273 = arith.constant 7 : index
    %843 = memref.load %arg9[%c7_272, %c7_273] : memref<8x8xf32, #tpu.memory_space<smem>>
    %844 = vector.broadcast %843 : f32 to vector<8x8xf32>
    %845 = arith.mulf %842, %844 : vector<8x8xf32>
    %846 = arith.addf %840, %845 : vector<8x8xf32>
    %c7_274 = arith.constant 7 : index
    %847 = memref.load %arg10[%c7_274] : memref<8xf32, #tpu.memory_space<smem>>
    %848 = vector.broadcast %847 : f32 to vector<8x8xf32>
    %849 = arith.addf %846, %848 : vector<8x8xf32>
    %850 = vector.shape_cast %499 : vector<8x8xf32> to vector<1x8x8xf32>
    %851 = vector.shape_cast %549 : vector<8x8xf32> to vector<1x8x8xf32>
    %852 = vector.shape_cast %599 : vector<8x8xf32> to vector<1x8x8xf32>
    %853 = vector.shape_cast %649 : vector<8x8xf32> to vector<1x8x8xf32>
    %854 = vector.shape_cast %699 : vector<8x8xf32> to vector<1x8x8xf32>
    %855 = vector.shape_cast %749 : vector<8x8xf32> to vector<1x8x8xf32>
    %856 = vector.shape_cast %799 : vector<8x8xf32> to vector<1x8x8xf32>
    %857 = vector.shape_cast %849 : vector<8x8xf32> to vector<1x8x8xf32>
    %858 = tpu.concatenate %850, %851, %852, %853, %854, %855, %856, %857 in 0 : vector<1x8x8xf32>, vector<1x8x8xf32>, vector<1x8x8xf32>, vector<1x8x8xf32>, vector<1x8x8xf32>, vector<1x8x8xf32>, vector<1x8x8xf32>, vector<1x8x8xf32> -> vector<8x8x8xf32>
    %c0_275 = arith.constant 0 : index
    %c0_276 = arith.constant 0 : index
    %c0_277 = arith.constant 0 : index
    %c0_278 = arith.constant 0 : index
    %859 = vector.load %arg12[%c0_275, %c0_276, %c0_277, %c0_278] : memref<1x8x8x8xf32, #tpu.memory_space<vmem>>, vector<1x8x8x8xf32>
    %860 = vector.shape_cast %859 : vector<1x8x8x8xf32> to vector<8x8x8xf32>
    %861 = vector.shape_cast %858 : vector<8x8x8xf32> to vector<1x8x8x8xf32>
    tpu.vector_store %arg12[%c0_275, %c0_276, %c0_277, %c0_278], %861 {strides = array<i32>} : memref<1x8x8x8xf32, #tpu.memory_space<vmem>>, vector<1x8x8x8xf32>,
    %862 = arith.truncf %858 : vector<8x8x8xf32> to vector<8x8x8xbf16>
    %c0_279 = arith.constant 0 : index
    %c0_280 = arith.constant 0 : index
    %c0_281 = arith.constant 0 : index
    %863 = vector.load %arg14[%c0_279, %c0_280, %c0_281] : memref<8x8x8xbf16, #tpu.memory_space<vmem>>, vector<8x8x8xbf16>
    "tpu.trace_start"() <{level = 10 : i32, message = "hqk,hkd->hqd"}> : () -> ()
    %cst_282 = arith.constant dense<0.000000e+00> : vector<8x8x8xf32>
    %864 = tpu.matmul %862, %863, %cst_282 {dimension_numbers = #tpu.dot_dimension_numbers<[2], [1], [1], [2], [0, 0, 0, 1, 1, 2], [0], [0]>} : vector<8x8x8xbf16>, vector<8x8x8xbf16>, vector<8x8x8xf32> -> vector<8x8x8xf32>
    "tpu.trace_stop"() : () -> ()
    %865 = arith.truncf %864 : vector<8x8x8xf32> to vector<8x8x8xbf16>
    %866 = vector.extract_strided_slice %865 {offsets = [0, 0, 0], sizes = [1, 8, 8], strides = [1, 1, 1]} : vector<8x8x8xbf16> to vector<1x8x8xbf16>
    %867 = vector.shape_cast %866 : vector<1x8x8xbf16> to vector<8x8xbf16>
    %868 = vector.extract_strided_slice %865 {offsets = [1, 0, 0], sizes = [1, 8, 8], strides = [1, 1, 1]} : vector<8x8x8xbf16> to vector<1x8x8xbf16>
    %869 = vector.shape_cast %868 : vector<1x8x8xbf16> to vector<8x8xbf16>
    %870 = vector.extract_strided_slice %865 {offsets = [2, 0, 0], sizes = [1, 8, 8], strides = [1, 1, 1]} : vector<8x8x8xbf16> to vector<1x8x8xbf16>
    %871 = vector.shape_cast %870 : vector<1x8x8xbf16> to vector<8x8xbf16>
    %872 = vector.extract_strided_slice %865 {offsets = [3, 0, 0], sizes = [1, 8, 8], strides = [1, 1, 1]} : vector<8x8x8xbf16> to vector<1x8x8xbf16>
    %873 = vector.shape_cast %872 : vector<1x8x8xbf16> to vector<8x8xbf16>
    %874 = vector.extract_strided_slice %865 {offsets = [4, 0, 0], sizes = [1, 8, 8], strides = [1, 1, 1]} : vector<8x8x8xbf16> to vector<1x8x8xbf16>
    %875 = vector.shape_cast %874 : vector<1x8x8xbf16> to vector<8x8xbf16>
    %876 = vector.extract_strided_slice %865 {offsets = [5, 0, 0], sizes = [1, 8, 8], strides = [1, 1, 1]} : vector<8x8x8xbf16> to vector<1x8x8xbf16>
    %877 = vector.shape_cast %876 : vector<1x8x8xbf16> to vector<8x8xbf16>
    %878 = vector.extract_strided_slice %865 {offsets = [6, 0, 0], sizes = [1, 8, 8], strides = [1, 1, 1]} : vector<8x8x8xbf16> to vector<1x8x8xbf16>
    %879 = vector.shape_cast %878 : vector<1x8x8xbf16> to vector<8x8xbf16>
    %880 = vector.extract_strided_slice %865 {offsets = [7, 0, 0], sizes = [1, 8, 8], strides = [1, 1, 1]} : vector<8x8x8xbf16> to vector<1x8x8xbf16>
    %881 = vector.shape_cast %880 : vector<1x8x8xbf16> to vector<8x8xbf16>
    %882 = tpu.concatenate %867, %869, %871, %873, %875, %877, %879, %881 in 1 : vector<8x8xbf16>, vector<8x8xbf16>, vector<8x8xbf16>, vector<8x8xbf16>, vector<8x8xbf16>, vector<8x8xbf16>, vector<8x8xbf16>, vector<8x8xbf16> -> vector<8x64xbf16>
    %c0_283 = arith.constant 0 : index
    %c0_284 = arith.constant 0 : index
    %883 = vector.load %arg5[%c0_283, %c0_284] : memref<64x64xbf16, #tpu.memory_space<vmem>>, vector<64x64xbf16>
    %cst_285 = arith.constant dense<0.000000e+00> : vector<8x64xf32>
    %884 = tpu.matmul %882, %883, %cst_285 {dimension_numbers = #tpu.dot_dimension_numbers<[1], [0], [0], [1], [0, 0, 1, 1], [], []>} : vector<8x64xbf16>, vector<64x64xbf16>, vector<8x64xf32> -> vector<8x64xf32>
    %c0_286 = arith.constant 0 : index
    %c0_287 = arith.constant 0 : index
    %885 = vector.load %arg6[%c0_286, %c0_287] : memref<1x64xf32, #tpu.memory_space<vmem>>, vector<1x64xf32>
    %886 = vector.broadcast %885 : vector<1x64xf32> to vector<8x64xf32>
    %887 = arith.addf %884, %886 : vector<8x64xf32>
    %c0_288 = arith.constant 0 : index
    %c0_289 = arith.constant 0 : index
    %c0_290 = arith.constant 0 : index
    %888 = vector.load %arg11[%c0_288, %c0_289, %c0_290] : memref<1x8x64xf32, #tpu.memory_space<vmem>>, vector<1x8x64xf32>
    %889 = vector.shape_cast %888 : vector<1x8x64xf32> to vector<8x64xf32>
    %890 = vector.shape_cast %887 : vector<8x64xf32> to vector<1x8x64xf32>
    tpu.vector_store %arg11[%c0_288, %c0_289, %c0_290], %890 {strides = array<i32>} : memref<1x8x64xf32, #tpu.memory_space<vmem>>, vector<1x8x64xf32>,
    return
  }
  func.func @transform_0(%arg0: i32, %arg1: i32) -> (i32, i32, i32) {
    %c0_i32 = arith.constant 0 : i32
    %c0_i32_0 = arith.constant 0 : i32
    %c0_i32_1 = arith.constant 0 : i32
    return %arg0, %c0_i32, %c0_i32_0 : i32, i32, i32
  }
  func.func @transform_1(%arg0: i32, %arg1: i32) -> (i32, i32) {
    %c0_i32 = arith.constant 0 : i32
    %c0_i32_0 = arith.constant 0 : i32
    %c0_i32_1 = arith.constant 0 : i32
    return %c0_i32, %c0_i32_0 : i32, i32
  }
  func.func @transform_2(%arg0: i32, %arg1: i32) -> (i32, i32) {
    %c0_i32 = arith.constant 0 : i32
    %c0_i32_0 = arith.constant 0 : i32
    %c0_i32_1 = arith.constant 0 : i32
    return %c0_i32, %c0_i32_0 : i32, i32
  }
  func.func @transform_3(%arg0: i32, %arg1: i32) -> (i32, i32) {
    %c0_i32 = arith.constant 0 : i32
    %c0_i32_0 = arith.constant 0 : i32
    %c0_i32_1 = arith.constant 0 : i32
    return %c0_i32, %c0_i32_0 : i32, i32
  }
  func.func @transform_4(%arg0: i32, %arg1: i32) -> (i32, i32) {
    %c0_i32 = arith.constant 0 : i32
    %c0_i32_0 = arith.constant 0 : i32
    %c0_i32_1 = arith.constant 0 : i32
    return %c0_i32, %c0_i32_0 : i32, i32
  }
  func.func @transform_5(%arg0: i32, %arg1: i32) -> (i32, i32) {
    %c0_i32 = arith.constant 0 : i32
    %c0_i32_0 = arith.constant 0 : i32
    %c0_i32_1 = arith.constant 0 : i32
    return %c0_i32, %c0_i32_0 : i32, i32
  }
  func.func @transform_6(%arg0: i32, %arg1: i32) -> i32 {
    %c0_i32 = arith.constant 0 : i32
    %c0_i32_0 = arith.constant 0 : i32
    return %c0_i32 : i32
  }
  func.func @transform_7(%arg0: i32, %arg1: i32) -> (i32, i32) {
    %c0_i32 = arith.constant 0 : i32
    %c0_i32_0 = arith.constant 0 : i32
    %c0_i32_1 = arith.constant 0 : i32
    return %c0_i32, %c0_i32_0 : i32, i32
  }
  func.func @transform_8(%arg0: i32, %arg1: i32) -> i32 {
    %c0_i32 = arith.constant 0 : i32
    %c0_i32_0 = arith.constant 0 : i32
    return %c0_i32 : i32
  }
  func.func @transform_9(%arg0: i32, %arg1: i32) -> (i32, i32, i32) {
    %c0_i32 = arith.constant 0 : i32
    %c0_i32_0 = arith.constant 0 : i32
    return %arg0, %arg1, %c0_i32 : i32, i32, i32
  }
  func.func @transform_10(%arg0: i32, %arg1: i32) -> (i32, i32, i32, i32) {
    %c0_i32 = arith.constant 0 : i32
    %c0_i32_0 = arith.constant 0 : i32
    %c0_i32_1 = arith.constant 0 : i32
    return %arg0, %c0_i32, %arg1, %c0_i32_0 : i32, i32, i32, i32
  }
}

</mosaic_0001>

<bundles_post_ra>
// kernel: tpu_custom_call.1
= control target key start
LH: loop header
LB: loop body
LE: loop exit
PB: predicated region body
PF: predicated region fallthrough
CT: control target
= control target key end

     0   :  { %s4890_s0 = inlined_call_operand.hbm [shape: f32[2,8,64], index: 0, kind: input, shape index: {}]   ;;  %s4891_s1 = inlined_call_operand.hbm [shape: bf16[64,64], index: 1, kind: input, shape index: {}]   ;;  %s4892_s2 = inlined_call_operand.hbm [shape: bf16[64,128], index: 2, kind: input, shape index: {}]   ;;  %s4893_s3 = inlined_call_operand.hbm [shape: bf16[64,64], index: 3, kind: input, shape index: {}]   ;;  %s4894_s4 = inlined_call_operand.vmem [shape: f32[1,64], index: 4, kind: input, shape index: {}]   ;;  %s4895_s5 = inlined_call_operand.vmem [shape: f32[8,8], index: 5, kind: input, shape index: {}]   ;;  %s4896_s6 = inlined_call_operand.vmem [shape: f32[8], index: 6, kind: input, shape index: {}]   ;;  %s4897_s7 = inlined_call_operand.vmem [shape: f32[8,8], index: 7, kind: input, shape index: {}]   ;;  %s4898_s8 = inlined_call_operand.vmem [shape: f32[8], index: 8, kind: input, shape index: {}]   ;;  %s4899_s9 = inlined_call_operand.hbm [shape: f32[2,8,64], index: 9, kind: output, shape index: {0}]   ;;  %s4900_s10 = inlined_call_operand.hbm [shape: f32[2,8,8,8], index: 10, kind: output, shape index: {1}]  }
   0x1   :  { %5020 = sst [smem:[#allocation85_spill]] %s4890_s0 }
   0x2   :  { %5021 = sst [smem:[#allocation86_spill]] %s4891_s1 }
   0x3   :  { %5022 = sst [smem:[#allocation87_spill]] %s4892_s2 }
   0x4   :  { %5023 = sst [smem:[#allocation88_spill]] %s4893_s3 }
   0x5   :  { %5024 = sst [smem:[#allocation89_spill]] %s4894_s4 }
   0x6   :  { %5025 = sst [smem:[#allocation90_spill]] %s4895_s5 }
   0x7   :  { %5026 = sst [smem:[#allocation91_spill]] %s4896_s6 }
   0x8   :  { %5027 = sst [smem:[#allocation92_spill]] %s4897_s7 }
   0x9   :  { %5028 = sst [smem:[#allocation93_spill]] %s4898_s8 }
   0xa   :  { %5029 = sst [smem:[#allocation94_spill]] %s4899_s9 }
   0xb   :  { %5030 = sst [smem:[#allocation95_spill]] %s4900_s10 }
   0xc   :  { %16 = vsyncpa [#allocation5], 0 }
   0xd   :  { %18 = vsyncpa [#allocation5 + $0x1], 0 }
   0xe   :  { %19 = vsyncpa [#allocation9], 0 }
   0xf   :  { %20 = vsyncpa [#allocation12], 0 }
  0x10   :  { %21 = vsyncpa [#allocation7], 0 }
  0x11   :  { %22 = vsyncpa [#allocation15], 0 }
  0x12   :  { %23 = vsyncpa [#allocation18], 0 }
  0x13   :  { %24 = vsyncpa [#allocation6], 0 }
  0x14   :  { %26 = vsyncpa [#allocation6 + $0x1], 0 }
  0x15   :  { %27 = vsyncpa [#allocation21], 0 }
  0x16   :  { %29 = vsyncpa [#allocation21 + $0x1], 0  ;;  %s3502_s13 = smov 0   ;;  %s3504_s14 = smov 0  }
  0x17   :  { %s3506_s15 = smov 0   ;;  %s3508_s16 = smov 0  }
  0x18   :  { %s3510_s17 = smov 0   ;;  %s3512_s18 = smov 0  }
  0x19 LB: > { %5031 = sst [smem:[#allocation30_spill]] %s3395_s13  ;;  %s4901_s19 = sadd.s32 4294967295, %s3415_s18   ;;  %s3415_s18 = sphi %s3512_s18, %s35_s18   ;;  %s3411_s17 = sphi %s3510_s17, %s5335_s17   ;;  %s3407_s16 = sphi %s3508_s16, %s5334_s16   ;;  %s3403_s15 = sphi %s3506_s15, %s5333_s15   ;;  %s3399_s14 = sphi %s3504_s14, %s5332_s14   ;;  %s3395_s13 = sphi %s3502_s13, %s5331_s13  }
  0x1a   : > { %5032 = sst [smem:[#allocation31_spill]] %s3399_s14  ;;  %p2515_p0 = scmp.ge.s32.totalorder %s3415_s18, 1 }
  0x1b   : > { %5033 = sst [smem:[#allocation32_spill]] %s3403_s15  ;;  %p3536_p1 = scmp.eq.s32.totalorder %s4901_s19, 0 }
  0x1c   : > { %5034 = sst [smem:[#allocation33_spill]] %s3407_s16  ;;  %p302_p2 = scmp.lt.s32.totalorder %s3415_s18, 3 }
  0x1d   : > { %5035 = sst [smem:[#allocation34_spill]] %s3411_s17  ;;  %s3417_s22 = smov [#allocation8]  }
  0x1e   : > { %5036 = sst [smem:[#allocation35_spill]] %s3415_s18  ;;  %p3541_p3 = pnand %p2515_p0, %p302_p2 }
  0x1f   : > { %s5037_s20 = scalar_select %p3536_p1, 1, 0 }
  0x20   : > { %s5038_s21 = scalar_select %p3541_p3, 1, 0 }
  0x21   : > { %s314_s23 = sshll.u32 %s3417_s22, 4  ;;  %p2939_p4 = pneg %p3541_p3  ;;  %s3545_s23 = int_to_ptr.vmem [resolvable:$true] %s314_s23 }
  0x22   : > { %s5039_s6 = sld [smem:[#allocation91_spill]]  ;;  %s3418_s28 = smov [#allocation10]  }
  0x23   : > { %p3555_p6 = pnand %p2939_p4, %p3536_p1  ;;  %s3561_s29 = sshll.u32 %s3418_s28, 4  ;;  %s328_s29 = int_to_ptr.vmem [resolvable:$true] %s3561_s29 }
  0x24   : > { %s5041_s1 = sld [smem:[#allocation86_spill]] }
  0x25   : > { %p3571_p8 = pneg %p3555_p6 }
  0x28   : > { %s368_s26 = sshll.u32 %s5039_s6, 4  ;;  %s3559_s26 = int_to_ptr.vmem [resolvable:$true] %s368_s26 }
  0x2a   : > { %s3107_s12 = scalar_lea.hbm %s5041_s1, 512 }
  0x2b   : > { %p3108_p7 = scmp.ne.s32.totalorder %s5041_s1, %s3107_s12  ;;  %p3114_p11 = scmp.lt.u32.totalorder %s3107_s12, %s5041_s1 }
  0x2d   : > { %p3110_p9 = pnand %p3571_p8, %p3108_p7 }
  0x2f   : > { %p3111_p10 = pneg %p3110_p9 }
  0x31   : > { %p3116_p12 = pnand %p3114_p11, %p3111_p10 }
  0x33   : > { %3119 = shalt.err (!%p3116_p12)
}
  0x34   : > { %s3120_s19 = scalar_lea.vmem %s3545_s23, 512  ;;  %p3128_p4 = scmp.lt.s32.totalorder %s3545_s23, %s3545_s23 }
  0x35   : > { %p3121_p13 = scmp.ne.s32.totalorder %s3545_s23, %s3120_s19  ;;  %p3129_p5 = scmp.lt.s32.totalorder %s3120_s19, %s3120_s19 }
  0x37   : > { %p3123_p0 = pnand %p3121_p13, %p3571_p8  ;;  %p3130_p7 = por %p3129_p5, %p3128_p4 }
  0x39   : > { %p3124_p2 = pneg %p3123_p0 }
  0x3b   : > { %p3131_p9 = pnand %p3130_p7, %p3124_p2 }
  0x3d   : > { %3134 = shalt.err (!%p3131_p9)
}
  0x3e   : > { %s4902_s30 = smov 64   ;;  %s4904_s11 = smov 4  }
  0x3f   : > { %2942 = dma.hbm_to_vmem [thread:$0]  (!%p3555_p6), %s5041_s1, 512, %s3545_s23, [#allocation9], %s4902_s30, %s4902_s30, %s4904_s11  }
  0x40   : > { %s3135_s25 = scalar_lea.vmem %s3559_s26, 16  ;;  %p3143_p12 = scmp.lt.s32.totalorder %s3559_s26, %s3559_s26 }
  0x41   : > { %p3136_p5 = scmp.ne.s32.totalorder %s3559_s26, %s3135_s25  ;;  %p3144_p13 = scmp.lt.s32.totalorder %s3135_s25, %s3135_s25 }
  0x43   : > { %p3138_p10 = pnand %p3136_p5, %p3571_p8  ;;  %p3145_p0 = por %p3144_p13, %p3143_p12 }
  0x45   : > { %p3139_p11 = pneg %p3138_p10 }
  0x47   : > { %p3146_p2 = pnand %p3145_p0, %p3139_p11 }
  0x49   : > { %3149 = shalt.err (!%p3146_p2)
}
  0x4a   : > { %s3421_s28 = smov [#allocation14]   ;;  %s5043_s2 = sld [smem:[#allocation87_spill]] }
  0x4b   : > { %2954 = dma.vmem_to_smem (!%p3555_p6), %s3559_s26, 16, %s3421_s28, [#allocation15]  }
  0x50   : > { %s3150_s12 = scalar_lea.hbm %s5043_s2, 512 }
  0x51   : > { %p3151_p4 = scmp.ne.s32.totalorder %s5043_s2, %s3150_s12  ;;  %p3157_p5 = scmp.lt.u32.totalorder %s3150_s12, %s5043_s2 }
  0x53   : > { %p3153_p7 = pnand %p3151_p4, %p3571_p8 }
  0x55   : > { %p3154_p9 = pneg %p3153_p7 }
  0x57   : > { %p3159_p10 = pnand %p3157_p5, %p3154_p9 }
  0x59   : > { %3162 = shalt.err (!%p3159_p10)
}
  0x5a   : > { %s3163_s1 = scalar_lea.vmem %s328_s29, 512  ;;  %p3171_p0 = scmp.lt.s32.totalorder %s328_s29, %s328_s29 }
  0x5b   : > { %p3164_p11 = scmp.ne.s32.totalorder %s328_s29, %s3163_s1  ;;  %p3172_p2 = scmp.lt.s32.totalorder %s3163_s1, %s3163_s1 }
  0x5d   : > { %p3166_p12 = pnand %p3164_p11, %p3571_p8  ;;  %p3173_p3 = por %p3172_p2, %p3171_p0 }
  0x5f   : > { %p3167_p13 = pneg %p3166_p12 }
  0x61   : > { %p3174_p1 = pnand %p3173_p3, %p3167_p13 }
  0x63   : > { %3177 = shalt.err (!%p3174_p1)
}
  0x64   : > { %s5044_s26 = smov 4   ;;  %s5045_s30 = smov 64  }
  0x65   : > { %2945 = dma.hbm_to_vmem [thread:$0]  (!%p3555_p6), %s5043_s2, 512, %s328_s29, [#allocation9], %s5045_s30, %s5045_s30, %s5044_s26  }
  0x66   : > { %s3422_s23 = smov [#allocation11]   ;;  %s5046_s5 = sld [smem:[#allocation90_spill]] }
  0x67   : > { %s340_s19 = sshll.u32 %s3422_s23, 4  ;;  %s5047_s3 = sld [smem:[#allocation88_spill]]  ;;  %s341_s19 = int_to_ptr.vmem [resolvable:$true] %s340_s19 }
  0x6c   : > { %s357_s25 = sshll.u32 %s5046_s5, 4  ;;  %s3629_s25 = int_to_ptr.vmem [resolvable:$true] %s357_s25 }
  0x6d   : > { %s3178_s9 = scalar_lea.hbm %s5047_s3, 512 }
  0x6e   : > { %p3179_p1 = scmp.ne.s32.totalorder %s5047_s3, %s3178_s9  ;;  %p3185_p7 = scmp.lt.u32.totalorder %s3178_s9, %s5047_s3 }
  0x70   : > { %p3181_p3 = pnand %p3179_p1, %p3571_p8 }
  0x72   : > { %p3182_p4 = pneg %p3181_p3 }
  0x74   : > { %p3187_p9 = pnand %p3185_p7, %p3182_p4 }
  0x76   : > { %3190 = shalt.err (!%p3187_p9)
}
  0x77   : > { %s3191_s28 = scalar_lea.vmem %s341_s19, 512  ;;  %p3199_p12 = scmp.lt.s32.totalorder %s341_s19, %s341_s19 }
  0x78   : > { %p3192_p5 = scmp.ne.s32.totalorder %s341_s19, %s3191_s28  ;;  %p3200_p13 = scmp.lt.s32.totalorder %s3191_s28, %s3191_s28 }
  0x7a   : > { %p3194_p10 = pnand %p3192_p5, %p3571_p8  ;;  %p3201_p0 = por %p3200_p13, %p3199_p12 }
  0x7c   : > { %p3195_p11 = pneg %p3194_p10 }
  0x7e   : > { %p3202_p2 = pnand %p3201_p0, %p3195_p11 }
  0x80   : > { %3205 = shalt.err (!%p3202_p2)
}
  0x81   : > { %2948 = dma.hbm_to_vmem [thread:$0]  (!%p3555_p6), %s5047_s3, 512, %s341_s19, [#allocation12], %s5045_s30, %s5045_s30, %s5044_s26  }
  0x82   : > { %s5048_s7 = sld [smem:[#allocation92_spill]]  ;;  %s3206_s12 = scalar_lea.vmem %s3629_s25, 128 }
  0x83   : > { %p3207_p1 = scmp.ne.s32.totalorder %s3629_s25, %s3206_s12  ;;  %p3214_p7 = scmp.lt.s32.totalorder %s3629_s25, %s3629_s25 }
  0x84   : > { %p3215_p9 = scmp.lt.s32.totalorder %s3206_s12, %s3206_s12 }
  0x85   : > { %p3209_p3 = pnand %p3207_p1, %p3571_p8 }
  0x86   : > { %p3216_p5 = por %p3215_p9, %p3214_p7 }
  0x87   : > { %p3210_p4 = pneg %p3209_p3 }
  0x88   : > { %s379_s23 = sshll.u32 %s5048_s7, 4  ;;  %s380_s23 = int_to_ptr.vmem [resolvable:$true] %s379_s23 }
  0x89   : > { %p3217_p10 = pnand %p3216_p5, %p3210_p4 }
  0x8b   : > { %3220 = shalt.err (!%p3217_p10)
}
  0x8c   : > { %s3423_s22 = smov [#allocation13]   ;;  %s3221_s26 = scalar_lea.vmem %s380_s23, 128 }
  0x8d   : > { %2951 = dma.vmem_to_smem (!%p3555_p6), %s3629_s25, 128, %s3423_s22, [#allocation7]  }
  0x8e   : > { %p3222_p11 = scmp.ne.s32.totalorder %s380_s23, %s3221_s26  ;;  %p3229_p0 = scmp.lt.s32.totalorder %s380_s23, %s380_s23 }
  0x8f   : > { %p3230_p2 = scmp.lt.s32.totalorder %s3221_s26, %s3221_s26 }
  0x90   : > { %p3224_p12 = pnand %p3222_p11, %p3571_p8 }
  0x91   : > { %p3231_p1 = por %p3230_p2, %p3229_p0 }
  0x92   : > { %p3225_p13 = pneg %p3224_p12 }
  0x94   : > { %p3232_p3 = pnand %p3231_p1, %p3225_p13 }
  0x96   : > { %3235 = shalt.err (!%p3232_p3)
}
  0x97   : > { %s3424_s30 = smov [#allocation16]   ;;  %s5049_s8 = sld [smem:[#allocation93_spill]] }
  0x98   : > { %2957 = dma.vmem_to_smem (!%p3555_p6), %s380_s23, 128, %s3424_s30, [#allocation15]  }
  0x9d   : > { %s390_s25 = sshll.u32 %s5049_s8, 4  ;;  %s391_s25 = int_to_ptr.vmem [resolvable:$true] %s390_s25 }
  0x9e   : > { %s3236_s29 = scalar_lea.vmem %s391_s25, 16  ;;  %p3244_p5 = scmp.lt.s32.totalorder %s391_s25, %s391_s25 }
  0x9f   : > { %p3237_p4 = scmp.ne.s32.totalorder %s391_s25, %s3236_s29  ;;  %p3245_p10 = scmp.lt.s32.totalorder %s3236_s29, %s3236_s29 }
  0xa1   : > { %p3239_p7 = pnand %p3237_p4, %p3571_p8  ;;  %p3246_p11 = por %p3245_p10, %p3244_p5 }
  0xa3   : > { %p3240_p9 = pneg %p3239_p7 }
  0xa5   : > { %p3247_p12 = pnand %p3246_p11, %p3240_p9 }
  0xa7   : > { %3250 = shalt.err (!%p3247_p12)
}
  0xa8   : > { %s3425_s11 = smov [#allocation17]   ;;  %s2514_s24 = sadd.s32 4294967294, %s3415_s18  }
  0xa9   : > { %2960 = dma.vmem_to_smem (!%p3555_p6), %s391_s25, 16, %s3425_s11, [#allocation18]  }
  0xaa   : > { %s47_s28 = sadd.s32 1, %s3411_s17  ;;  %s54_s4 = sadd.s32 1, %s3403_s15 }
  0xab   : > { %p49_p8 = scmp.ge.s32.totalorder %s47_s28, 2  ;;  %p61_p13 = scmp.ne.s32.totalorder %s3403_s15, %s3399_s14 }
  0xac   : > { %p62_p0 = scmp.eq.s32.totalorder %s3415_s18, 0  ;;  %p67_p2 = scmp.ne.s32.totalorder %s3399_s14, %s3395_s13 }
  0xad   : > { %s5337_s28 = smov (%p49_p8, %s47_s28), 0  ;;  %p5052_p3 = scmp.ne.s32.totalorder %s5037_s20, 0 }
  0xae   : > { %5050 = sst [smem:[#allocation36_spill]] %s5337_s28  ;;  %p3685_p1 = por %p62_p0, %p61_p13 }
  0xaf   : > { %p3691_p6 = por %p5052_p3, %p67_p2  ;;  %s51_s9 = ssub.s32 %s3411_s17, %s5337_s28 }
  0xb0   : > { %s5054_s10 = sadd.s32 4294967295, %s3415_s18   ;;  %p52_p7 = scmp.eq.s32.totalorder %s51_s9, 0 }
  0xb1   : > { %p261_p4 = scmp.eq.s32.totalorder %s5054_s10, 1  ;;  %p267_p9 = scmp.eq.s32.totalorder %s2514_s24, 1 }
  0xb2   : > { %p2979_p10 = scmp.lt.s32.totalorder %s3415_s18, 2  ;;  %s401_s26 = sand.u32 1, %s3403_s15  }
  0xb3   : > { %p3699_p5 = por %p261_p4, %p61_p13  ;;  %p3707_p11 = por %p267_p9, %p67_p2 }
  0xb4   : > { %s3705_s12 = scalar_select %p52_p7, %s3403_s15, %s54_s4  }
  0xb5   : > { %s5055_s23 = scalar_select %p3699_p5, 1, 0 }
  0xb6   : > { %5057 = sst [smem:[#allocation38_spill]] %s3705_s12  ;;  %s2524_s30 = sshll.u32 %s401_s26, 3 }
  0xb7   : > { %5056 = sst [smem:[#allocation37_spill]] %s5055_s23  ;;  %s2525_s19 = sshll.u32 %s3411_s17, 7 }
  0xb8   : > { %s5058_s22 = scalar_select %p3707_p11, 1, 0 }
  0xb9   : > { %s5060_s0 = sld [smem:[#allocation85_spill]]  ;;  %s405_s11 = scalar_lea.vmem [#allocation4], %s2524_s30 }
  0xba   : > { %5059 = sst [smem:[#allocation39_spill]] %s5058_s22  ;;  %s412_s24 = sshll.u32 %s405_s11, 4  ;;  %s3718_s24 = int_to_ptr.vmem [resolvable:$true] %s412_s24 }
  0xbb   : > { %p3722_p12 = pnand %p2979_p10, %p3685_p1  ;;  %s402_s9 = scalar_lea.sflag [#allocation5], %s401_s26 }
  0xbd   : > { %p3253_p13 = pneg %p3722_p12 }
  0xbf   : > { %s3716_s29 = scalar_lea.hbm %s5060_s0, %s2525_s19  ;;  %s3256_s1 = scalar_lea.hbm %s5060_s0, 256 }
  0xc0   : > { %s3251_s10 = scalar_lea.hbm %s3716_s29, 128  ;;  %p3257_p1 = scmp.lt.u32.totalorder %s3716_s29, %s5060_s0 }
  0xc1   : > { %p3252_p8 = scmp.ne.s32.totalorder %s3716_s29, %s3251_s10  ;;  %p3258_p3 = scmp.lt.u32.totalorder %s3256_s1, %s3251_s10 }
  0xc2   : > { %p3260_p7 = scmp.lt.u32.totalorder %s3251_s10, %s3716_s29 }
  0xc3   : > { %p3254_p0 = pnand %p3253_p13, %p3252_p8  ;;  %p3259_p4 = por %p3258_p3, %p3257_p1 }
  0xc5   : > { %p3255_p2 = pneg %p3254_p0  ;;  %p3261_p9 = por %p3260_p7, %p3259_p4 }
  0xc7   : > { %p3262_p10 = pnand %p3261_p9, %p3255_p2 }
  0xc9   : > { %3265 = shalt.err (!%p3262_p10)
}
  0xca   : > { %s3266_s26 = scalar_lea.vmem %s3718_s24, 128  ;;  %s3426_s11 = smov [#allocation4]  }
  0xcb   : > { %p3267_p8 = scmp.ne.s32.totalorder %s3718_s24, %s3266_s26  ;;  %s3271_s30 = sshll.u32 %s3426_s11, 4  ;;  %s3272_s30 = int_to_ptr.vmem [resolvable:$false] %s3271_s30 }
  0xcc   : > { %s3273_s19 = scalar_lea.vmem %s3272_s30, 256  ;;  %p3274_p5 = scmp.lt.s32.totalorder %s3718_s24, %s3272_s30 }
  0xcd   : > { %p3269_p0 = pnand %p3267_p8, %p3253_p13  ;;  %p3275_p1 = scmp.lt.s32.totalorder %s3273_s19, %s3266_s26 }
  0xcf   : > { %p3270_p11 = pneg %p3269_p0  ;;  %p3276_p3 = por %p3275_p1, %p3274_p5 }
  0xd1   : > { %p3277_p4 = pnand %p3276_p3, %p3270_p11 }
  0xd3   : > { %3280 = shalt.err (!%p3277_p4)
}
  0xd4   : > { %2964 = dma.hbm_to_vmem [thread:$0]  (!%p3722_p12), %s3716_s29, 128, %s3718_s24, %s402_s9  }
  0xd5   : > { %p5062_p2 = scmp.ne.s32.totalorder %s5038_s21, 0 }
  0xd7   : > { %421 = sbr.rel (%p5062_p2) target bundleno = 1777 (0x6f1), region = 56 }
  0xde   : > { %s3754_s10 = sand.u32 1, %s3399_s14  }
  0xdf   : > { %5063 = sst [smem:[#allocation40_spill]] %s3754_s10  ;;  %s4912_s1 = sshll.u32 %s3754_s10, 3 }
  0xe0   : > { %s424_s27 = scalar_lea.sflag [#allocation5], %s3754_s10  ;;  %s3760_s25 = scalar_lea.vmem [#allocation4], %s4912_s1 }
  0xe1   : > { %3362 = dma.done.wait (%p3691_p6), %s424_s27, 128  }
  0xe2   : > { %3364 = vsyncadd (%p3691_p6), %s424_s27, 4294967168  ;;  %p5064_p5 = scmp.ne.s32.totalorder %s5037_s20, 0 }
  0xe4   : > { %3366 = dma.done.wait (%p5064_p5), [#allocation9], 1024  }
  0xe5   : > { %3368 = vsyncadd (%p5064_p5), [#allocation9], 4294966272 }
  0xe6   : > { %3370 = dma.done.wait (%p5064_p5), [#allocation12], 512  }
  0xe7   : > { %3372 = vsyncadd (%p5064_p5), [#allocation12], 4294966784 }
  0xe8   : > { %3374 = dma.done.wait (%p5064_p5), [#allocation7], 128  }
  0xe9   : > { %3376 = vsyncadd (%p5064_p5), [#allocation7], 4294967168 }
  0xea   : > { %3378 = dma.done.wait (%p5064_p5), [#allocation15], 144  }
  0xeb   : > { %3380 = vsyncadd (%p5064_p5), [#allocation15], 4294967152 }
  0xec   : > { %3382 = dma.done.wait (%p5064_p5), [#allocation18], 16  }
  0xed   : > { %3384 = vsyncadd (%p5064_p5), [#allocation18], 4294967280 }
  0xee   : > { %460 = sfence }
  0xef   : > { %v3063_v0 = vld [vmem:[#allocation10] sm:$0xff]   ;;  %v4965_v1 = vmov 0.0   ;;  %v3064_v2 = vld [vmem:[#allocation10 + $0x8] sm:$0xff]   ;;  %vm3428_vm0 = vmmov 0   ;;  %v3065_v5 = vld [vmem:[#allocation10 + $0x10] sm:$0xff]   ;;  %vm537_vm1 = vcmask 523264  }
  0xf0   : > { %2773 = vmatprep.subr.bf16.mxu0 %v4965_v1  ;;  %2785 = vmatprep.subr.bf16.mxu1 %v4965_v1  ;;  %v3066_v3 = vld [vmem:[#allocation8] sm:$0xff]   ;;  %v3068_v4 = vld [vmem:[#allocation8 + $0x8] sm:$0xff]   ;;  %v3067_v6 = vld [vmem:[#allocation10 + $0x18] sm:$0xff]   ;;  %vm604_vm2 = vcmask 60416   ;;  %s3429_s20 = smov 104   ;;  %s3430_s21 = smov 120  }
  0xf1   : > { %2774 = vmatpush3.bf16.msra.mxu0 %v3063_v0  ;;  %2781 = vmatprep.mubr.msk.bf16.mxu0 %vm3428_vm0, %v4965_v1  ;;  %v503_v7 = vld [vmem:[%s3760_s25] sm:$0xff]  ;;  %s3431_s6 = smov 96   ;;  %s3432_s29 = smov 112   ;;  %vm765_vm3 = vcmask 64512   ;;  %vm1793_vm4 = vcmask 1043456   ;;  %vm2191_vm5 = vcmask 130048  }
  0xf2   : > { %2775 = vmatprep.subr.bf16.mxu0 %v4965_v1  ;;  %2793 = vmatprep.mubr.msk.bf16.mxu1 %vm3428_vm0, %v4965_v1  ;;  %v3069_v8 = vld [vmem:[#allocation8 + $0x10] sm:$0xff]   ;;  %v504_v9 = vpack.c.bf16 %v503_v7, %v503_v7  ;;  %v3070_v10 = vld [vmem:[#allocation8 + $0x18] sm:$0xff]   ;;  %s3433_s24 = smov 88   ;;  %s3434_s4 = smov 80   ;;  %vm2194_vm6 = vcmask 195584   ;;  %vm2197_vm7 = vcmask 261120  }
  0xf3   : > { %2786 = vmatpush3.bf16.msra.mxu1 %v3066_v3  ;;  %s3435_s9 = smov 72   ;;  %s3888_s26 = sld [smem:[#allocation13 + $0x80]]  ;;  %vm2200_vm8 = vcmask 326656   ;;  %vm2203_vm9 = vcmask 392192   ;;  %vm2206_vm10 = vcmask 457728  }
  0xf4   : > { %2787 = vmatprep.subr.bf16.mxu1 %v4965_v1  ;;  %s3890_s11 = sld [smem:[#allocation13]]  ;;  %s3914_s1 = sld [smem:[#allocation13 + $0x181]] }
  0xf5   : > { %2776 = vmatpush3.bf16.msra.mxu0 %v3064_v2  ;;  %s3892_s30 = sld [smem:[#allocation13 + $0x200]]  ;;  %s3916_s0 = sld [smem:[#allocation13 + $0x281]] }
  0xf6   : > { %2777 = vmatprep.subr.bf16.mxu0 %v4965_v1  ;;  %s3894_s19 = sld [smem:[#allocation13 + $0x100]]  ;;  %s3918_s2 = sld [smem:[#allocation13 + $0x381]] }
  0xf7   : > { %2788 = vmatpush3.bf16.msra.mxu1 %v3068_v4  ;;  %s3896_s27 = sld [smem:[#allocation13 + $0x300]]  ;;  %s3920_s3 = sld [smem:[#allocation13 + $0x82]] }
  0xf8   : > { %2789 = vmatprep.subr.bf16.mxu1 %v4965_v1  ;;  %s3898_s25 = sld [smem:[#allocation13 + $0x180]]  ;;  %s3922_s5 = sld [smem:[#allocation13 + $0x2]] }
  0xf9   : > { %2778 = vmatpush3.bf16.msra.mxu0 %v3065_v5  ;;  %s3924_s7 = sld [smem:[#allocation13 + $0x202]]  ;;  %s3936_s14 = sld [smem:[#allocation13 + $0x83]]  ;;  %v1169_v55 = vstv %s3888_s26 }
  0xfa   : > { %2779 = vmatprep.subr.bf16.mxu0 %v4965_v1  ;;  %5070 = sst [smem:[#allocation46_spill]] %s3914_s1  ;;  %s3926_s8 = sld [smem:[#allocation13 + $0x102]]  ;;  %v1135_v56 = vstv %s3890_s11  ;;  %v1240_v5 = vstv %s3914_s1 }
  0xfb   : > { %2790 = vmatpush3.bf16.msra.mxu1 %v3069_v8  ;;  %5071 = sst [smem:[#allocation47_spill]] %s3916_s0  ;;  %s3928_s28 = sld [smem:[#allocation13 + $0x302]]  ;;  %v1271_v57 = vstv %s3892_s30 }
  0xfc   : > { %2791 = vmatprep.subr.bf16.mxu1 %v4965_v1  ;;  %5072 = sst [smem:[#allocation48_spill]] %s3918_s2  ;;  %s3938_s18 = sld [smem:[#allocation13 + $0x3]]  ;;  %v1203_v58 = vstv %s3894_s19  ;;  %v1376_v7 = vstv %s3918_s2 }
  0xfd   : > { %2780 = vmatpush3.bf16.msra.mxu0 %v3067_v6  ;;  %5073 = sst [smem:[#allocation49_spill]] %s3920_s3  ;;  %s3930_s17 = sld [smem:[#allocation13 + $0x182]]  ;;  %v1339_v59 = vstv %s3896_s27  ;;  %v1308_v6 = vstv %s3916_s0  ;;  %v1176_v8 = vstv %s3920_s3 }
  0xfe   : > { %2809 = vmatprep.subr.bf16.mxu0 %v4965_v1  ;;  %5074 = sst [smem:[#allocation50_spill]] %s3922_s5  ;;  %s3932_s12 = sld [smem:[#allocation13 + $0x282]]  ;;  %v1237_v60 = vstv %s3898_s25 }
  0xff   : > { %2792 = vmatpush3.bf16.msra.mxu1 %v3070_v10  ;;  %5075 = sst [smem:[#allocation51_spill]] %s3924_s7  ;;  %s3934_s15 = sld [smem:[#allocation13 + $0x382]]  ;;  %v1278_v10 = vstv %s3924_s7 }
 0x100   : > { %2782 = vmatmul.mubr.msk.bf16.vlgmr.msra.gmra.mrb[0].mxu0 %vm537_vm1, %v504_v9  ;;  %2797 = vmatprep.subr.bf16.mxu1 %v4965_v1  ;;  %5076 = sst [smem:[#allocation52_spill]] %s3926_s8  ;;  %s3940_s22 = sld [smem:[#allocation13 + $0x203]] }
 0x101   : > { %2811 = vmatprep.mubr.msk.bf16.mxu0 %vm3428_vm0, %v4965_v1  ;;  %5077 = sst [smem:[#allocation53_spill]] %s3928_s28  ;;  %s3942_s13 = sld [smem:[#allocation13 + $0x103]] }
 0x102   : > { %2794 = vmatmul.mubr.msk.bf16.vlgmr.msra.gmra.mrb[0].mxu1 %vm537_vm1, %v504_v9  ;;  %5081 = sst [smem:[#allocation57_spill]] %s3936_s14  ;;  %s3954_s14 = sld [smem:[#allocation13 + $0x4]]  ;;  %v1142_v9 = vstv %s3922_s5 }
 0x103   : > { %2799 = vmatprep.mubr.msk.bf16.mxu1 %vm3428_vm0, %v4965_v1  ;;  %5078 = sst [smem:[#allocation54_spill]] %s3930_s17  ;;  %s3944_s23 = sld [smem:[#allocation13 + $0x303]] }
 0x104   : > { %5079 = sst [smem:[#allocation55_spill]] %s3932_s12  ;;  %s3946_s16 = sld [smem:[#allocation13 + $0x183]] }
 0x105   : > { %5080 = sst [smem:[#allocation56_spill]] %s3934_s15  ;;  %s3948_s10 = sld [smem:[#allocation13 + $0x283]] }
 0x106   : > { %5082 = sst [smem:[#allocation58_spill]] %s3938_s18  ;;  %s3950_s17 = sld [smem:[#allocation13 + $0x383]] }
 0x107   : > { %5083 = sst [smem:[#allocation59_spill]] %s3940_s22  ;;  %s3952_s12 = sld [smem:[#allocation13 + $0x84]] }
 0x108   : > { %5084 = sst [smem:[#allocation60_spill]] %s3942_s13  ;;  %s3956_s18 = sld [smem:[#allocation13 + $0x204]] }
 0x109   : > { %5085 = sst [smem:[#allocation61_spill]] %s3944_s23  ;;  %s3958_s22 = sld [smem:[#allocation13 + $0x104]] }
 0x10a   : > { %5086 = sst [smem:[#allocation62_spill]] %s3946_s16  ;;  %s3960_s13 = sld [smem:[#allocation13 + $0x304]] }
 0x10b   : > { %5087 = sst [smem:[#allocation63_spill]] %s3948_s10  ;;  %s3962_s23 = sld [smem:[#allocation13 + $0x184]] }
 0x10c   : > { %5088 = sst [smem:[#allocation64_spill]] %s3950_s17  ;;  %s3964_s16 = sld [smem:[#allocation13 + $0x284]] }
 0x10d   : > { %5089 = sst [smem:[#allocation65_spill]] %s3952_s12  ;;  %s3966_s10 = sld [smem:[#allocation13 + $0x384]] }
 0x10e   : > { %5090 = sst [smem:[#allocation66_spill]] %s3954_s14  ;;  %s3968_s17 = sld [smem:[#allocation13 + $0x85]] }
 0x10f   : > { %5091 = sst [smem:[#allocation67_spill]] %s3956_s18  ;;  %s3999_s26 = sld [smem:[#allocation13 + $0x206]] }
 0x110   : > { %5092 = sst [smem:[#allocation68_spill]] %s3958_s22  ;;  %s3970_s12 = sld [smem:[#allocation13 + $0x5]] }
 0x111   : > { %5093 = sst [smem:[#allocation69_spill]] %s3960_s13  ;;  %s3972_s14 = sld [smem:[#allocation13 + $0x205]] }
 0x112   : > { %5094 = sst [smem:[#allocation70_spill]] %s3964_s16  ;;  %s3974_s22 = sld [smem:[#allocation13 + $0x105]] }
 0x113   : > { %5095 = sst [smem:[#allocation71_spill]] %s3966_s10  ;;  %s3976_s13 = sld [smem:[#allocation13 + $0x305]] }
 0x114   : > { %s3978_s16 = sld [smem:[#allocation13 + $0x185]]  ;;  %s4002_s11 = sld [smem:[#allocation13 + $0x106]] }
 0x115   : > { %s3984_s10 = sld [smem:[#allocation13 + $0x285]]  ;;  %5104 = sst [smem:[#allocation80_spill]] %s3999_s26 }
 0x116   : > { %5096 = sst [smem:[#allocation72_spill]] %s3970_s12  ;;  %s3986_s12 = sld [smem:[#allocation13 + $0x385]] }
 0x117   : > { %5097 = sst [smem:[#allocation73_spill]] %s3972_s14  ;;  %s3988_s14 = sld [smem:[#allocation13 + $0x86]] }
 0x118   : > { %5098 = sst [smem:[#allocation74_spill]] %s3974_s22  ;;  %s3990_s22 = sld [smem:[#allocation13 + $0x6]] }
 0x119   : > { %5099 = sst [smem:[#allocation75_spill]] %s3976_s13  ;;  %s5106_s30 = sld [smem:[#allocation54_spill]] }
 0x11a   : > { %5100 = sst [smem:[#allocation76_spill]] %s3978_s16  ;;  %s5107_s19 = sld [smem:[#allocation55_spill]] }
 0x11b   : > { %5101 = sst [smem:[#allocation77_spill]] %s3984_s10  ;;  %s4005_s27 = sld [smem:[#allocation13 + $0x306]] }
 0x11c   : > { %5105 = sst [smem:[#allocation81_spill]] %s4002_s11  ;;  %s4018_s11 = sld [smem:[#allocation13 + $0x386]] }
 0x11d   : > { %5102 = sst [smem:[#allocation78_spill]] %s3988_s14  ;;  %s5109_s25 = sld [smem:[#allocation57_spill]] }
 0x11e   : > { %5103 = sst [smem:[#allocation79_spill]] %s3990_s22  ;;  %s4022_s26 = sld [smem:[#allocation13 + $0x7]] }
 0x11f   : > { %s5116_s1 = sld [smem:[#allocation63_spill]]  ;;  %s5118_s0 = sld [smem:[#allocation65_spill]] }
 0x120   : > { %s5119_s3 = sld [smem:[#allocation66_spill]]  ;;  %s5120_s7 = sld [smem:[#allocation68_spill]] }
 0x121   : > { %5108 = sst [smem:[#allocation82_spill]] %s4005_s27  ;;  %s4020_s27 = sld [smem:[#allocation13 + $0x87]] }
 0x122   : > { %s4034_s5 = sld [smem:[#allocation13 + $0x107]]  ;;  %s5164_s14 = sld [smem:[#allocation73_spill]] }
 0x123   : > { %s4037_s2 = sld [smem:[#allocation13 + $0x307]]  ;;  %s5166_s22 = sld [smem:[#allocation75_spill]] }
 0x124   : > { %s4310_s13 = sld [smem:[#allocation16 + $0x82]] }
 0x125   : > { %s4312_s16 = sld [smem:[#allocation16 + $0x102]] }
 0x126   : > { %s4314_s10 = sld [smem:[#allocation16 + $0x182]] }
 0x12a   : > { %5214 = sst [smem:[#allocation47_spill]] %s4310_s13 }
 0x12b   : > { %5215 = sst [smem:[#allocation48_spill]] %s4312_s16 }
 0x12c   : > { %5216 = sst [smem:[#allocation49_spill]] %s4314_s10 }
 0x1d3   : > { %v575_v11 = vpop.f32.mrb[0].mxu0 }
 0x1d4   : > { %v3807_v12 = vpack.c.bf16 %v575_v11, %v575_v11  ;;  %v2783_v13 = vpop.f32.mrb[1].mxu0  ;;  %v1210_v11 = vstv %s3926_s8  ;;  %s4031_s8 = sld [smem:[#allocation13 + $0x207]] }
 0x1d5   : > { %v578_v14 = vpop.f32.mrb[2].mxu0  ;;  %v735_v16 = vpop.f32.mrb[0].mxu1  ;;  %v1346_v13 = vstv %s3928_s28  ;;  %s4040_s28 = sld [smem:[#allocation13 + $0x187]] }
 0x1d6   : > { %589 = vrot.lane.b32.xlu1 %v3807_v12, %s3429_s20  ;;  %583 = vrot.lane.b32.xlu0 %v3807_v12, %s3430_s21  ;;  %v2784_v15 = vpop.f32.mrb[3].mxu0  ;;  %605 = vst.msk [vmem:[#allocation2] sm:$0xf] %vm604_vm2, %v3807_v12  ;;  %v2795_v17 = vpop.f32.mrb[1].mxu1  ;;  %v741_v20 = vpack.c.bf16 %v735_v16, %v735_v16  ;;  %v1244_v14 = vstv %s5106_s30  ;;  %v1380_v16 = vstv %s3934_s15  ;;  %s5133_s30 = sld [smem:[#allocation82_spill]] }
 0x1d7   : > { %v738_v18 = vpop.f32.mrb[2].mxu1  ;;  %v1312_v15 = vstv %s5107_s19  ;;  %v1180_v17 = vstv %s5109_s25  ;;  %s5122_s19 = sld [smem:[#allocation69_spill]]  ;;  %s4053_s25 = sld [smem:[#allocation14 + $0x1]] }
 0x1d8   : > { %v2796_v19 = vpop.f32.mrb[3].mxu1  ;;  %s5165_s15 = sld [smem:[#allocation74_spill]] }
 0x1da   : > { %592 = vrot.lane.b32.xlu1 %v3807_v12, %s3431_s6  ;;  %586 = vrot.lane.b32.xlu0 %v3807_v12, %s3432_s29 }
 0x1db   : > { %5121 = sst [smem:[#allocation84_spill]] %s4040_s28  ;;  %s5168_s28 = sld [smem:[#allocation77_spill]] }
 0x1dd   : > { %v757_v21 = vld [vmem:[#allocation2] sm:$0xf] }
 0x1de   : > { %743 = vrot.lane.b32.xlu1 %v741_v20, %s3430_s21  ;;  %595 = vrot.lane.b32.xlu0 %v3807_v12, %s3433_s24  ;;  %v770_v22 = vsel %vm765_vm3, %v757_v21, 0  ;;  %s3902_s21 = sld [smem:[#allocation13 + $0x380]] }
 0x1df   : > { %2798 = vmatpush3.bf16.xpose.msra.mxu1 %v770_v22 }
 0x1e0   : > { %2803 = vmatprep.subr.bf16.mxu1 %v4965_v1 }
 0x1e2   : > { %745 = vrot.lane.b32.xlu1 %v741_v20, %s3432_s29  ;;  %598 = vrot.lane.b32.xlu0 %v3807_v12, %s3434_s4  ;;  %s3906_s29 = sld [smem:[#allocation13 + $0x1]] }
 0x1e4   : > { %v1373_v62 = vstv %s3902_s21  ;;  %s5111_s21 = sld [smem:[#allocation58_spill]] }
 0x1e6   : > { %747 = vrot.lane.b32.xlu1 %v741_v20, %s3429_s20  ;;  %601 = vrot.lane.b32.xlu0 %v3807_v12, %s3435_s9  ;;  %s3900_s20 = sld [smem:[#allocation13 + $0x280]] }
 0x1e7   : > { %2800 = vmatmul.mubr.msk.bf16.vlgmr.msra.gmra.mrb[4].mxu1 %vm765_vm3, %v741_v20 }
 0x1e8   : > { %2805 = vmatprep.mubr.msk.bf16.mxu1 %vm3428_vm0, %v4965_v1  ;;  %5066 = sst [smem:[#allocation42_spill]] %s3906_s29  ;;  %v1138_v0 = vstv %s3906_s29  ;;  %s5112_s29 = sld [smem:[#allocation59_spill]] }
 0x1ea   : > { %751 = vrot.lane.b32.xlu1 %v741_v20, %s3433_s24  ;;  %749 = vrot.lane.b32.xlu0 %v741_v20, %s3431_s6  ;;  %s3904_s6 = sld [smem:[#allocation13 + $0x81]]  ;;  %v1146_v18 = vstv %s5111_s21  ;;  %s4048_s21 = sld [smem:[#allocation13 + $0x287]] }
 0x1eb   : > { %s3908_s24 = sld [smem:[#allocation13 + $0x201]] }
 0x1ec   : > { %v1305_v61 = vstv %s3900_s20  ;;  %s4008_s20 = sld [smem:[#allocation13 + $0x186]] }
 0x1ee   : > { %755 = vrot.lane.b32.xlu1 %v741_v20, %s3435_s9  ;;  %753 = vrot.lane.b32.xlu0 %v741_v20, %s3434_s4  ;;  %s3910_s4 = sld [smem:[#allocation13 + $0x101]]  ;;  %v1282_v19 = vstv %s5112_s29  ;;  %s5123_s29 = sld [smem:[#allocation72_spill]] }
 0x1ef   : > { %s3912_s9 = sld [smem:[#allocation13 + $0x301]] }
 0x1f0   : > { %5065 = sst [smem:[#allocation41_spill]] %s3904_s6  ;;  %v1172_v63 = vstv %s3904_s6  ;;  %s4016_s6 = sld [smem:[#allocation13 + $0x286]] }
 0x1f1   : > { %5067 = sst [smem:[#allocation43_spill]] %s3908_s24  ;;  %v1274_v2 = vstv %s3908_s24  ;;  %s5113_s24 = sld [smem:[#allocation60_spill]] }
 0x1f2   : > { %5110 = sst [smem:[#allocation83_spill]] %s4008_s20  ;;  %s5117_s20 = sld [smem:[#allocation64_spill]] }
 0x1f4   : > { %5068 = sst [smem:[#allocation44_spill]] %s3910_s4  ;;  %v1206_v3 = vstv %s3910_s4  ;;  %s5114_s4 = sld [smem:[#allocation61_spill]] }
 0x1f5   : > { %5069 = sst [smem:[#allocation45_spill]] %s3912_s9  ;;  %v1342_v4 = vstv %s3912_s9  ;;  %s5115_s9 = sld [smem:[#allocation62_spill]] }
 0x1f7   : > { %v1214_v20 = vstv %s5113_s24  ;;  %s4050_s24 = sld [smem:[#allocation13 + $0x387]] }
 0x1fa   : > { %v1350_v21 = vstv %s5114_s4  ;;  %s5125_s4 = sld [smem:[#allocation70_spill]] }
 0x1fb   : > { %v1248_v22 = vstv %s5115_s9  ;;  %s4308_s9 = sld [smem:[#allocation16 + $0x2]] }
 0x1fd   : > { %5124 = sst [smem:[#allocation69_spill]] %s4050_s24  ;;  %s4304_s24 = sld [smem:[#allocation16 + $0x180]] }
 0x201   : > { %5213 = sst [smem:[#allocation46_spill]] %s4308_s9 }
 0x203   : > { %5211 = sst [smem:[#allocation44_spill]] %s4304_s24 }
 0x248   : > { %v3823_v23 = vpop.permute.xlu1 %589  ;;  %v3825_v24 = vpop.permute.xlu0 %583 }
 0x249   : > { %608 = vst.msk [vmem:[#allocation2 + $0xc] sm:$0xf] %vm604_vm2, %v3823_v23  ;;  %606 = vst.msk [vmem:[#allocation2 + $0x4] sm:$0xf] %vm604_vm2, %v3825_v24 }
 0x24c   : > { %v3831_v25 = vpop.permute.xlu1 %592  ;;  %v3833_v26 = vpop.permute.xlu0 %586 }
 0x24d   : > { %609 = vst.msk [vmem:[#allocation2 + $0x10] sm:$0xf] %vm604_vm2, %v3831_v25  ;;  %607 = vst.msk [vmem:[#allocation2 + $0x8] sm:$0xf] %vm604_vm2, %v3833_v26 }
 0x250   : > { %v3839_v27 = vpop.permute.xlu0 %595  ;;  %v758_v28 = vld [vmem:[#allocation2 + $0x4] sm:$0xf]  ;;  %v744_v30 = vpop.permute.xlu1 %743  ;;  %v760_v34 = vld [vmem:[#allocation2 + $0xc] sm:$0xf] }
 0x251   : > { %610 = vst.msk [vmem:[#allocation2 + $0x14] sm:$0xf] %vm604_vm2, %v3839_v27  ;;  %v816_v29 = vsel %vm765_vm3, %v758_v28, 0  ;;  %v908_v36 = vsel %vm765_vm3, %v760_v34, 0  ;;  %v1316_v28 = vstv %s5116_s1  ;;  %v1218_v34 = vstv %s5120_s7  ;;  %s4060_s7 = sld [smem:[#allocation14 + $0x4]]  ;;  %s5167_s1 = sld [smem:[#allocation76_spill]] }
 0x252   : > { %2804 = vmatpush3.bf16.xpose.msra.mxu1 %v816_v29  ;;  %v1384_v29 = vstv %s5117_s20  ;;  %s4316_s20 = sld [smem:[#allocation16 + $0x200]] }
 0x253   : > { %2815 = vmatprep.subr.bf16.mxu1 %v4965_v1 }
 0x254   : > { %v3845_v31 = vpop.permute.xlu0 %598  ;;  %v759_v32 = vld [vmem:[#allocation2 + $0x8] sm:$0xf]  ;;  %v746_v37 = vpop.permute.xlu1 %745  ;;  %v761_v38 = vld [vmem:[#allocation2 + $0x10] sm:$0xf] }
 0x255   : > { %611 = vst.msk [vmem:[#allocation2 + $0x18] sm:$0xf] %vm604_vm2, %v3845_v31  ;;  %v862_v33 = vsel %vm765_vm3, %v759_v32, 0  ;;  %v954_v39 = vsel %vm765_vm3, %v761_v38, 0  ;;  %v1150_v32 = vstv %s5119_s3  ;;  %s4062_s3 = sld [smem:[#allocation14 + $0x2]] }
 0x256   : > { %2810 = vmatpush3.bf16.xpose.msra.mxu0 %v862_v33  ;;  %v1286_v33 = vstv %s3956_s18  ;;  %s5129_s18 = sld [smem:[#allocation71_spill]] }
 0x257   : > { %2821 = vmatprep.subr.bf16.mxu0 %v4965_v1 }
 0x258   : > { %v3851_v35 = vpop.permute.xlu0 %601  ;;  %v762_v40 = vld [vmem:[#allocation2 + $0x14] sm:$0xf]  ;;  %v748_v41 = vpop.permute.xlu1 %747  ;;  %5217 = sst [smem:[#allocation50_spill]] %s4316_s20 }
 0x259   : > { %612 = vst.msk [vmem:[#allocation2 + $0x1c] sm:$0xf] %vm604_vm2, %v3851_v35  ;;  %2806 = vmatmul.mubr.msk.bf16.vlgmr.msra.gmra.mrb[8].mxu1 %vm765_vm3, %v744_v30  ;;  %v1000_v42 = vsel %vm765_vm3, %v762_v40, 0  ;;  %v1184_v30 = vstv %s5118_s0  ;;  %s4056_s0 = sld [smem:[#allocation14]] }
 0x25a   : > { %2816 = vmatpush3.bf16.xpose.msra.mxu1 %v908_v36  ;;  %2817 = vmatprep.mubr.msk.bf16.mxu1 %vm3428_vm0, %v4965_v1 }
 0x25b   : > { %2827 = vmatprep.subr.bf16.mxu1 %v4965_v1  ;;  %5130 = sst [smem:[#allocation70_spill]] %s4062_s3  ;;  %s4306_s3 = sld [smem:[#allocation16 + $0x181]] }
 0x25c   : > { %v763_v43 = vld [vmem:[#allocation2 + $0x18] sm:$0xf]  ;;  %v750_v44 = vpop.permute.xlu0 %749  ;;  %v752_v47 = vpop.permute.xlu1 %751 }
 0x25d   : > { %2812 = vmatmul.mubr.msk.bf16.vlgmr.msra.gmra.mrb[4].mxu0 %vm765_vm3, %v746_v37  ;;  %v1046_v45 = vsel %vm765_vm3, %v763_v43, 0  ;;  %v1252_v43 = vstv %s3962_s23  ;;  %s5175_s23 = sld [smem:[#allocation79_spill]] }
 0x25e   : > { %2822 = vmatpush3.bf16.xpose.msra.mxu0 %v954_v39  ;;  %2823 = vmatprep.mubr.msk.bf16.mxu0 %vm3428_vm0, %v4965_v1 }
 0x25f   : > { %2833 = vmatprep.subr.bf16.mxu0 %v4965_v1  ;;  %5128 = sst [smem:[#allocation72_spill]] %s4056_s0  ;;  %s5134_s0 = sld [smem:[#allocation83_spill]] }
 0x260   : > { %v764_v46 = vld [vmem:[#allocation2 + $0x1c] sm:$0xf]  ;;  %v754_v49 = vpop.permute.xlu0 %753  ;;  %v756_v50 = vpop.permute.xlu1 %755 }
 0x261   : > { %2818 = vmatmul.mubr.msk.bf16.vlgmr.msra.gmra.mrb[12].mxu1 %vm765_vm3, %v748_v41  ;;  %v1092_v48 = vsel %vm765_vm3, %v764_v46, 0  ;;  %v1354_v41 = vstv %s5122_s19  ;;  %s5179_s19 = sld [smem:[#allocation81_spill]]  ;;  %5212 = sst [smem:[#allocation45_spill]] %s4306_s3 }
 0x262   : > { %2828 = vmatpush3.bf16.xpose.msra.mxu1 %v1000_v42  ;;  %2829 = vmatprep.mubr.msk.bf16.mxu1 %vm3428_vm0, %v4965_v1 }
 0x263   : > { %2839 = vmatprep.subr.bf16.mxu1 %v4965_v1 }
 0x265   : > { %2824 = vmatmul.mubr.msk.bf16.vlgmr.msra.gmra.mrb[8].mxu0 %vm765_vm3, %v750_v44  ;;  %v1188_v44 = vstv %s3968_s17  ;;  %s5188_s17 = sld [smem:[#allocation84_spill]] }
 0x266   : > { %2834 = vmatpush3.bf16.xpose.msra.mxu0 %v1046_v45  ;;  %2835 = vmatprep.mubr.msk.bf16.mxu0 %vm3428_vm0, %v4965_v1 }
 0x267   : > { %2845 = vmatprep.subr.bf16.mxu0 %v4965_v1 }
 0x269   : > { %2830 = vmatmul.mubr.msk.bf16.vlgmr.msra.gmra.mrb[16].mxu1 %vm765_vm3, %v752_v47  ;;  %v1320_v47 = vstv %s5125_s4  ;;  %s5177_s4 = sld [smem:[#allocation80_spill]] }
 0x26a   : > { %2840 = vmatpush3.bf16.xpose.msra.mxu1 %v1092_v48  ;;  %2841 = vmatprep.mubr.msk.bf16.mxu1 %vm3428_vm0, %v4965_v1 }
 0x26b   : > { %2851 = vmatprep.subr.bf16.mxu1 %v4965_v1 }
 0x26d   : > { %2836 = vmatmul.mubr.msk.bf16.vlgmr.msra.gmra.mrb[12].mxu0 %vm765_vm3, %v754_v49 }
 0x26e   : > { %2847 = vmatprep.mubr.msk.bf16.mxu0 %vm3428_vm0, %v4965_v1 }
 0x271   : > { %2842 = vmatmul.mubr.msk.bf16.vlgmr.msra.gmra.mrb[20].mxu1 %vm765_vm3, %v756_v50 }
 0x272   : > { %2853 = vmatprep.mubr.msk.bf16.mxu1 %vm3428_vm0, %v4965_v1 }
 0x2ba   : > { %v3886_v51 = vpop.f32.mrb[4].mxu1 }
 0x2bb   : > { %v2801_v52 = vpop.f32.mrb[5].mxu1  ;;  %v1170_v36 = vmul.f32 %v1169_v55, %v3886_v51  ;;  %v1136_v37 = vmul.f32 %v1135_v56, %v3886_v51  ;;  %v1272_v38 = vmul.f32 %v1271_v57, %v3886_v51  ;;  %v1204_v39 = vmul.f32 %v1203_v58, %v3886_v51 }
 0x2bc   : > { %v809_v53 = vpop.f32.mrb[6].mxu1  ;;  %v1340_v40 = vmul.f32 %v1339_v59, %v3886_v51  ;;  %v1238_v42 = vmul.f32 %v1237_v60, %v3886_v51  ;;  %v1306_v46 = vmul.f32 %v1305_v61, %v3886_v51  ;;  %v1374_v50 = vmul.f32 %v1373_v62, %v3886_v51 }
 0x2bd   : > { %v2802_v54 = vpop.f32.mrb[7].mxu1  ;;  %v1388_v52 = vstv %s5129_s18  ;;  %s5173_s18 = sld [smem:[#allocation78_spill]] }
 0x32c   : > { %v852_v57 = vpop.f32.mrb[8].mxu1 }
 0x32d   : > { %v2807_v48 = vpop.f32.mrb[9].mxu1  ;;  %v1173_v54 = vmul.f32 %v1172_v63, %v852_v57  ;;  %v1139_v55 = vmul.f32 %v1138_v0, %v852_v57  ;;  %v1275_v53 = vmul.f32 %v1274_v2, %v852_v57  ;;  %v1207_v58 = vmul.f32 %v1206_v3, %v852_v57 }
 0x32e   : > { %v855_v56 = vpop.f32.mrb[10].mxu1  ;;  %v1343_v60 = vmul.f32 %v1342_v4, %v852_v57  ;;  %v1241_v61 = vmul.f32 %v1240_v5, %v852_v57  ;;  %v1309_v49 = vmul.f32 %v1308_v6, %v852_v57  ;;  %v1377_v48 = vmul.f32 %v1376_v7, %v852_v57 }
 0x32f   : > { %v2808_v63 = vpop.f32.mrb[11].mxu1  ;;  %v1174_v0 = vadd.f32 %v1173_v54, %v1170_v36  ;;  %v1140_v2 = vadd.f32 %v1139_v55, %v1136_v37  ;;  %v1276_v3 = vadd.f32 %v1275_v53, %v1272_v38  ;;  %v1208_v56 = vadd.f32 %v1207_v58, %v1204_v39 }
 0x330   : > { %v898_v1 = vpop.f32.mrb[4].mxu0  ;;  %v1344_v4 = vadd.f32 %v1343_v60, %v1340_v40  ;;  %v1242_v62 = vadd.f32 %v1241_v61, %v1238_v42  ;;  %v1310_v51 = vadd.f32 %v1309_v49, %v1306_v46  ;;  %v1378_v5 = vadd.f32 %v1377_v48, %v1374_v50 }
 0x331   : > { %v2813_v59 = vpop.f32.mrb[5].mxu0  ;;  %v1177_v6 = vmul.f32 %v1176_v8, %v898_v1  ;;  %v1143_v45 = vmul.f32 %v1142_v9, %v898_v1  ;;  %v1279_v7 = vmul.f32 %v1278_v10, %v898_v1  ;;  %v1211_v36 = vmul.f32 %v1210_v11, %v898_v1 }
 0x332   : > { %v901_v54 = vpop.f32.mrb[6].mxu0  ;;  %v1347_v37 = vmul.f32 %v1346_v13, %v898_v1  ;;  %v1245_v38 = vmul.f32 %v1244_v14, %v898_v1  ;;  %v1313_v39 = vmul.f32 %v1312_v15, %v898_v1  ;;  %v1381_v40 = vmul.f32 %v1380_v16, %v898_v1 }
 0x333   : > { %v2814_v8 = vpop.f32.mrb[7].mxu0  ;;  %v1178_v9 = vadd.f32 %v1177_v6, %v1174_v0  ;;  %v1144_v10 = vadd.f32 %v1143_v45, %v1140_v2  ;;  %v1280_v11 = vadd.f32 %v1279_v7, %v1276_v3  ;;  %v1212_v42 = vadd.f32 %v1211_v36, %v1208_v56 }
 0x334   : > { %v944_v46 = vpop.f32.mrb[12].mxu1  ;;  %v1348_v13 = vadd.f32 %v1347_v37, %v1344_v4  ;;  %v1246_v49 = vadd.f32 %v1245_v38, %v1242_v62  ;;  %v1314_v50 = vadd.f32 %v1313_v39, %v1310_v51  ;;  %v1382_v14 = vadd.f32 %v1381_v40, %v1378_v5 }
 0x335   : > { %v2819_v53 = vpop.f32.mrb[13].mxu1  ;;  %v1181_v15 = vmul.f32 %v1180_v17, %v944_v46  ;;  %v1147_v55 = vmul.f32 %v1146_v18, %v944_v46  ;;  %v1283_v1 = vmul.f32 %v1282_v19, %v944_v46  ;;  %v1215_v16 = vmul.f32 %v1214_v20, %v944_v46 }
 0x336   : > { %v947_v57 = vpop.f32.mrb[14].mxu1  ;;  %v1351_v45 = vmul.f32 %v1350_v21, %v944_v46  ;;  %v1249_v58 = vmul.f32 %v1248_v22, %v944_v46  ;;  %v1317_v59 = vmul.f32 %v1316_v28, %v944_v46  ;;  %v1385_v60 = vmul.f32 %v1384_v29, %v944_v46 }
 0x337   : > { %v2820_v17 = vpop.f32.mrb[15].mxu1  ;;  %v1182_v18 = vadd.f32 %v1181_v15, %v1178_v9  ;;  %v1148_v19 = vadd.f32 %v1147_v55, %v1144_v10  ;;  %v1284_v20 = vadd.f32 %v1283_v1, %v1280_v11  ;;  %v1216_v61 = vadd.f32 %v1215_v16, %v1212_v42 }
 0x338   : > { %v990_v51 = vpop.f32.mrb[8].mxu0  ;;  %v1352_v21 = vadd.f32 %v1351_v45, %v1348_v13  ;;  %v1250_v62 = vadd.f32 %v1249_v58, %v1246_v49  ;;  %v1318_v48 = vadd.f32 %v1317_v59, %v1314_v50  ;;  %v1386_v22 = vadd.f32 %v1385_v60, %v1382_v14 }
 0x339   : > { %v2825_v63 = vpop.f32.mrb[9].mxu0  ;;  %v1185_v28 = vmul.f32 %v1184_v30, %v990_v51  ;;  %v1151_v0 = vmul.f32 %v1150_v32, %v990_v51  ;;  %v1287_v29 = vmul.f32 %v1286_v33, %v990_v51  ;;  %v1219_v2 = vmul.f32 %v1218_v34, %v990_v51 }
 0x33a   : > { %v993_v3 = vpop.f32.mrb[10].mxu0  ;;  %v1355_v56 = vmul.f32 %v1354_v41, %v990_v51  ;;  %v1253_v4 = vmul.f32 %v1252_v43, %v990_v51  ;;  %v1321_v5 = vmul.f32 %v1320_v47, %v990_v51  ;;  %v1389_v6 = vmul.f32 %v1388_v52, %v990_v51 }
 0x33b   : > { %v2826_v30 = vpop.f32.mrb[11].mxu0  ;;  %v1186_v32 = vadd.f32 %v1185_v28, %v1182_v18  ;;  %v1152_v33 = vadd.f32 %v1151_v0, %v1148_v19  ;;  %v1288_v34 = vadd.f32 %v1287_v29, %v1284_v20  ;;  %v1220_v7 = vadd.f32 %v1219_v2, %v1216_v61 }
 0x33c   : > { %v1036_v36 = vpop.f32.mrb[16].mxu1  ;;  %v1356_v41 = vadd.f32 %v1355_v56, %v1352_v21  ;;  %v1254_v54 = vadd.f32 %v1253_v4, %v1250_v62  ;;  %v1322_v37 = vadd.f32 %v1321_v5, %v1318_v48  ;;  %v1390_v43 = vadd.f32 %v1389_v6, %v1386_v22 }
 0x33d   : > { %v2831_v38 = vpop.f32.mrb[17].mxu1  ;;  %v1189_v47 = vmul.f32 %v1188_v44, %v1036_v36  ;;  %v5169_v39 = vstv %s5123_s29  ;;  %v5170_v52 = vstv %s5164_s14  ;;  %v5171_v9 = vstv %s5165_s15  ;;  %s5195_s29 = sld [smem:[#allocation72_spill]]  ;;  %s4318_s14 = sld [smem:[#allocation16 + $0x201]] }
 0x33e   : > { %v1155_v40 = vmul.f32 %v5169_v39, %v1036_v36  ;;  %v1291_v8 = vmul.f32 %v5170_v52, %v1036_v36  ;;  %v1223_v10 = vmul.f32 %v5171_v9, %v1036_v36  ;;  %v1039_v11 = vpop.f32.mrb[18].mxu1  ;;  %v5172_v42 = vstv %s5166_s22  ;;  %s4320_s15 = sld [smem:[#allocation16 + $0x202]]  ;;  %s4322_s22 = sld [smem:[#allocation16 + $0x280]] }
 0x33f   : > { %v1359_v46 = vmul.f32 %v5172_v42, %v1036_v36  ;;  %v5174_v13 = vstv %s5167_s1  ;;  %v5176_v50 = vstv %s5168_s28  ;;  %v5178_v53 = vstv %s3986_s12  ;;  %v2832_v44 = vpop.f32.mrb[19].mxu1  ;;  %s5189_s12 = sld [smem:[#allocation69_spill]]  ;;  %s4324_s1 = sld [smem:[#allocation16 + $0x3]] }
 0x340   : > { %v1257_v49 = vmul.f32 %v5174_v13, %v1036_v36  ;;  %v1325_v14 = vmul.f32 %v5176_v50, %v1036_v36  ;;  %v1393_v15 = vmul.f32 %v5178_v53, %v1036_v36  ;;  %v1190_v55 = vadd.f32 %v1189_v47, %v1186_v32  ;;  %v1082_v45 = vpop.f32.mrb[12].mxu0  ;;  %s4326_s28 = sld [smem:[#allocation16 + $0x4]] }
 0x341   : > { %v1156_v1 = vadd.f32 %v1155_v40, %v1152_v33  ;;  %v1292_v16 = vadd.f32 %v1291_v8, %v1288_v34  ;;  %v1224_v57 = vadd.f32 %v1223_v10, %v1220_v7  ;;  %v1360_v58 = vadd.f32 %v1359_v46, %v1356_v41  ;;  %v2837_v18 = vpop.f32.mrb[13].mxu0 }
 0x342   : > { %v1258_v59 = vadd.f32 %v1257_v49, %v1254_v54  ;;  %v1326_v60 = vadd.f32 %v1325_v14, %v1322_v37  ;;  %v1394_v17 = vadd.f32 %v1393_v15, %v1390_v43  ;;  %v5180_v19 = vstv %s5173_s18  ;;  %v1085_v63 = vpop.f32.mrb[14].mxu0  ;;  %s4328_s18 = sld [smem:[#allocation16 + $0x83]] }
 0x343   : > { %v1193_v20 = vmul.f32 %v5180_v19, %v1082_v45  ;;  %v5181_v61 = vstv %s5175_s23  ;;  %v5182_v21 = vstv %s5177_s4  ;;  %v5183_v48 = vstv %s5179_s19  ;;  %v2838_v6 = vpop.f32.mrb[15].mxu0  ;;  %5218 = sst [smem:[#allocation51_spill]] %s4318_s14  ;;  %s4330_s23 = sld [smem:[#allocation16 + $0x84]] }
 0x344   : > { %v1159_v51 = vmul.f32 %v5181_v61, %v1082_v45  ;;  %v1295_v62 = vmul.f32 %v5182_v21, %v1082_v45  ;;  %v1227_v22 = vmul.f32 %v5183_v48, %v1082_v45  ;;  %v5184_v28 = vstv %s5133_s30  ;;  %v1128_v7 = vpop.f32.mrb[20].mxu1  ;;  %s4296_s30 = sld [smem:[#allocation16 + $0x80]]  ;;  %5219 = sst [smem:[#allocation52_spill]] %s4320_s15 }
 0x345   : > { %v1363_v0 = vmul.f32 %v5184_v28, %v1082_v45  ;;  %v5185_v29 = vstv %s5134_s0  ;;  %v5186_v3 = vstv %s4016_s6  ;;  %v5187_v4 = vstv %s4018_s11  ;;  %s4196_s0 = sld [smem:[#allocation14 + $0x6]]  ;;  %s4198_s6 = sld [smem:[#allocation14 + $0x3]]  ;;  %v2843_v43 = vpop.f32.mrb[21].mxu1 }
 0x346   : > { %v1261_v2 = vmul.f32 %v5185_v29, %v1082_v45  ;;  %v1329_v56 = vmul.f32 %v5186_v3, %v1082_v45  ;;  %v1397_v5 = vmul.f32 %v5187_v4, %v1082_v45  ;;  %v1194_v30 = vadd.f32 %v1193_v20, %v1190_v55  ;;  %v1131_v11 = vpop.f32.mrb[22].mxu1  ;;  %s5199_s11 = sld [smem:[#allocation70_spill]]  ;;  %5220 = sst [smem:[#allocation53_spill]] %s4322_s22 }
 0x347   : > { %v1160_v32 = vadd.f32 %v1159_v51, %v1156_v1  ;;  %v1296_v33 = vadd.f32 %v1295_v62, %v1292_v16  ;;  %v1228_v34 = vadd.f32 %v1227_v22, %v1224_v57  ;;  %v1364_v36 = vadd.f32 %v1363_v0, %v1360_v58  ;;  %v2844_v44 = vpop.f32.mrb[23].mxu1  ;;  %5221 = sst [smem:[#allocation54_spill]] %s4324_s1  ;;  %s4332_s4 = sld [smem:[#allocation16 + $0x103]] }
 0x348   : > { %v1262_v41 = vadd.f32 %v1261_v2, %v1258_v59  ;;  %v1330_v54 = vadd.f32 %v1329_v56, %v1326_v60  ;;  %v1398_v37 = vadd.f32 %v1397_v5, %v1394_v17  ;;  %v5190_v38 = vstv %s4020_s27  ;;  %s4298_s27 = sld [smem:[#allocation16 + $0x81]]  ;;  %s4334_s19 = sld [smem:[#allocation16 + $0x104]] }
 0x349   : > { %v1197_v47 = vmul.f32 %v5190_v38, %v1128_v7  ;;  %v5191_v39 = vstv %s4022_s26  ;;  %v5192_v52 = vstv %s4031_s8  ;;  %v5193_v9 = vstv %s4034_s5  ;;  %s2632_s5 = sld [smem:[#allocation14 + $0x7]]  ;;  %s4292_s8 = sld [smem:[#allocation16]] }
 0x34a   : > { %v1163_v40 = vmul.f32 %v5191_v39, %v1128_v7  ;;  %v1299_v8 = vmul.f32 %v5192_v52, %v1128_v7  ;;  %v1231_v10 = vmul.f32 %v5193_v9, %v1128_v7  ;;  %v5194_v42 = vstv %s4037_s2  ;;  %s2614_s2 = sld [smem:[#allocation14 + $0x5]]  ;;  %s4294_s26 = sld [smem:[#allocation16 + $0x1]] }
 0x34b   : > { %v1367_v46 = vmul.f32 %v5194_v42, %v1128_v7  ;;  %v5196_v13 = vstv %s5188_s17  ;;  %v5197_v50 = vstv %s4048_s21  ;;  %v5198_v53 = vstv %s5189_s12  ;;  %5207 = sst [smem:[#allocation83_spill]] %s4296_s30  ;;  %s4302_s21 = sld [smem:[#allocation16 + $0x101]] }
 0x34c   : > { %v1265_v49 = vmul.f32 %v5196_v13, %v1128_v7  ;;  %v1333_v14 = vmul.f32 %v5197_v50, %v1128_v7  ;;  %v1401_v15 = vmul.f32 %v5198_v53, %v1128_v7  ;;  %v1198_v55 = vadd.f32 %v1197_v47, %v1194_v30  ;;  %5222 = sst [smem:[#allocation55_spill]] %s4326_s28  ;;  %s4336_s17 = sld [smem:[#allocation16 + $0x183]] }
 0x34d   : > { %v1164_v1 = vadd.f32 %v1163_v40, %v1160_v32  ;;  %v1300_v16 = vadd.f32 %v1299_v8, %v1296_v33  ;;  %v1232_v57 = vadd.f32 %v1231_v10, %v1228_v34  ;;  %v1368_v45 = vadd.f32 %v1367_v46, %v1364_v36  ;;  %5223 = sst [smem:[#allocation56_spill]] %s4330_s23  ;;  %s4338_s12 = sld [smem:[#allocation16 + $0x184]] }
 0x34e   : > { %v1266_v58 = vadd.f32 %v1265_v49, %v1262_v41  ;;  %v1334_v59 = vadd.f32 %v1333_v14, %v1330_v54  ;;  %v1402_v60 = vadd.f32 %v1401_v15, %v1398_v37  ;;  %v5200_v17 = vstv %s4053_s25  ;;  %5208 = sst [smem:[#allocation41_spill]] %s4298_s27  ;;  %s4300_s25 = sld [smem:[#allocation16 + $0x100]] }
 0x34f   : > { %v1201_v18 = vadd.f32 %v5200_v17, %v1198_v55  ;;  %v5201_v19 = vstv %s5195_s29  ;;  %v5202_v21 = vstv %s4060_s7  ;;  %v5203_v48 = vstv %s5199_s11  ;;  %s3436_s7 = smov 64   ;;  %5205 = sst [smem:[#allocation71_spill]] %s4292_s8 }
 0x350   : > { %v1167_v20 = vadd.f32 %v5201_v19, %v1164_v1  ;;  %v1303_v62 = vadd.f32 %v5202_v21, %v1300_v16  ;;  %v1235_v22 = vadd.f32 %v5203_v48, %v1232_v57  ;;  %v1370_v63 = vstv %s4196_s0  ;;  %5206 = sst [smem:[#allocation82_spill]] %s4294_s26  ;;  %s4340_s0 = sld [smem:[#allocation16 + $0x5]] }
 0x351   : > { %v1409_v61 = vsel %vm765_vm3, %v1201_v18, -inf  ;;  %v1268_v28 = vstv %s4198_s6  ;;  %v1371_v2 = vadd.f32 %v1370_v63, %v1368_v45  ;;  %v1336_v56 = vstv %s2614_s2  ;;  %5210 = sst [smem:[#allocation43_spill]] %s4302_s21  ;;  %s4342_s6 = sld [smem:[#allocation16 + $0x6]] }
 0x352   : > { %v1406_v51 = vsel %vm765_vm3, %v1167_v20, -inf  ;;  %1410 = vmax.xlane.f32.xlu1 %v1409_v61  ;;  %v1418_v0 = vsel %vm765_vm3, %v1303_v62, -inf  ;;  %v1412_v29 = vsel %vm765_vm3, %v1235_v22, -inf  ;;  %v1269_v3 = vadd.f32 %v1268_v28, %v1266_v58  ;;  %5224 = sst [smem:[#allocation57_spill]] %s4332_s4  ;;  %s4344_s29 = sld [smem:[#allocation16 + $0x85]] }
 0x353   : > { %1407 = vmax.xlane.f32.xlu0 %v1406_v51  ;;  %v1424_v4 = vsel %vm765_vm3, %v1371_v2, -inf  ;;  %v1337_v6 = vadd.f32 %v1336_v56, %v1334_v59  ;;  %v1404_v30 = vstv %s2632_s5  ;;  %v2544_v28 = vcombine.low %v3833_v26, %v3833_v26  ;;  %5225 = sst [smem:[#allocation58_spill]] %s4334_s19  ;;  %s4346_s11 = sld [smem:[#allocation16 + $0x86]] }
 0x354   : > { %v1415_v5 = vsel %vm765_vm3, %v1269_v3, -inf  ;;  %v1405_v33 = vadd.f32 %v1404_v30, %v1402_v60  ;;  %v2549_v26 = vcombine.low %v3851_v35, %v3851_v35  ;;  %5209 = sst [smem:[#allocation42_spill]] %s4300_s25  ;;  %s4348_s2 = sld [smem:[#allocation16 + $0x105]]  ;;  %v1563_v56 = vstv %s4300_s25 }
 0x355   : > { %v1421_v32 = vsel %vm765_vm3, %v1337_v6, -inf  ;;  %5226 = sst [smem:[#allocation59_spill]] %s4336_s17  ;;  %s4350_s5 = sld [smem:[#allocation16 + $0x106]] }
 0x356   : > { %1419 = vmax.xlane.f32.xlu1 %v1418_v0  ;;  %v1427_v34 = vsel %vm765_vm3, %v1405_v33, -inf  ;;  %v2545_v0 = vcombine.low %v3823_v23, %v3823_v23  ;;  %v2548_v23 = vcombine.low %v3845_v31, %v3845_v31  ;;  %5227 = sst [smem:[#allocation60_spill]] %s4338_s12  ;;  %s4356_s12 = sld [smem:[#allocation16 + $0x7]]  ;;  %v1532_v31 = vstv %s4298_s27 }
 0x357   : > { %1413 = vmax.xlane.f32.xlu0 %v1412_v29  ;;  %v2547_v29 = vcombine.low %v3839_v27, %v3839_v27  ;;  %5228 = sst [smem:[#allocation61_spill]] %s4340_s0  ;;  %s4354_s17 = sld [smem:[#allocation16 + $0x186]]  ;;  %v1529_v27 = vstv %s4296_s30 }
 0x358   : > { %5229 = sst [smem:[#allocation62_spill]] %s4342_s6  ;;  %s4358_s6 = sld [smem:[#allocation16 + $0x87]] }
 0x359   : > { %5230 = sst [smem:[#allocation63_spill]] %s4344_s29  ;;  %s4360_s0 = sld [smem:[#allocation16 + $0x107]] }
 0x35a   : > { %1425 = vmax.xlane.f32.xlu1 %v1424_v4  ;;  %5231 = sst [smem:[#allocation64_spill]] %s4346_s11  ;;  %s4362_s11 = sld [smem:[#allocation16 + $0x203]]  ;;  %v1566_v4 = vstv %s4302_s21 }
 0x35b   : > { %1416 = vmax.xlane.f32.xlu0 %v1415_v5  ;;  %5232 = sst [smem:[#allocation65_spill]] %s4348_s2  ;;  %s4364_s2 = sld [smem:[#allocation16 + $0x204]]  ;;  %v1597_v5 = vstv %s4304_s24 }
 0x35c   : > { %5233 = sst [smem:[#allocation66_spill]] %s4350_s5  ;;  %s4366_s29 = sld [smem:[#allocation16 + $0x205]] }
 0x35d   : > { %5235 = sst [smem:[#allocation68_spill]] %s4354_s17  ;;  %s4368_s5 = sld [smem:[#allocation16 + $0x187]] }
 0x35e   : > { %5236 = sst [smem:[#allocation73_spill]] %s4358_s6  ;;  %s4374_s6 = sld [smem:[#allocation17]] }
 0x35f   : > { %1422 = vmax.xlane.f32.xlu0 %v1421_v32  ;;  %5237 = sst [smem:[#allocation74_spill]] %s4360_s0  ;;  %s4378_s0 = sld [smem:[#allocation17 + $0x1]]  ;;  %v1502_v32 = vstv %s4308_s9 }
 0x360   : > { %s4391_s25 = sld [smem:[#allocation17 + $0x3]]  ;;  %s4393_s30 = sld [smem:[#allocation16 + $0x281]] }
 0x361   : > { %5238 = sst [smem:[#allocation75_spill]] %s4364_s2  ;;  %s4398_s24 = sld [smem:[#allocation16 + $0x282]] }
 0x362   : > { %5239 = sst [smem:[#allocation76_spill]] %s4366_s29  ;;  %s4382_s29 = sld [smem:[#allocation17 + $0x2]] }
 0x363   : > { %1428 = vmax.xlane.f32.xlu0 %v1427_v34  ;;  %v1570_v34 = vstv %s4312_s16  ;;  %s5248_s21 = sld [smem:[#allocation62_spill]]  ;;  %s4400_s27 = sld [smem:[#allocation16 + $0x283]] }
 0x364   : > { %5241 = sst [smem:[#allocation78_spill]] %s4374_s6  ;;  %s5251_s16 = sld [smem:[#allocation60_spill]] }
 0x365   : > { %5242 = sst [smem:[#allocation79_spill]] %s4378_s0  ;;  %s4406_s9 = sld [smem:[#allocation16 + $0x284]] }
 0x366   : > { %5245 = sst [smem:[#allocation84_spill]] %s4391_s25 }
 0x367   : > { %5246 = sst [smem:[#allocation69_spill]] %s4393_s30  ;;  %s4408_s30 = sld [smem:[#allocation16 + $0x285]] }
 0x368   : > { %5243 = sst [smem:[#allocation80_spill]] %s4382_s29  ;;  %s4642_s25 = sld [smem:[#allocation16 + $0x306]] }
 0x369   : > { %5249 = sst [smem:[#allocation72_spill]] %s4400_s27  ;;  %s5257_s27 = sld [smem:[#allocation66_spill]] }
 0x36a   : > { %s4693_s29 = sld [smem:[#allocation16 + $0x385]] }
 0x36b   : > { %629 = vrot.lane.b32.xlu1 %v3807_v12, %s3436_s7 }
 0x36d   : > { %5253 = sst [smem:[#allocation70_spill]] %s4408_s30  ;;  %s4631_s30 = sld [smem:[#allocation16 + $0x305]] }
 0x3df   : > { %v1411_v7 = vpop.xlane.xlu1 %1410 }
 0x3e0   : > { %v1408_v36 = vpop.xlane.xlu0 %1407  ;;  %v1431_v41 = vsub.f32 %v1201_v18, %v1411_v7  ;;  %v5204_v18 = vmov 0.0   ;;  %v1604_v7 = vstv %s4314_s10  ;;  %s5254_s10 = sld [smem:[#allocation64_spill]] }
 0x3e1   : > { %v1430_v54 = vsub.f32 %v1167_v20, %v1408_v36  ;;  %v1631_v36 = vstv %s4316_s20  ;;  %s4414_s20 = sld [smem:[#allocation17 + $0x4]] }
 0x3e2   : > { %v1440_v37 = vmul.f32 1.442695, %v1431_v41  ;;  %v1634_v41 = vstv %s4318_s14  ;;  %s5255_s14 = sld [smem:[#allocation65_spill]] }
 0x3e3   : > { %v1438_v43 = vmul.f32 1.442695, %v1430_v54  ;;  %v1420_v38 = vpop.xlane.xlu1 %1419  ;;  %v1506_v54 = vstv %s4324_s1  ;;  %s4416_s1 = sld [smem:[#allocation16 + $0x286]] }
 0x3e4   : > { %v1414_v47 = vpop.xlane.xlu0 %1413  ;;  %3075 = vpow2.f32 %v1440_v37  ;;  %v1434_v39 = vsub.f32 %v1303_v62, %v1420_v38  ;;  %v1510_v37 = vstv %s4326_s28  ;;  %v1665_v38 = vstv %s4322_s22  ;;  %s5260_s22 = sld [smem:[#allocation74_spill]] }
 0x3e5   : > { %v1432_v40 = vsub.f32 %v1235_v22, %v1414_v47  ;;  %3077 = vpow2.f32 %v1438_v43  ;;  %v1638_v43 = vstv %s4320_s15  ;;  %v1540_v47 = vstv %s4328_s18  ;;  %s5259_s15 = sld [smem:[#allocation73_spill]]  ;;  %s4691_s18 = sld [smem:[#allocation16 + $0x384]] }
 0x3e6   : > { %v1446_v8 = vmul.f32 1.442695, %v1434_v39  ;;  %v1544_v39 = vstv %s4330_s23  ;;  %s4422_s23 = sld [smem:[#allocation16 + $0x300]] }
 0x3e7   : > { %v1442_v52 = vmul.f32 1.442695, %v1432_v40  ;;  %v1426_v9 = vpop.xlane.xlu1 %1425  ;;  %v1574_v40 = vstv %s4332_s4  ;;  %s5261_s4 = sld [smem:[#allocation76_spill]] }
 0x3e8   : > { %v1417_v10 = vpop.xlane.xlu0 %1416  ;;  %v1436_v11 = vsub.f32 %v1371_v2, %v1426_v9  ;;  %v2543_v2 = vcombine.low %v3825_v24, %v3825_v24  ;;  %v1495_v24 = vstv %s4292_s8  ;;  %s4386_s8 = sld [smem:[#allocation16 + $0x207]] }
 0x3e9   : > { %v1433_v42 = vsub.f32 %v1269_v3, %v1417_v10  ;;  %3079 = vpow2.f32 %v1442_v52  ;;  %v2546_v3 = vcombine.low %v3831_v25, %v3831_v25  ;;  %v1498_v25 = vstv %s4294_s26  ;;  %s5252_s26 = sld [smem:[#allocation63_spill]] }
 0x3ea   : > { %3081 = vpow2.f32 %v1446_v8  ;;  %v1450_v46 = vmul.f32 1.442695, %v1436_v11  ;;  %v1578_v52 = vstv %s4334_s19  ;;  %v1518_v10 = vstv %s5248_s21  ;;  %s4424_s19 = sld [smem:[#allocation16 + $0x301]]  ;;  %s4431_s21 = sld [smem:[#allocation16 + $0x302]] }
 0x3eb   : > { %v1444_v12 = vmul.f32 1.442695, %v1433_v42  ;;  %v630_v13 = vpop.permute.xlu1 %629  ;;  %v1612_v42 = vstv %s5251_s16  ;;  %s3438_s16 = smov 24  }
 0x3ec   : > { %v1423_v49 = vpop.xlane.xlu0 %1422  ;;  %653 = vst.msk [vmem:[#allocation3] sm:$0xf] %vm604_vm2, %v630_v13  ;;  %v1582_v13 = vstv %s5255_s14  ;;  %s4656_s14 = sld [smem:[#allocation16 + $0x307]] }
 0x3ed   : > { %v1435_v50 = vsub.f32 %v1337_v6, %v1423_v49  ;;  %3083 = vpow2.f32 %v1444_v12  ;;  %v1600_v6 = vstv %s4306_s3  ;;  %s5247_s3 = sld [smem:[#allocation61_spill]]  ;;  %v1522_v49 = vstv %s4356_s12 }
 0x3ee   : > { %v4237_v14 = vpop.eup %3075  ;;  %3085 = vpow2.f32 %v1450_v46  ;;  %5244 = sst [smem:[#allocation81_spill]] %s4386_s8  ;;  %v1552_v46 = vstv %s5254_s10 }
 0x3ef   : > { %v1448_v53 = vmul.f32 1.442695, %v1435_v50  ;;  %v4239_v15 = vpop.eup %3077  ;;  %v1457_v55 = vsel %vm765_vm3, %v4237_v14, 0.0  ;;  %v1548_v12 = vstv %s5252_s26  ;;  %v1586_v50 = vstv %s5257_s27  ;;  %s5263_s26 = sld [smem:[#allocation69_spill]]  ;;  %s5298_s8 = sld [smem:[#allocation81_spill]] }
 0x3f0   : > { %v1429_v44 = vpop.xlane.xlu0 %1428  ;;  %1458 = vadd.xlane.f32.xlu0 %v1457_v55  ;;  %v1454_v16 = vsel %vm765_vm3, %v4239_v15, 0.0  ;;  %5262 = sst [smem:[#allocation60_spill]] %s4431_s21  ;;  %v1556_v55 = vstv %s5259_s15  ;;  %s4644_s21 = sld [smem:[#allocation16 + $0x383]] }
 0x3f1   : > { %3087 = vpow2.f32 %v1448_v53  ;;  %v1437_v1 = vsub.f32 %v1405_v33, %v1429_v44  ;;  %1455 = vadd.xlane.f32.xlu1 %v1454_v16  ;;  %v1536_v33 = vstv %s4310_s13  ;;  %s5250_s13 = sld [smem:[#allocation59_spill]]  ;;  %v1620_v44 = vstv %s4354_s17  ;;  %s4448_s17 = sld [smem:[#allocation16 + $0x303]] }
 0x3f2   : > { %5256 = sst [smem:[#allocation59_spill]] %s4414_s20  ;;  %v1642_v16 = vstv %s4362_s11  ;;  %s5302_s20 = sld [smem:[#allocation70_spill]] }
 0x3f3   : > { %v1452_v57 = vmul.f32 1.442695, %v1437_v1  ;;  %v4245_v45 = vpop.eup %3079  ;;  %v1782_v58 = vld [vmem:[#allocation3] sm:$0xf]  ;;  %v1514_v9 = vstv %s5247_s3  ;;  %s4429_s3 = sld [smem:[#allocation16 + $0x287]]  ;;  %v1590_v1 = vstv %s5260_s22  ;;  %s4617_s22 = sld [smem:[#allocation16 + $0x381]] }
 0x3f4   : > { %v1460_v59 = vsel %vm765_vm3, %v4245_v45, 0.0  ;;  %v1795_v60 = vsel %vm1793_vm4, %v1782_v58, 0  ;;  %v4250_v17 = vpop.eup %3081  ;;  %s3440_s11 = smov 40   ;;  %s3442_s27 = smov 48  }
 0x3f5   : > { %3089 = vpow2.f32 %v1452_v57  ;;  %1461 = vadd.xlane.f32.xlu1 %v1460_v59  ;;  %2846 = vmatpush3.bf16.msra.mxu0 %v1795_v60  ;;  %v1466_v20 = vsel %vm765_vm3, %v4250_v17, 0.0  ;;  %v1646_v57 = vstv %s4364_s2  ;;  %v1526_v60 = vstv %s4374_s6  ;;  %s4450_s2 = sld [smem:[#allocation16 + $0x380]]  ;;  %s5305_s6 = sld [smem:[#allocation84_spill]] }
 0x3f6   : > { %2857 = vmatprep.subr.bf16.mxu0 %v5204_v18  ;;  %s3443_s15 = smov 56  }
 0x3f7   : > { %v4253_v19 = vpop.eup %3083  ;;  %v1608_v11 = vstv %s5250_s13  ;;  %s5290_s13 = sld [smem:[#allocation40_spill]] }
 0x3f8   : > { %v1463_v61 = vsel %vm765_vm3, %v4253_v19, 0.0  ;;  %v4259_v51 = vpop.eup %3085 }
 0x3f9   : > { %1467 = vadd.xlane.f32.xlu1 %v1466_v20  ;;  %1464 = vadd.xlane.f32.xlu0 %v1463_v61  ;;  %v1472_v48 = vsel %vm765_vm3, %v4259_v51, 0.0  ;;  %v1624_v20 = vstv %s4368_s5  ;;  %v1650_v61 = vstv %s5261_s4  ;;  %s4633_s5 = sld [smem:[#allocation16 + $0x382]] }
 0x3fb   : > { %v4261_v21 = vpop.eup %3087 }
 0x3fc   : > { %v1469_v62 = vsel %vm765_vm3, %v4261_v21, 0.0 }
 0x3fd   : > { %1473 = vadd.xlane.f32.xlu1 %v1472_v48  ;;  %1470 = vadd.xlane.f32.xlu0 %v1469_v62  ;;  %v1560_v48 = vstv %s4378_s0  ;;  %s2536_s10 = sshll.u32 %s5290_s13, 6  ;;  %s5299_s0 = sld [smem:[#allocation72_spill]] }
 0x3fe   : > { %s4660_s4 = scalar_lea.vmem [#allocation20], %s2536_s10  ;;  %s3439_s10 = smov 16  }
 0x3ff   : > { %v4267_v22 = vpop.eup %3089 }
 0x400   : > { %v1475_v63 = vsel %vm765_vm3, %v4267_v22, 0.0 }
 0x401   : > { %1476 = vadd.xlane.f32.xlu0 %v1475_v63 }
 0x40e   : > { %633 = vrot.lane.b32.xlu1 %v2544_v28, %s3436_s7 }
 0x412   : > { %635 = vrot.lane.b32.xlu1 %v2545_v0, %s3436_s7 }
 0x416   : > { %639 = vrot.lane.b32.xlu1 %v2547_v29, %s3436_s7 }
 0x417   : > { %631 = vrot.lane.b32.xlu0 %v2543_v2, %s3436_s7  ;;  %v1668_v2 = vstv %s5263_s26  ;;  %s3441_s26 = smov 32  }
 0x41a   : > { %643 = vrot.lane.b32.xlu1 %v2549_v26, %s3436_s7  ;;  %v1672_v26 = vstv %s4398_s24  ;;  %s5297_s24 = sld [smem:[#allocation80_spill]] }
 0x41b   : > { %637 = vrot.lane.b32.xlu0 %v2546_v3, %s3436_s7 }
 0x41f   : > { %641 = vrot.lane.b32.xlu0 %v2548_v23, %s3436_s7  ;;  %s4352_s7 = sld [smem:[#allocation16 + $0x185]] }
 0x425   : > { %5234 = sst [smem:[#allocation67_spill]] %s4352_s7  ;;  %s4370_s7 = sld [smem:[#allocation16 + $0x206]] }
 0x426   : > { %s5258_s28 = sld [smem:[#allocation67_spill]] }
 0x42b   : > { %5240 = sst [smem:[#allocation77_spill]] %s4370_s7  ;;  %s4624_s7 = sld [smem:[#allocation16 + $0x304]] }
 0x42c   : > { %v1616_v53 = vstv %s5258_s28  ;;  %s5296_s12 = sld [smem:[#allocation77_spill]]  ;;  %s4622_s28 = sld [smem:[#allocation17 + $0x5]] }
 0x47d   : > { %v1459_v35 = vpop.xlane.xlu0 %1458 }
 0x47e   : > { %v1456_v30 = vpop.xlane.xlu1 %1455  ;;  %3091 = vrcp.f32 %v1459_v35 }
 0x47f   : > { %3093 = vrcp.f32 %v1456_v30 }
 0x482   : > { %v1462_v8 = vpop.xlane.xlu1 %1461 }
 0x483   : > { %3095 = vrcp.f32 %v1462_v8 }
 0x486   : > { %v1468_v58 = vpop.xlane.xlu1 %1467  ;;  %v1465_v59 = vpop.xlane.xlu0 %1464 }
 0x487   : > { %3097 = vrcp.f32 %v1468_v58 }
 0x488   : > { %v3092_v0 = vpop.eup %3091  ;;  %3099 = vrcp.f32 %v1465_v59 }
 0x489   : > { %v3094_v3 = vpop.eup %3093  ;;  %v4456_v23 = vmul.f32 %v3092_v0, %v4237_v14 }
 0x48a   : > { %v4462_v58 = vmul.f32 %v3094_v3, %v4239_v15  ;;  %v1474_v59 = vpop.xlane.xlu1 %1473  ;;  %v1471_v29 = vpop.xlane.xlu0 %1470 }
 0x48b   : > { %3101 = vrcp.f32 %v1474_v59  ;;  %v1499_v15 = vmul.f32 %v1498_v25, %v4456_v23  ;;  %v1533_v3 = vmul.f32 %v1532_v31, %v4456_v23  ;;  %v1567_v28 = vmul.f32 %v1566_v4, %v4456_v23 }
 0x48c   : > { %3103 = vrcp.f32 %v1471_v29  ;;  %v1496_v14 = vmul.f32 %v1495_v24, %v4462_v58  ;;  %v1530_v29 = vmul.f32 %v1529_v27, %v4462_v58  ;;  %v1564_v25 = vmul.f32 %v1563_v56, %v4462_v58 }
 0x48d   : > { %v3096_v59 = vpop.eup %3095  ;;  %v1598_v31 = vmul.f32 %v1597_v5, %v4462_v58  ;;  %v1601_v24 = vmul.f32 %v1600_v6, %v4456_v23  ;;  %v1632_v27 = vmul.f32 %v1631_v36, %v4462_v58  ;;  %v1635_v63 = vmul.f32 %v1634_v41, %v4456_v23 }
 0x48e   : > { %v4492_v4 = vmul.f32 %v3096_v59, %v4245_v45  ;;  %v634_v30 = vpop.permute.xlu1 %633  ;;  %v1477_v0 = vpop.xlane.xlu0 %1476  ;;  %v1666_v56 = vmul.f32 %v1665_v38, %v4462_v58  ;;  %v1669_v5 = vmul.f32 %v1668_v2, %v4456_v23 }
 0x48f   : > { %655 = vst.msk [vmem:[#allocation3 + $0x8] sm:$0xf] %vm604_vm2, %v634_v30  ;;  %3105 = vrcp.f32 %v1477_v0  ;;  %v1500_v30 = vadd.f32 %v1499_v15, %v1496_v14  ;;  %v1534_v0 = vadd.f32 %v1533_v3, %v1530_v29  ;;  %v1602_v35 = vadd.f32 %v1601_v24, %v1598_v31 }
 0x490   : > { %v1503_v59 = vmul.f32 %v1502_v32, %v4492_v4  ;;  %v1537_v6 = vmul.f32 %v1536_v33, %v4492_v4  ;;  %v1571_v36 = vmul.f32 %v1570_v34, %v4492_v4  ;;  %v1605_v41 = vmul.f32 %v1604_v7, %v4492_v4 }
 0x491   : > { %v3098_v8 = vpop.eup %3097  ;;  %v1639_v38 = vmul.f32 %v1638_v43, %v4492_v4  ;;  %v1568_v34 = vadd.f32 %v1567_v28, %v1564_v25  ;;  %v1636_v7 = vadd.f32 %v1635_v63, %v1632_v27  ;;  %v4534_v2 = vmul.f32 %v1672_v26, %v4492_v4 }
 0x492   : > { %v3100_v45 = vpop.eup %3099  ;;  %v4526_v32 = vmul.f32 %v3098_v8, %v4250_v17  ;;  %v636_v62 = vpop.permute.xlu1 %635  ;;  %v1504_v43 = vadd.f32 %v1503_v59, %v1500_v30  ;;  %v1538_v17 = vadd.f32 %v1537_v6, %v1534_v0  ;;  %v1606_v8 = vadd.f32 %v1605_v41, %v1602_v35 }
 0x493   : > { %v632_v33 = vpop.permute.xlu0 %631  ;;  %v4529_v14 = vmul.f32 %v3100_v45, %v4253_v19  ;;  %656 = vst.msk [vmem:[#allocation3 + $0xc] sm:$0xf] %vm604_vm2, %v636_v62  ;;  %v1572_v28 = vadd.f32 %v1571_v36, %v1568_v34  ;;  %v1640_v15 = vadd.f32 %v1639_v38, %v1636_v7  ;;  %v4536_v3 = vadd.f32 %v1669_v5, %v1666_v56 }
 0x494   : > { %654 = vst.msk [vmem:[#allocation3 + $0x4] sm:$0xf] %vm604_vm2, %v632_v33  ;;  %v1511_v62 = vmul.f32 %v1510_v37, %v4526_v32  ;;  %v1579_v37 = vmul.f32 %v1578_v52, %v4526_v32 }
 0x495   : > { %v3102_v63 = vpop.eup %3101  ;;  %v1507_v19 = vmul.f32 %v1506_v54, %v4529_v14  ;;  %v1541_v29 = vmul.f32 %v1540_v47, %v4529_v14  ;;  %v1575_v26 = vmul.f32 %v1574_v40, %v4529_v14  ;;  %v1545_v54 = vmul.f32 %v1544_v39, %v4526_v32 }
 0x496   : > { %v3104_v35 = vpop.eup %3103  ;;  %v4551_v25 = vmul.f32 %v3102_v63, %v4259_v51  ;;  %v640_v31 = vpop.permute.xlu1 %639  ;;  %v1609_v47 = vmul.f32 %v1608_v11, %v4529_v14  ;;  %v1613_v39 = vmul.f32 %v1612_v42, %v4526_v32  ;;  %v1647_v63 = vmul.f32 %v1646_v57, %v4526_v32 }
 0x497   : > { %v638_v24 = vpop.permute.xlu0 %637  ;;  %v4563_v40 = vmul.f32 %v3104_v35, %v4261_v21  ;;  %658 = vst.msk [vmem:[#allocation3 + $0x14] sm:$0xf] %vm604_vm2, %v640_v31  ;;  %v1508_v51 = vadd.f32 %v1507_v19, %v1504_v43  ;;  %v1542_v27 = vadd.f32 %v1541_v29, %v1538_v17  ;;  %v1576_v11 = vadd.f32 %v1575_v26, %v1572_v28 }
 0x498   : > { %657 = vst.msk [vmem:[#allocation3 + $0x10] sm:$0xf] %vm604_vm2, %v638_v24  ;;  %v1519_v52 = vmul.f32 %v1518_v10, %v4551_v25  ;;  %v1553_v56 = vmul.f32 %v1552_v46, %v4551_v25  ;;  %v1643_v21 = vmul.f32 %v1642_v16, %v4529_v14  ;;  %v1610_v0 = vadd.f32 %v1609_v47, %v1606_v8 }
 0x499   : > { %v3106_v45 = vpop.eup %3105  ;;  %v1512_v5 = vadd.f32 %v1511_v62, %v1508_v51  ;;  %v1515_v59 = vmul.f32 %v1514_v9, %v4563_v40  ;;  %v1546_v6 = vadd.f32 %v1545_v54, %v1542_v27  ;;  %v1549_v42 = vmul.f32 %v1548_v12, %v4563_v40 }
 0x49a   : > { %v4586_v10 = vmul.f32 %v3106_v45, %v4267_v22  ;;  %v644_v46 = vpop.permute.xlu1 %643  ;;  %v1580_v41 = vadd.f32 %v1579_v37, %v1576_v11  ;;  %v1583_v30 = vmul.f32 %v1582_v13, %v4563_v40  ;;  %v1587_v38 = vmul.f32 %v1586_v50, %v4551_v25 }
 0x49b   : > { %v642_v36 = vpop.permute.xlu0 %641  ;;  %v1783_v16 = vld [vmem:[#allocation3 + $0x4] sm:$0xf]  ;;  %660 = vst.msk [vmem:[#allocation3 + $0x1c] sm:$0xf] %vm604_vm2, %v644_v46  ;;  %v1516_v22 = vadd.f32 %v1515_v59, %v1512_v5  ;;  %v1550_v12 = vadd.f32 %v1549_v42, %v1546_v6  ;;  %v1614_v28 = vadd.f32 %v1613_v39, %v1610_v0  ;;  %v1617_v50 = vmul.f32 %v1616_v53, %v4563_v40 }
 0x49c   : > { %659 = vst.msk [vmem:[#allocation3 + $0x18] sm:$0xf] %vm604_vm2, %v642_v36  ;;  %v1841_v9 = vsel %vm1793_vm4, %v1783_v16, 0  ;;  %v1523_v13 = vmul.f32 %v1522_v49, %v4586_v10  ;;  %v1557_v33 = vmul.f32 %v1556_v55, %v4586_v10  ;;  %v1584_v34 = vadd.f32 %v1583_v30, %v1580_v41 }
 0x49d   : > { %2852 = vmatpush3.bf16.msra.mxu1 %v1841_v9  ;;  %v1591_v7 = vmul.f32 %v1590_v1, %v4586_v10  ;;  %v1520_v43 = vadd.f32 %v1519_v52, %v1516_v22  ;;  %v1554_v17 = vadd.f32 %v1553_v56, %v1550_v12  ;;  %v1621_v49 = vmul.f32 %v1620_v44, %v4551_v25 }
 0x49e   : > { %2863 = vmatprep.subr.bf16.mxu1 %v5204_v18  ;;  %v1588_v8 = vadd.f32 %v1587_v38, %v1584_v34  ;;  %v1644_v55 = vadd.f32 %v1643_v21, %v1640_v15  ;;  %v1618_v62 = vadd.f32 %v1617_v50, %v1614_v28  ;;  %v1625_v29 = vmul.f32 %v1624_v20, %v4586_v10 }
 0x49f   : > { %v1524_v1 = vadd.f32 %v1523_v13, %v1520_v43  ;;  %v1558_v19 = vadd.f32 %v1557_v33, %v1554_v17  ;;  %v1651_v57 = vmul.f32 %v1650_v61, %v4563_v40  ;;  %v1674_v15 = vadd.f32 %v4534_v2, %v4536_v3  ;;  %v1784_v61 = vld [vmem:[#allocation3 + $0x8] sm:$0xf]  ;;  %v1785_v2 = vld [vmem:[#allocation3 + $0xc] sm:$0xf] }
 0x4a0   : > { %v1592_v53 = vadd.f32 %v1591_v7, %v1588_v8  ;;  %v1648_v44 = vadd.f32 %v1647_v63, %v1644_v55  ;;  %v1622_v35 = vadd.f32 %v1621_v49, %v1618_v62  ;;  %v5300_v31 = vstv %s5296_s12  ;;  %s5320_s12 = sld [smem:[#allocation37_spill]] }
 0x4a1   : > { %v1527_v20 = vadd.f32 %v1526_v60, %v1524_v1  ;;  %v1561_v26 = vadd.f32 %v1560_v48, %v1558_v19  ;;  %v1655_v24 = vmul.f32 %v5300_v31, %v4551_v25  ;;  %v5301_v3 = vstv %s5297_s24 }
 0x4a2   : > { %v4648_v54 = vadd.f32 %v5301_v3, %v1592_v53  ;;  %v1652_v37 = vadd.f32 %v1651_v57, %v1648_v44  ;;  %v5303_v60 = vstv %s5298_s8  ;;  %v5304_v47 = vstv %s5299_s0  ;;  %v1786_v44 = vld [vmem:[#allocation3 + $0x10] sm:$0xf]  ;;  %v1787_v57 = vld [vmem:[#allocation3 + $0x14] sm:$0xf]  ;;  %s5321_s8 = sld [smem:[#allocation95_spill]] }
 0x4a3   : > { %v1659_v48 = vmul.f32 %v5303_v60, %v4586_v10  ;;  %v1677_v51 = vmul.f32 %v5304_v47, %v4529_v14  ;;  %1766 = vst.msk [vmem:[%s4660_s4] sm:$0xff] %vm765_vm3, %v1527_v20  ;;  %v1774_v27 = vpack.c.bf16 %v1527_v20, %v1527_v20  ;;  %1767 = vst.msk [vmem:[%s4660_s4 + $0x8] sm:$0xff] %vm765_vm3, %v1561_v26  ;;  %v5306_v56 = vstv %s4422_s23  ;;  %s5309_s23 = sld [smem:[#allocation60_spill]] }
 0x4a4   : > { %v1775_v39 = vpack.c.bf16 %v1561_v26, %v1561_v26  ;;  %v1626_v52 = vadd.f32 %v1625_v29, %v1622_v35  ;;  %v1700_v11 = vmul.f32 %v5306_v56, %v4462_v58  ;;  %1768 = vst.msk [vmem:[%s4660_s4 + $0x10] sm:$0xff] %vm765_vm3, %v4648_v54  ;;  %v1656_v21 = vadd.f32 %v1655_v24, %v1652_v37 }
 0x4a5   : > { %v1678_v45 = vadd.f32 %v1677_v51, %v1674_v15  ;;  %v5307_v5 = vstv %s4406_s9  ;;  %v5308_v6 = vstv %s5302_s20  ;;  %2848 = vmatmul.mubr.msk.bf16.vlgmr.msra.gmra.mrb[16].mxu0 %vm765_vm3, %v1774_v27  ;;  %v1887_v46 = vsel %vm1793_vm4, %v1784_v61, 0  ;;  %s5312_s9 = sld [smem:[#allocation59_spill]] }
 0x4a6   : > { %v1681_v59 = vmul.f32 %v5307_v5, %v4526_v32  ;;  %v1685_v42 = vmul.f32 %v5308_v6, %v4563_v40  ;;  %2854 = vmatmul.mubr.msk.bf16.vlgmr.msra.gmra.mrb[24].mxu1 %vm765_vm3, %v1775_v39  ;;  %v1933_v36 = vsel %vm1793_vm4, %v1785_v2, 0  ;;  %v5310_v16 = vstv %s5305_s6  ;;  %2858 = vmatpush3.bf16.msra.mxu0 %v1887_v46  ;;  %p5322_p11 = scmp.ne.s32.totalorder %s5320_s12, 0 }
 0x4a7   : > { %v1629_v41 = vadd.f32 %v5310_v16, %v1626_v52  ;;  %v5311_v30 = vstv %s4416_s1  ;;  %2864 = vmatpush3.bf16.msra.mxu1 %v1933_v36  ;;  %v1660_v9 = vadd.f32 %v1659_v48, %v1656_v21  ;;  %v5313_v12 = vstv %s4424_s19  ;;  %2859 = vmatprep.mubr.msk.bf16.mxu0 %vm3428_vm0, %v5204_v18  ;;  %s4731_s1 = sld [smem:[#allocation16 + $0x387]]  ;;  %s4735_s19 = sld [smem:[#allocation17 + $0x6]] }
 0x4a8   : > { %v1689_v0 = vmul.f32 %v5311_v30, %v4551_v25  ;;  %v1682_v22 = vadd.f32 %v1681_v59, %v1678_v45  ;;  %v1703_v38 = vmul.f32 %v5313_v12, %v4456_v23  ;;  %v1736_v13 = vstv %s4617_s22  ;;  %2865 = vmatprep.mubr.msk.bf16.mxu1 %vm3428_vm0, %v5204_v18  ;;  %2869 = vmatprep.subr.bf16.mxu0 %v5204_v18  ;;  %v1788_v45 = vld [vmem:[#allocation3 + $0x18] sm:$0xf]  ;;  %s5319_s22 = sld [smem:[#allocation33_spill]] }
 0x4a9   : > { %1769 = vst.msk [vmem:[%s4660_s4 + $0x18] sm:$0xff] %vm765_vm3, %v1629_v41  ;;  %v5314_v33 = vstv %s4429_s3  ;;  %v5315_v7 = vstv %s5309_s23  ;;  %v5316_v17 = vstv %s4448_s17  ;;  %2875 = vmatprep.subr.bf16.mxu1 %v5204_v18  ;;  %s4722_s3 = sld [smem:[#allocation16 + $0x386]]  ;;  %v1776_v24 = vpack.c.bf16 %v4648_v54, %v4648_v54  ;;  %s4758_s17 = sld [smem:[#allocation17 + $0x7]] }
 0x4aa   : > { %v1693_v34 = vmul.f32 %v5314_v33, %v4586_v10  ;;  %v1707_v43 = vmul.f32 %v5315_v7, %v4492_v4  ;;  %v1711_v28 = vmul.f32 %v5316_v17, %v4529_v14  ;;  %v1714_v50 = vstv %s4624_s7 }
 0x4ab   : > { %v5317_v8 = vstv %s5312_s9  ;;  %v1686_v55 = vadd.f32 %v1685_v42, %v1682_v22  ;;  %v1704_v63 = vadd.f32 %v1703_v38, %v1700_v11  ;;  %v1740_v1 = vstv %s4633_s5  ;;  %v1789_v42 = vld [vmem:[#allocation3 + $0x1c] sm:$0xf]  ;;  %s2297_s5 = scalar_lea.sflag [#allocation21], %s5290_s13 }
 0x4ac   : > { %v4715_v49 = vadd.f32 %v5317_v8, %v1660_v9  ;;  %v1696_v19 = vstv %s4622_s28  ;;  %v1718_v62 = vstv %s4631_s30  ;;  %v1722_v29 = vstv %s4642_s25  ;;  %s2325_s30 = sshll.u32 %s4660_s4, 4  ;;  %s4804_s30 = int_to_ptr.vmem [resolvable:$true] %s2325_s30 }
 0x4ad   : > { %v1744_v53 = vstv %s4644_s21  ;;  %v1690_v15 = vadd.f32 %v1689_v0, %v1686_v55  ;;  %v1708_v20 = vadd.f32 %v1707_v43, %v1704_v63  ;;  %v1726_v26 = vstv %s4656_s14  ;;  %2860 = vmatmul.mubr.msk.bf16.vlgmr.msra.gmra.mrb[20].mxu0 %vm765_vm3, %v1776_v24  ;;  %s3281_s25 = scalar_lea.vmem %s4804_s30, 1024  ;;  %s3444_s21 = smov [#allocation20]  }
 0x4ae   : > { %1770 = vst.msk [vmem:[%s4660_s4 + $0x20] sm:$0xff] %vm765_vm3, %v4715_v49  ;;  %v5318_v35 = vstv %s4450_s2  ;;  %v1777_v61 = vpack.c.bf16 %v1629_v41, %v1629_v41  ;;  %v1737_v2 = vmul.f32 %v1736_v13, %v4456_v23  ;;  %v1741_v3 = vmul.f32 %v1740_v1, %v4492_v4  ;;  %2871 = vmatprep.mubr.msk.bf16.mxu0 %vm3428_vm0, %v5204_v18  ;;  %s3437_s2 = smov 8   ;;  %s2725_s28 = sshll.u32 %s5319_s22, 10 }
 0x4af   : > { %v1734_v31 = vmul.f32 %v5318_v35, %v4462_v58  ;;  %v1694_v37 = vadd.f32 %v1693_v34, %v1690_v15  ;;  %v1712_v60 = vadd.f32 %v1711_v28, %v1708_v20  ;;  %v1715_v48 = vmul.f32 %v1714_v50, %v4526_v32  ;;  %v3071_v28 = vld [vmem:[#allocation11] sm:$0xff]   ;;  %v3074_v20 = vld [vmem:[#allocation11 + $0x18] sm:$0xff]   ;;  %s4801_s0 = scalar_lea.hbm %s5321_s8, %s2725_s28  ;;  %p3282_p6 = scmp.ne.s32.totalorder %s4804_s30, %s3281_s25 }
 0x4b0   : > { %v1719_v58 = vmul.f32 %v1718_v62, %v4563_v40  ;;  %2866 = vmatmul.mubr.msk.bf16.vlgmr.msra.gmra.mrb[28].mxu1 %vm765_vm3, %v1777_v61  ;;  %v1979_v54 = vsel %vm1793_vm4, %v1786_v44, 0  ;;  %v2025_v47 = vsel %vm1793_vm4, %v1787_v57, 0  ;;  %v1745_v51 = vmul.f32 %v1744_v53, %v4529_v14  ;;  %v3073_v44 = vld [vmem:[#allocation11 + $0x10] sm:$0xff]   ;;  %s3285_s20 = sshll.u32 %s3444_s21, 4  ;;  %s3286_s20 = int_to_ptr.vmem [resolvable:$false] %s3285_s20 }
 0x4b1   : > { %v1738_v23 = vadd.f32 %v1737_v2, %v1734_v31  ;;  %2870 = vmatpush3.bf16.msra.mxu0 %v1979_v54  ;;  %2876 = vmatpush3.bf16.msra.mxu1 %v2025_v47  ;;  %v1697_v4 = vadd.f32 %v1696_v19, %v1694_v37  ;;  %v1716_v27 = vadd.f32 %v1715_v48, %v1712_v60  ;;  %v1748_v39 = vstv %s4691_s18  ;;  %p3283_p12 = pnand %p3282_p6, %p5322_p11  ;;  %s3287_s14 = scalar_lea.vmem %s3286_s20, 2048 }
 0x4b2   : > { %v1752_v52 = vstv %s4693_s29  ;;  %2877 = vmatprep.mubr.msk.bf16.mxu1 %vm3428_vm0, %v5204_v18  ;;  %2881 = vmatprep.subr.bf16.mxu0 %v5204_v18  ;;  %v1723_v11 = vmul.f32 %v1722_v29, %v4551_v25  ;;  %v1727_v21 = vmul.f32 %v1726_v26, %v4586_v10  ;;  %v1749_v59 = vmul.f32 %v1748_v39, %v4526_v32  ;;  %p3288_p7 = scmp.lt.s32.totalorder %s4804_s30, %s3286_s20  ;;  %p3289_p9 = scmp.lt.s32.totalorder %s3287_s14, %s3281_s25 }
 0x4b3   : > { %v1742_v56 = vadd.f32 %v1741_v3, %v1738_v23  ;;  %2887 = vmatprep.subr.bf16.mxu1 %v5204_v18  ;;  %1771 = vst.msk [vmem:[%s4660_s4 + $0x28] sm:$0xff] %vm765_vm3, %v1697_v4  ;;  %v1720_v14 = vadd.f32 %v1719_v58, %v1716_v27  ;;  %v1753_v6 = vmul.f32 %v1752_v52, %v4563_v40  ;;  %v1756_v36 = vstv %s4722_s3  ;;  %p3284_p13 = pneg %p3283_p12 }
 0x4b4   : > { %v1760_v16 = vstv %s4731_s1  ;;  %v1778_v41 = vpack.c.bf16 %v4715_v49, %v4715_v49  ;;  %v1779_v30 = vpack.c.bf16 %v1697_v4, %v1697_v4  ;;  %v1730_v0 = vstv %s4735_s19  ;;  %v3072_v49 = vld [vmem:[#allocation11 + $0x8] sm:$0xff]   ;;  %p3290_p10 = por %p3289_p9, %p3288_p7 }
 0x4b5   : > { %v1746_v5 = vadd.f32 %v1745_v51, %v1742_v56  ;;  %v1724_v46 = vadd.f32 %v1723_v11, %v1720_v14  ;;  %v2071_v22 = vsel %vm1793_vm4, %v1788_v45, 0  ;;  %v2117_v32 = vsel %vm1793_vm4, %v1789_v42, 0 }
 0x4b6   : > { %2872 = vmatmul.mubr.msk.bf16.vlgmr.msra.gmra.mrb[24].mxu0 %vm765_vm3, %v1778_v41  ;;  %v1757_v38 = vmul.f32 %v1756_v36, %v4551_v25  ;;  %v1761_v13 = vmul.f32 %v1760_v16, %v4586_v10  ;;  %v1764_v7 = vstv %s4758_s17  ;;  %p3291_p8 = pnand %p3290_p10, %p3284_p13 }
 0x4b7   : > { %v1750_v9 = vadd.f32 %v1749_v59, %v1746_v5  ;;  %v1728_v12 = vadd.f32 %v1727_v21, %v1724_v46  ;;  %2882 = vmatpush3.bf16.msra.mxu0 %v2071_v22  ;;  %2883 = vmatprep.mubr.msk.bf16.mxu0 %vm3428_vm0, %v5204_v18 }
 0x4b8   : > { %2878 = vmatmul.mubr.msk.bf16.vlgmr.msra.gmra.mrb[32].mxu1 %vm765_vm3, %v1779_v30  ;;  %2893 = vmatprep.subr.bf16.mxu0 %v5204_v18 }
 0x4b9   : > { %v1754_v40 = vadd.f32 %v1753_v6, %v1750_v9  ;;  %2888 = vmatpush3.bf16.msra.mxu1 %v2117_v32  ;;  %v1731_v33 = vadd.f32 %v1730_v0, %v1728_v12  ;;  %2889 = vmatprep.mubr.msk.bf16.mxu1 %vm3428_vm0, %v5204_v18 }
 0x4bb   : > { %v1758_v34 = vadd.f32 %v1757_v38, %v1754_v40  ;;  %1772 = vst.msk [vmem:[%s4660_s4 + $0x30] sm:$0xff] %vm765_vm3, %v1731_v33  ;;  %v1780_v17 = vpack.c.bf16 %v1731_v33, %v1731_v33 }
 0x4bd   : > { %v1762_v43 = vadd.f32 %v1761_v13, %v1758_v34 }
 0x4be   : > { %2884 = vmatmul.mubr.msk.bf16.vlgmr.msra.gmra.mrb[28].mxu0 %vm765_vm3, %v1780_v17 }
 0x4bf   : > { %v1765_v25 = vadd.f32 %v1764_v7, %v1762_v43  ;;  %2901 = vmatprep.mubr.msk.bf16.mxu0 %vm3428_vm0, %v5204_v18  ;;  %2894 = vmatpush3.bf16.msra.mxu0 %v3071_v28 }
 0x4c0   : > { %2895 = vmatprep.subr.bf16.mxu0 %v5204_v18 }
 0x4c1   : > { %1773 = vst.msk [vmem:[%s4660_s4 + $0x38] sm:$0xff] %vm765_vm3, %v1765_v25  ;;  %v1781_v10 = vpack.c.bf16 %v1765_v25, %v1765_v25 }
 0x4c3   : > { %2890 = vmatmul.mubr.msk.bf16.vlgmr.msra.gmra.mrb[36].mxu1 %vm765_vm3, %v1781_v10  ;;  %2896 = vmatpush3.bf16.msra.mxu0 %v3072_v49 }
 0x4c4   : > { %2897 = vmatprep.subr.bf16.mxu0 %v5204_v18 }
 0x4c7   : > { %2898 = vmatpush3.bf16.msra.mxu0 %v3073_v44 }
 0x4c8   : > { %2899 = vmatprep.subr.bf16.mxu0 %v5204_v18 }
 0x4cb   : > { %2900 = vmatpush3.bf16.msra.mxu0 %v3074_v20 }
 0x578   : > { %v4787_v50 = vpop.f32.mrb[16].mxu0 }
 0x579   : > { %v1877_v8 = vpop.f32.mrb[24].mxu1  ;;  %v2849_v63 = vpop.f32.mrb[17].mxu0  ;;  %v2159_v46 = vpack.c.bf16 %v4787_v50, %v4787_v50 }
 0x57a   : > { %v2160_v55 = vpack.c.bf16 %v1877_v8, %v1877_v8  ;;  %v2855_v1 = vpop.f32.mrb[25].mxu1  ;;  %v1834_v19 = vpop.f32.mrb[18].mxu0 }
 0x57b   : > { %v1880_v62 = vpop.f32.mrb[26].mxu1  ;;  %v2850_v29 = vpop.f32.mrb[19].mxu0 }
 0x57c   : > { %2168 = vrot.lane.b32.xlu0 %v2160_v55, %s3437_s2  ;;  %v2856_v53 = vpop.f32.mrb[27].mxu1 }
 0x580   : > { %v1923_v57 = vpop.f32.mrb[20].mxu0 }
 0x581   : > { %v2161_v26 = vpack.c.bf16 %v1923_v57, %v1923_v57  ;;  %v2861_v31 = vpop.f32.mrb[21].mxu0 }
 0x582   : > { %v1926_v61 = vpop.f32.mrb[22].mxu0 }
 0x583   : > { %v1969_v15 = vpop.f32.mrb[28].mxu1  ;;  %2171 = vrot.lane.b32.xlu1 %v2161_v26, %s3439_s10  ;;  %v2862_v37 = vpop.f32.mrb[23].mxu0 }
 0x584   : > { %v2162_v35 = vpack.c.bf16 %v1969_v15, %v1969_v15  ;;  %v2867_v24 = vpop.f32.mrb[29].mxu1 }
 0x585   : > { %v1972_v2 = vpop.f32.mrb[30].mxu1 }
 0x586   : > { %2174 = vrot.lane.b32.xlu0 %v2162_v35, %s3438_s16  ;;  %v2868_v3 = vpop.f32.mrb[31].mxu1 }
 0x589   : > { %v2015_v60 = vpop.f32.mrb[24].mxu0 }
 0x58a   : > { %v2163_v58 = vpack.c.bf16 %v2015_v60, %v2015_v60  ;;  %v2873_v47 = vpop.f32.mrb[25].mxu0 }
 0x58b   : > { %v2061_v48 = vpop.f32.mrb[32].mxu1  ;;  %v2018_v51 = vpop.f32.mrb[26].mxu0 }
 0x58c   : > { %v2164_v54 = vpack.c.bf16 %v2061_v48, %v2061_v48  ;;  %v2879_v23 = vpop.f32.mrb[33].mxu1  ;;  %2177 = vrot.lane.b32.xlu1 %v2163_v58, %s3441_s26  ;;  %v2874_v27 = vpop.f32.mrb[27].mxu0 }
 0x58d   : > { %v2064_v4 = vpop.f32.mrb[34].mxu1 }
 0x58e   : > { %2180 = vrot.lane.b32.xlu0 %v2164_v54, %s3440_s11  ;;  %v2880_v18 = vpop.f32.mrb[35].mxu1 }
 0x591   : > { %v2107_v39 = vpop.f32.mrb[28].mxu0 }
 0x592   : > { %v2165_v52 = vpack.c.bf16 %v2107_v39, %v2107_v39  ;;  %v2885_v56 = vpop.f32.mrb[29].mxu0 }
 0x593   : > { %v2110_v11 = vpop.f32.mrb[30].mxu0 }
 0x594   : > { %2183 = vrot.lane.b32.xlu1 %v2165_v52, %s3442_s27  ;;  %v2886_v5 = vpop.f32.mrb[31].mxu0 }
 0x596   : > { %v2153_v14 = vpop.f32.mrb[36].mxu1 }
 0x597   : > { %v2166_v21 = vpack.c.bf16 %v2153_v14, %v2153_v14  ;;  %v2891_v45 = vpop.f32.mrb[37].mxu1 }
 0x598   : > { %v2156_v59 = vpop.f32.mrb[38].mxu1 }
 0x599   : > { %2186 = vrot.lane.b32.xlu0 %v2166_v21, %s3443_s15  ;;  %v2892_v6 = vpop.f32.mrb[39].mxu1 }
 0x5ee   : > { %v2169_v42 = vpop.permute.xlu0 %2168 }
 0x5ef   : > { %v2190_v16 = vsel %vm765_vm3, %v2159_v46, %v2169_v42 }
 0x5f5   : > { %v2172_v36 = vpop.permute.xlu1 %2171 }
 0x5f6   : > { %v2193_v30 = vsel %vm2191_vm5, %v2190_v16, %v2172_v36 }
 0x5f8   : > { %v2175_v41 = vpop.permute.xlu0 %2174 }
 0x5f9   : > { %v2196_v9 = vsel %vm2194_vm6, %v2193_v30, %v2175_v41 }
 0x5fe   : > { %v2178_v0 = vpop.permute.xlu1 %2177 }
 0x5ff   : > { %v2199_v12 = vsel %vm2197_vm7, %v2196_v9, %v2178_v0 }
 0x600   : > { %v2181_v22 = vpop.permute.xlu0 %2180 }
 0x601   : > { %v2202_v32 = vsel %vm2200_vm8, %v2199_v12, %v2181_v22 }
 0x606   : > { %v2184_v40 = vpop.permute.xlu1 %2183 }
 0x607   : > { %v2205_v38 = vsel %vm2203_vm9, %v2202_v32, %v2184_v40 }
 0x60b   : > { %v2187_v13 = vpop.permute.xlu0 %2186 }
 0x60c   : > { %v2208_v33 = vsel %vm2206_vm10, %v2205_v38, %v2187_v13 }
 0x60d   : > { %2902 = vmatmul.mubr.msk.bf16.vlgmr.msra.gmra.mrb[32].mxu0 %vm537_vm1, %v2208_v33 }
 0x60e   : > { %3294 = shalt.err (!%p3291_p8)
}
 0x60f   : > { %s3295_s4 = scalar_lea.hbm %s4801_s0, 1024  ;;  %s3299_s9 = scalar_lea.hbm %s5321_s8, 2048 }
 0x610   : > { %p3296_p0 = scmp.ne.s32.totalorder %s4801_s0, %s3295_s4  ;;  %p3300_p4 = scmp.lt.u32.totalorder %s4801_s0, %s5321_s8 }
 0x611   : > { %p3301_p2 = scmp.lt.u32.totalorder %s3299_s9, %s3295_s4  ;;  %p3303_p6 = scmp.lt.u32.totalorder %s3295_s4, %s4801_s0 }
 0x612   : > { %p3297_p1 = pnand %p3296_p0, %p5322_p11 }
 0x613   : > { %p3302_p5 = por %p3301_p2, %p3300_p4 }
 0x614   : > { %p3298_p3 = pneg %p3297_p1 }
 0x615   : > { %p3304_p12 = por %p3303_p6, %p3302_p5 }
 0x617   : > { %p3305_p13 = pnand %p3304_p12, %p3298_p3 }
 0x619   : > { %3308 = shalt.err (!%p3305_p13)
}
 0x61a   : > { %s3445_s3 = smov 128   ;;  %s5323_s17 = sld [smem:[#allocation89_spill]] }
 0x61b   : > { %2936 = dma.vmem_to_hbm [thread:$0]  (%p5322_p11), %s4804_s30, 1024, %s4801_s0, %s2297_s5, %s3445_s3, %s3445_s3, %s3437_s2  }
 0x61c   : > { %s2719_s16 = sshll.u32 %s5319_s22, 7  ;;  %s5324_s10 = sshll.u32 %s5290_s13, 3 }
 0x61d   : > { %s490_s11 = scalar_lea.vmem [#allocation19], %s5324_s10  ;;  %s5325_s28 = sld [smem:[#allocation94_spill]] }
 0x61e   : > { %s2311_s26 = sshll.u32 %s490_s11, 4  ;;  %s2292_s2 = scalar_lea.sflag [#allocation6], %s5290_s13  ;;  %s4842_s26 = int_to_ptr.vmem [resolvable:$true] %s2311_s26 }
 0x61f   : > { %s3309_s22 = scalar_lea.vmem %s4842_s26, 128  ;;  %s3446_s7 = smov [#allocation19]  }
 0x620   : > { %v2711_v34 = vld [vmem:[%s5323_s17] ss:$0 sm:$0xff]  ;;  %p3310_p7 = scmp.ne.s32.totalorder %s4842_s26, %s3309_s22  ;;  %s3313_s0 = sshll.u32 %s3446_s7, 4  ;;  %s3314_s0 = int_to_ptr.vmem [resolvable:$false] %s3313_s0 }
 0x621   : > { %s3315_s30 = scalar_lea.vmem %s3314_s0, 256  ;;  %p3316_p8 = scmp.lt.s32.totalorder %s4842_s26, %s3314_s0 }
 0x622   : > { %p3311_p9 = pnand %p3310_p7, %p5322_p11  ;;  %p3317_p0 = scmp.lt.s32.totalorder %s3315_s30, %s3309_s22 }
 0x623   : > { %s4840_s24 = scalar_lea.hbm %s5325_s28, %s2719_s16 }
 0x624   : > { %p3312_p10 = pneg %p3311_p9  ;;  %p3318_p1 = por %p3317_p0, %p3316_p8 }
 0x626   : > { %p3319_p3 = pnand %p3318_p1, %p3312_p10 }
 0x6e0   : > { %v2284_v7 = vpop.f32.mrb[32].mxu0 }
 0x6e1   : > { %v2285_v43 = vadd.f32 %v2711_v34, %v2284_v7  ;;  %v2903_v17 = vpop.f32.mrb[33].mxu0 }
 0x6e2   : > { %v2287_v25 = vpop.f32.mrb[34].mxu0 }
 0x6e3   : > { %v2904_v10 = vpop.f32.mrb[35].mxu0  ;;  %2290 = vst.msk [vmem:[%s490_s11] sm:$0xff] %vm537_vm1, %v2285_v43 }
 0x6e4   : > { %3322 = shalt.err (!%p3319_p3)
}
 0x6e5   : > { %s3323_s13 = scalar_lea.hbm %s4840_s24, 128  ;;  %s3327_s21 = scalar_lea.hbm %s5325_s28, 256 }
 0x6e6   : > { %p3324_p4 = scmp.ne.s32.totalorder %s4840_s24, %s3323_s13  ;;  %p3328_p6 = scmp.lt.u32.totalorder %s4840_s24, %s5325_s28 }
 0x6e7   : > { %p3329_p12 = scmp.lt.u32.totalorder %s3327_s21, %s3323_s13  ;;  %p3331_p7 = scmp.lt.u32.totalorder %s3323_s13, %s4840_s24 }
 0x6e8   : > { %p3325_p2 = pnand %p3324_p4, %p5322_p11 }
 0x6e9   : > { %p3330_p13 = por %p3329_p12, %p3328_p6 }
 0x6ea   : > { %p3326_p5 = pneg %p3325_p2 }
 0x6eb   : > { %p3332_p9 = por %p3331_p7, %p3330_p13 }
 0x6ed   : > { %p3333_p10 = pnand %p3332_p9, %p3326_p5 }
 0x6ef   : > { %3336 = shalt.err (!%p3333_p10)
}
 0x6f0   : > { %2935 = dma.vmem_to_hbm [thread:$0]  (%p5322_p11), %s4842_s26, 128, %s4840_s24, %s2292_s2  }
 0x6f1 PF: > { %s5326_s4 = sld [smem:[#allocation30_spill]]  ;;  %s5327_s6 = sld [smem:[#allocation39_spill]] }
 0x6f2   : > { %s5328_s23 = sld [smem:[#allocation35_spill]] }
 0x6f7   : > { %s2340_s9 = sand.u32 1, %s5326_s4   ;;  %p5329_p8 = scmp.ne.s32.totalorder %s5327_s6, 0 }
 0x6f8   : > { %p5330_p0 = scmp.ge.s32.totalorder %s5328_s23, 2  ;;  %s2341_s18 = scalar_lea.sflag [#allocation6], %s2340_s9 }
 0x6fa   : > { %p2966_p1 = pnand %p5330_p0, %p5329_p8 }
 0x6fc   : > { %3386 = dma.done.wait (!%p2966_p1), %s2341_s18, 128  }
 0x6fd   : > { %3388 = vsyncadd (!%p2966_p1), %s2341_s18, 4294967168  ;;  %s2350_s29 = scalar_lea.sflag [#allocation21], %s2340_s9 }
 0x6fe   : > { %3390 = dma.done.wait (!%p2966_p1), %s2350_s29, 1024  }
 0x6ff   : > { %3392 = vsyncadd (!%p2966_p1), %s2350_s29, 4294966272  ;;  %s35_s18 = sadd.s32 1, %s5328_s23   ;;  %s5331_s13 = sld [smem:[#allocation31_spill]] }
 0x700   : > { %p32_p3 = scmp.ge.s32.totalorder %s35_s18, 4   ;;  %s5332_s14 = sld [smem:[#allocation32_spill]] }
 0x701   : > { %s5333_s15 = sld [smem:[#allocation38_spill]]  ;;  %s5334_s16 = sld [smem:[#allocation34_spill]] }
 0x702   : > { %s5335_s17 = sld [smem:[#allocation36_spill]]  ;;  %34 = sbr.rel (!%p32_p3) target bundleno = 25 (0x19), region = 152 }
 0x709   :  { %2355 = vsyncpa [#allocation5], 1 }
 0x70a   :  { %2357 = vsyncpa [#allocation5 + $0x1], 1 }
 0x70b   :  { %2358 = vsyncpa [#allocation9], 1 }
 0x70c   :  { %2359 = vsyncpa [#allocation12], 1 }
 0x70d   :  { %2360 = vsyncpa [#allocation6], 1 }
 0x70e   :  { %2362 = vsyncpa [#allocation6 + $0x1], 1 }
 0x70f   :  { %2363 = vsyncpa [#allocation21], 1 }
 0x710   :  { %2365 = vsyncpa [#allocation21 + $0x1], 1 }
 0x711   :  { %2366 = vsyncpa [#allocation7], 1 }
 0x712   :  { %2368 = vsyncpa [#allocation7 + $0x1], 1 }
 0x713   :  { %2369 = vsyncpa [#allocation15], 1 }
 0x714   :  { %2370 = vsyncpa [#allocation18], 1 }

</bundles_post_ra>
